<compile_context>
chip_gen: v5e
topology: v5e:2x2
jax: 0.10.0
libtpu: 0.0.40
codegen_flags: <defaults>
</compile_context>

<pallas_src>
import functools

import jax
import jax.numpy as jnp
import numpy as np
from jax import lax
from jax.experimental import pallas as pl
from jax.experimental.pallas import tpu as pltpu


def _round_up(n, m):
    return ((n + m - 1) // m) * m


def _device_info():
    """Return (vmem_capacity_bytes, tensorcores_per_chip) with safe fallbacks."""
    kind = ""
    try:
        kind = jax.devices()[0].device_kind.lower()
    except Exception:
        pass
    is_v7 = "v7" in kind
    vmem = (64 << 20) if is_v7 else (128 << 20)
    try:
        v = getattr(pltpu.get_tpu_info(), "vmem_capacity_bytes", None)
        if v:
            vmem = int(v)
    except Exception:
        pass
    return vmem, (2 if is_v7 else 1)


def lstm_kernel(gx_ref, whh_ref, hout_ref, h_sc, c_sc, *, seq_len):
    """One grid step = one (batch block, time chunk).

    gx_ref : (Tc, bb, 4Hp)  precomputed x@W_ih^T + (b_ih+b_hh), time-major chunk
    whh_ref: (Hp, 4Hp)      recurrent weight W_hh^T (bf16 or f32), VMEM-resident
    hout_ref: (bb, Hp)      last hidden state (written on the final time chunk)
    h_sc/c_sc: (bb, Hp)     persistent f32 hidden / cell state
    """
    ci = pl.program_id(1)  # time-chunk index (innermost, sequential)

    # h0 = c0 = 0 at the start of the sequence (PyTorch default), per batch block.
    @pl.when(ci == 0)
    def _():
        h_sc[...] = jnp.zeros_like(h_sc)
        c_sc[...] = jnp.zeros_like(c_sc)

    Hp = h_sc.shape[1]
    Tc = gx_ref.shape[0]
    ragged = (seq_len % Tc) != 0
    if ragged:
        num_valid = jnp.minimum(Tc, seq_len - ci * Tc)  # valid steps in this chunk

    def step(s, carry):
        h, c = carry
        hb = h.astype(whh_ref.dtype)  # bf16 operands, f32 accumulation below

        # Per-gate-block dots: live working set is ~(bb, Hp) instead of (bb, 4Hp),
        # each gate slice is lane-aligned since Hp is a multiple of 128.
        # TODO(synk): for Hp <= 256, hold W_hh in MXU staging regs across the chunk
        # via pltpu.matmul_push_rhs/matmul_acc_lhs instead of re-streaming per step.
        def gate(gi, act):
            pre = gx_ref[s, :, gi * Hp:(gi + 1) * Hp].astype(jnp.float32) + jnp.dot(
                hb, whh_ref[:, gi * Hp:(gi + 1) * Hp],
                preferred_element_type=jnp.float32)
            return act(pre)

        i_g = gate(0, jax.nn.sigmoid)
        f_g = gate(1, jax.nn.sigmoid)
        g_g = gate(2, jnp.tanh)
        o_g = gate(3, jax.nn.sigmoid)
        c_new = f_g * c + i_g * g_g
        h_new = o_g * jnp.tanh(c_new)

        if ragged:
            # Mask padded tail steps (keeps Tc large for awkward/prime T).
            keep = (s < num_valid).astype(jnp.float32)
            h_new = keep * h_new + (1.0 - keep) * h
            c_new = keep * c_new + (1.0 - keep) * c
        return h_new, c_new

    h, c = lax.fori_loop(0, Tc, step, (h_sc[...], c_sc[...]), unroll=min(Tc, 8))
    h_sc[...] = h
    c_sc[...] = c

    @pl.when(ci == pl.num_programs(1) - 1)
    def _():
        hout_ref[...] = h.astype(hout_ref.dtype)


def lstm_model_forward(x, params, *, time_chunk=32,
                       recurrent_dtype=jnp.bfloat16,
                       gates_dtype=jnp.float32):
    """x: (B, T, D) float32. Returns (B, output_dim), matching the PyTorch module.

    recurrent_dtype: operand/storage dtype of W_hh^T for the per-step MXU matmul
                     (accumulation is always f32). bf16 (default) is the fast path.
    gates_dtype:     storage dtype of the hoisted input projection; bf16 is
                     recommended on HBM-bandwidth-limited parts (v5e).
    """
    B, T, D = x.shape
    H = params["w_hh"].shape[1]
    O = params["w_fc"].shape[0]

    Hp = _round_up(H, 128)          # lane-aligned hidden / gate blocks
    Bp = _round_up(B, 8)            # full sublanes
    G = 4 * Hp

    Tc = max(1, min(T, time_chunk))
    n_chunks = (T + Tc - 1) // Tc
    Tp = n_chunks * Tc

    f32 = jnp.float32
    w_ih = params["w_ih"].astype(f32)                     # (4H, D)
    w_hh = params["w_hh"].astype(f32)                     # (4H, H)
    b = (params["b_ih"] + params["b_hh"]).astype(f32)     # (4H,)
    w_fc = params["w_fc"].astype(f32)                     # (O, H)
    b_fc = params["b_fc"].astype(f32)                     # (O,)

    # Per-gate padding (PyTorch gate order i, f, g, o along dim 0) keeps the gate
    # slices Hp-aligned. Padded hidden units stay exactly 0 through the recurrence.
    w_ih_p = jnp.pad(w_ih.reshape(4, H, D), ((0, 0), (0, Hp - H), (0, 0))).reshape(G, D)
    w_hh_p = jnp.pad(w_hh.reshape(4, H, H), ((0, 0), (0, Hp - H), (0, Hp - H))).reshape(G, Hp)
    b_p = jnp.pad(b.reshape(4, H), ((0, 0), (0, Hp - H))).reshape(G)

    # Hoisted, time-parallel input projection built time-major WITHOUT a
    # transposed-output einsum: transpose the small x first, then one plain matmul.
    x_p = jnp.pad(x.astype(f32), ((0, Bp - B), (0, 0), (0, 0)))      # (Bp, T, D)
    x_t = jnp.transpose(x_p, (1, 0, 2)).reshape(T * Bp, D)           # (T*Bp, D)
    gates_x = (x_t @ w_ih_p.T + b_p).reshape(T, Bp, G)               # (T, Bp, G)
    if Tp != T:  # pad the time grid; tail steps are masked in-kernel
        gates_x = jnp.pad(gates_x, ((0, Tp - T), (0, 0), (0, 0)))
    gates_x = gates_x.astype(gates_dtype)

    whh_t = w_hh_p.T.astype(recurrent_dtype)                         # (Hp, G)

    vmem_cap, n_tc = _device_info()
    # Split the batch only when a second TensorCore exists (v7x); on single-TC
    # chips splitting just streams W_hh twice as often, sequentially.
    bb = Bp // 2 if (n_tc >= 2 and Bp % 16 == 0) else Bp

    gbytes = np.dtype(gates_dtype).itemsize
    rbytes = np.dtype(recurrent_dtype).itemsize
    req = (2 * Tc * bb * G * gbytes     # gates chunk (double-buffered)
           + 1 * Hp * G * rbytes        # W_hh^T (single-buffered, constant index)
           + 2 * bb * Hp * 4            # output block
           + 2 * bb * Hp * 4)           # h/c scratch
    vmem_limit = int(min(max(req + (4 << 20), 32 << 20), int(0.85 * vmem_cap)))

    kernel = functools.partial(lstm_kernel, seq_len=T)

    def build(whh_spec):
        return pl.pallas_call(
            kernel,
            out_shape=jax.ShapeDtypeStruct((Bp, Hp), jnp.float32),
            grid_spec=pltpu.PrefetchScalarGridSpec(
                num_scalar_prefetch=0,
                grid=(Bp // bb, Tp // Tc),            # (batch blocks, time chunks)
                in_specs=[
                    pl.BlockSpec((Tc, bb, G), lambda bi, ci: (ci, bi, 0)),  # gates_x chunk
                    whh_spec,                                               # W_hh^T resident
                ],
                out_specs=pl.BlockSpec((bb, Hp), lambda bi, ci: (bi, 0)),   # lane-dense h
                scratch_shapes=[
                    pltpu.VMEM((bb, Hp), jnp.float32),   # h state
                    pltpu.VMEM((bb, Hp), jnp.float32),   # c state
                ],
            ),
            compiler_params=pltpu.CompilerParams(
                dimension_semantics=("parallel", "arbitrary"),  # batch parallel, time sequential
                vmem_limit_bytes=vmem_limit,
            ),
        )

    # Constant-index weight -> single-buffer it (halves its VMEM footprint).
    # Keep a plain double-buffered spec as a fallback so the kernel always runs.
    whh_spec_candidates = [
        pl.BlockSpec((Hp, G), lambda bi, ci: (0, 0), pipeline_mode=pl.Buffered(1)),
        pl.BlockSpec((Hp, G), lambda bi, ci: (0, 0)),
    ]
    h_last, err = None, None
    for spec in whh_spec_candidates:
        try:
            h_last = build(spec)(gates_x, whh_t)
            break
        except Exception as e:  # fall back to the safe (double-buffered) spec
            err = e
    if h_last is None:
        raise err

    # Final FC on the last hidden state, done in XLA (== fc(hidden.squeeze())).
    # TODO(synk): for very large H on v7x, tile W_hh^T over its 4Hp axis with an
    # inner pltpu.emit_pipeline so only one column block is VMEM-resident.
    return h_last[:B, :H] @ w_fc.T + b_fc


def init_params(key, input_dim, hidden_dim, output_dim):
    ks = jax.random.split(key, 6)
    k = 1.0 / jnp.sqrt(hidden_dim)
    return {
        "w_ih": jax.random.uniform(ks[0], (4 * hidden_dim, input_dim), jnp.float32, -k, k),
        "w_hh": jax.random.uniform(ks[1], (4 * hidden_dim, hidden_dim), jnp.float32, -k, k),
        "b_ih": jax.random.uniform(ks[2], (4 * hidden_dim,), jnp.float32, -k, k),
        "b_hh": jax.random.uniform(ks[3], (4 * hidden_dim,), jnp.float32, -k, k),
        "w_fc": jax.random.uniform(ks[4], (output_dim, hidden_dim), jnp.float32, -k, k),
        "b_fc": jax.random.uniform(ks[5], (output_dim,), jnp.float32, -k, k),
    }


def _reference(x, params):
    """Pure-JAX reference of the PyTorch forward pass."""
    B, T, D = x.shape
    H = params["w_hh"].shape[1]
    h = jnp.zeros((B, H), jnp.float32)
    c = jnp.zeros((B, H), jnp.float32)
    for t in range(T):
        g = x[:, t] @ params["w_ih"].T + h @ params["w_hh"].T + params["b_ih"] + params["b_hh"]
        i_g = jax.nn.sigmoid(g[:, 0 * H:1 * H])
        f_g = jax.nn.sigmoid(g[:, 1 * H:2 * H])
        g_g = jnp.tanh(g[:, 2 * H:3 * H])
        o_g = jax.nn.sigmoid(g[:, 3 * H:4 * H])
        c = f_g * c + i_g * g_g
        h = o_g * jnp.tanh(c)
    return h @ params["w_fc"].T + params["b_fc"]


if __name__ == "__main__":
    B, T, D, H, O = 2, 8, 16, 32, 8
    key = jax.random.PRNGKey(0)
    kx, kp = jax.random.split(key)
    x = jax.random.normal(kx, (B, T, D), jnp.float32)
    params = init_params(kp, D, H, O)

    ref = _reference(x, params)

    # (1) f32 recurrent weights, T divisible by the time chunk: tight numerics check.
    out_f32 = lstm_model_forward(x, params, time_chunk=8, recurrent_dtype=jnp.float32)
    jax.block_until_ready(out_f32)
    assert out_f32.shape == (B, O)
    assert jnp.allclose(out_f32, ref, atol=1e-4, rtol=1e-4), \
        float(jnp.max(jnp.abs(out_f32 - ref)))

    # (2) default fast path: bf16 recurrent matmul + ragged time chunk (tail masking).
    out = lstm_model_forward(x, params, time_chunk=5)
    jax.block_until_ready(out)
    assert out.shape == (B, O)
    assert jnp.allclose(out, ref, atol=1e-2, rtol=1e-2), \
        float(jnp.max(jnp.abs(out - ref)))

    print("KERNEL_OK")
</pallas_src>

<mosaic_0001>
module attributes {stable_mosaic.version = 11 : i64} {
  func.func @lstm_kernel(%arg0: i32, %arg1: i32, %arg2: memref<8x8x512xf32, #tpu.memory_space<vmem>>, %arg3: memref<128x512xf32, #tpu.memory_space<vmem>>, %arg4: memref<8x128xf32, #tpu.memory_space<vmem>>, %arg5: memref<8x128xf32, #tpu.memory_space<vmem>>, %arg6: memref<8x128xf32, #tpu.memory_space<vmem>>) attributes {dimension_semantics = [#tpu.dimension_semantics<parallel>, #tpu.dimension_semantics<arbitrary>], iteration_bounds = array<i64: 1, 1>, scalar_prefetch = 0 : i64, scratch_operands = 2 : i64, tpu.core_type = #tpu.core_type<tc>, window_params = [{transform_indices = @transform_0, window_bounds = array<i64: 8, 8, 512>}, {pipeline_mode = #tpu.pipeline_mode<synchronous>, transform_indices = @transform_1, window_bounds = array<i64: 128, 512>}, {transform_indices = @transform_2, window_bounds = array<i64: 8, 128>}]} {
    %c0_i32 = arith.constant 0 : i32
    %0 = arith.cmpi eq, %arg1, %c0_i32 : i32
    %1 = arith.extui %0 : i1 to i32
    %c0_i32_0 = arith.constant 0 : i32
    %2 = arith.cmpi ne, %1, %c0_i32_0 : i32
    scf.if %2 {
      %cst_191 = arith.constant 0.000000e+00 : f32
      %370 = vector.broadcast %cst_191 : f32 to vector<8x128xf32>
      %c0_192 = arith.constant 0 : index
      %c0_193 = arith.constant 0 : index
      %371 = vector.load %arg5[%c0_192, %c0_193] : memref<8x128xf32, #tpu.memory_space<vmem>>, vector<8x128xf32>
      tpu.vector_store %arg5[%c0_192, %c0_193], %370 {strides = array<i32>} : memref<8x128xf32, #tpu.memory_space<vmem>>, vector<8x128xf32>,
      %cst_194 = arith.constant 0.000000e+00 : f32
      %372 = vector.broadcast %cst_194 : f32 to vector<8x128xf32>
      %c0_195 = arith.constant 0 : index
      %c0_196 = arith.constant 0 : index
      %373 = vector.load %arg6[%c0_195, %c0_196] : memref<8x128xf32, #tpu.memory_space<vmem>>, vector<8x128xf32>
      tpu.vector_store %arg6[%c0_195, %c0_196], %372 {strides = array<i32>} : memref<8x128xf32, #tpu.memory_space<vmem>>, vector<8x128xf32>,
    } else {
    }
    %c0 = arith.constant 0 : index
    %c0_1 = arith.constant 0 : index
    %3 = vector.load %arg5[%c0, %c0_1] : memref<8x128xf32, #tpu.memory_space<vmem>>, vector<8x128xf32>
    %c0_2 = arith.constant 0 : index
    %c0_3 = arith.constant 0 : index
    %4 = vector.load %arg6[%c0_2, %c0_3] : memref<8x128xf32, #tpu.memory_space<vmem>>, vector<8x128xf32>
    %c0_i32_4 = arith.constant 0 : i32
    %5 = arith.index_cast %c0_i32_4 : i32 to index
    %c0_5 = arith.constant 0 : index
    %c0_6 = arith.constant 0 : index
    %6 = vector.load %arg2[%5, %c0_5, %c0_6] : memref<8x8x512xf32, #tpu.memory_space<vmem>>, vector<1x8x128xf32>
    %7 = vector.shape_cast %6 : vector<1x8x128xf32> to vector<8x128xf32>
    %c0_7 = arith.constant 0 : index
    %c0_8 = arith.constant 0 : index
    %8 = vector.load %arg3[%c0_7, %c0_8] : memref<128x512xf32, #tpu.memory_space<vmem>>, vector<128x128xf32>
    %cst = arith.constant dense<0.000000e+00> : vector<8x128xf32>
    %9 = tpu.matmul %3, %8, %cst {dimension_numbers = #tpu.dot_dimension_numbers<[1], [0], [0], [1], [0, 0, 1, 1], [], []>} : vector<8x128xf32>, vector<128x128xf32>, vector<8x128xf32> -> vector<8x128xf32>
    %10 = arith.addf %7, %9 : vector<8x128xf32>
    %11 = arith.negf %10 : vector<8x128xf32>
    %12 = math.exp %11 : vector<8x128xf32>
    %cst_9 = arith.constant 1.000000e+00 : f32
    %13 = vector.broadcast %cst_9 : f32 to vector<8x128xf32>
    %14 = arith.addf %13, %12 : vector<8x128xf32>
    %15 = arith.divf %13, %14 : vector<8x128xf32>
    %16 = arith.index_cast %c0_i32_4 : i32 to index
    %c0_10 = arith.constant 0 : index
    %c128 = arith.constant 128 : index
    %17 = vector.load %arg2[%16, %c0_10, %c128] : memref<8x8x512xf32, #tpu.memory_space<vmem>>, vector<1x8x128xf32>
    %18 = vector.shape_cast %17 : vector<1x8x128xf32> to vector<8x128xf32>
    %c0_11 = arith.constant 0 : index
    %c128_12 = arith.constant 128 : index
    %19 = vector.load %arg3[%c0_11, %c128_12] : memref<128x512xf32, #tpu.memory_space<vmem>>, vector<128x128xf32>
    %cst_13 = arith.constant dense<0.000000e+00> : vector<8x128xf32>
    %20 = tpu.matmul %3, %19, %cst_13 {dimension_numbers = #tpu.dot_dimension_numbers<[1], [0], [0], [1], [0, 0, 1, 1], [], []>} : vector<8x128xf32>, vector<128x128xf32>, vector<8x128xf32> -> vector<8x128xf32>
    %21 = arith.addf %18, %20 : vector<8x128xf32>
    %22 = arith.negf %21 : vector<8x128xf32>
    %23 = math.exp %22 : vector<8x128xf32>
    %cst_14 = arith.constant 1.000000e+00 : f32
    %24 = vector.broadcast %cst_14 : f32 to vector<8x128xf32>
    %25 = arith.addf %24, %23 : vector<8x128xf32>
    %26 = arith.divf %24, %25 : vector<8x128xf32>
    %27 = arith.index_cast %c0_i32_4 : i32 to index
    %c0_15 = arith.constant 0 : index
    %c256 = arith.constant 256 : index
    %28 = vector.load %arg2[%27, %c0_15, %c256] : memref<8x8x512xf32, #tpu.memory_space<vmem>>, vector<1x8x128xf32>
    %29 = vector.shape_cast %28 : vector<1x8x128xf32> to vector<8x128xf32>
    %c0_16 = arith.constant 0 : index
    %c256_17 = arith.constant 256 : index
    %30 = vector.load %arg3[%c0_16, %c256_17] : memref<128x512xf32, #tpu.memory_space<vmem>>, vector<128x128xf32>
    %cst_18 = arith.constant dense<0.000000e+00> : vector<8x128xf32>
    %31 = tpu.matmul %3, %30, %cst_18 {dimension_numbers = #tpu.dot_dimension_numbers<[1], [0], [0], [1], [0, 0, 1, 1], [], []>} : vector<8x128xf32>, vector<128x128xf32>, vector<8x128xf32> -> vector<8x128xf32>
    %32 = arith.addf %29, %31 : vector<8x128xf32>
    %33 = math.tanh %32 : vector<8x128xf32>
    %34 = arith.index_cast %c0_i32_4 : i32 to index
    %c0_19 = arith.constant 0 : index
    %c384 = arith.constant 384 : index
    %35 = vector.load %arg2[%34, %c0_19, %c384] : memref<8x8x512xf32, #tpu.memory_space<vmem>>, vector<1x8x128xf32>
    %36 = vector.shape_cast %35 : vector<1x8x128xf32> to vector<8x128xf32>
    %c0_20 = arith.constant 0 : index
    %c384_21 = arith.constant 384 : index
    %37 = vector.load %arg3[%c0_20, %c384_21] : memref<128x512xf32, #tpu.memory_space<vmem>>, vector<128x128xf32>
    %cst_22 = arith.constant dense<0.000000e+00> : vector<8x128xf32>
    %38 = tpu.matmul %3, %37, %cst_22 {dimension_numbers = #tpu.dot_dimension_numbers<[1], [0], [0], [1], [0, 0, 1, 1], [], []>} : vector<8x128xf32>, vector<128x128xf32>, vector<8x128xf32> -> vector<8x128xf32>
    %39 = arith.addf %36, %38 : vector<8x128xf32>
    %40 = arith.negf %39 : vector<8x128xf32>
    %41 = math.exp %40 : vector<8x128xf32>
    %cst_23 = arith.constant 1.000000e+00 : f32
    %42 = vector.broadcast %cst_23 : f32 to vector<8x128xf32>
    %43 = arith.addf %42, %41 : vector<8x128xf32>
    %44 = arith.divf %42, %43 : vector<8x128xf32>
    %45 = arith.mulf %26, %4 : vector<8x128xf32>
    %46 = arith.mulf %15, %33 : vector<8x128xf32>
    %47 = arith.addf %45, %46 : vector<8x128xf32>
    %48 = math.tanh %47 : vector<8x128xf32>
    %49 = arith.mulf %44, %48 : vector<8x128xf32>
    %c1_i32 = arith.constant 1 : i32
    %50 = arith.index_cast %c1_i32 : i32 to index
    %c0_24 = arith.constant 0 : index
    %c0_25 = arith.constant 0 : index
    %51 = vector.load %arg2[%50, %c0_24, %c0_25] : memref<8x8x512xf32, #tpu.memory_space<vmem>>, vector<1x8x128xf32>
    %52 = vector.shape_cast %51 : vector<1x8x128xf32> to vector<8x128xf32>
    %c0_26 = arith.constant 0 : index
    %c0_27 = arith.constant 0 : index
    %53 = vector.load %arg3[%c0_26, %c0_27] : memref<128x512xf32, #tpu.memory_space<vmem>>, vector<128x128xf32>
    %cst_28 = arith.constant dense<0.000000e+00> : vector<8x128xf32>
    %54 = tpu.matmul %49, %53, %cst_28 {dimension_numbers = #tpu.dot_dimension_numbers<[1], [0], [0], [1], [0, 0, 1, 1], [], []>} : vector<8x128xf32>, vector<128x128xf32>, vector<8x128xf32> -> vector<8x128xf32>
    %55 = arith.addf %52, %54 : vector<8x128xf32>
    %56 = arith.negf %55 : vector<8x128xf32>
    %57 = math.exp %56 : vector<8x128xf32>
    %cst_29 = arith.constant 1.000000e+00 : f32
    %58 = vector.broadcast %cst_29 : f32 to vector<8x128xf32>
    %59 = arith.addf %58, %57 : vector<8x128xf32>
    %60 = arith.divf %58, %59 : vector<8x128xf32>
    %61 = arith.index_cast %c1_i32 : i32 to index
    %c0_30 = arith.constant 0 : index
    %c128_31 = arith.constant 128 : index
    %62 = vector.load %arg2[%61, %c0_30, %c128_31] : memref<8x8x512xf32, #tpu.memory_space<vmem>>, vector<1x8x128xf32>
    %63 = vector.shape_cast %62 : vector<1x8x128xf32> to vector<8x128xf32>
    %c0_32 = arith.constant 0 : index
    %c128_33 = arith.constant 128 : index
    %64 = vector.load %arg3[%c0_32, %c128_33] : memref<128x512xf32, #tpu.memory_space<vmem>>, vector<128x128xf32>
    %cst_34 = arith.constant dense<0.000000e+00> : vector<8x128xf32>
    %65 = tpu.matmul %49, %64, %cst_34 {dimension_numbers = #tpu.dot_dimension_numbers<[1], [0], [0], [1], [0, 0, 1, 1], [], []>} : vector<8x128xf32>, vector<128x128xf32>, vector<8x128xf32> -> vector<8x128xf32>
    %66 = arith.addf %63, %65 : vector<8x128xf32>
    %67 = arith.negf %66 : vector<8x128xf32>
    %68 = math.exp %67 : vector<8x128xf32>
    %cst_35 = arith.constant 1.000000e+00 : f32
    %69 = vector.broadcast %cst_35 : f32 to vector<8x128xf32>
    %70 = arith.addf %69, %68 : vector<8x128xf32>
    %71 = arith.divf %69, %70 : vector<8x128xf32>
    %72 = arith.index_cast %c1_i32 : i32 to index
    %c0_36 = arith.constant 0 : index
    %c256_37 = arith.constant 256 : index
    %73 = vector.load %arg2[%72, %c0_36, %c256_37] : memref<8x8x512xf32, #tpu.memory_space<vmem>>, vector<1x8x128xf32>
    %74 = vector.shape_cast %73 : vector<1x8x128xf32> to vector<8x128xf32>
    %c0_38 = arith.constant 0 : index
    %c256_39 = arith.constant 256 : index
    %75 = vector.load %arg3[%c0_38, %c256_39] : memref<128x512xf32, #tpu.memory_space<vmem>>, vector<128x128xf32>
    %cst_40 = arith.constant dense<0.000000e+00> : vector<8x128xf32>
    %76 = tpu.matmul %49, %75, %cst_40 {dimension_numbers = #tpu.dot_dimension_numbers<[1], [0], [0], [1], [0, 0, 1, 1], [], []>} : vector<8x128xf32>, vector<128x128xf32>, vector<8x128xf32> -> vector<8x128xf32>
    %77 = arith.addf %74, %76 : vector<8x128xf32>
    %78 = math.tanh %77 : vector<8x128xf32>
    %79 = arith.index_cast %c1_i32 : i32 to index
    %c0_41 = arith.constant 0 : index
    %c384_42 = arith.constant 384 : index
    %80 = vector.load %arg2[%79, %c0_41, %c384_42] : memref<8x8x512xf32, #tpu.memory_space<vmem>>, vector<1x8x128xf32>
    %81 = vector.shape_cast %80 : vector<1x8x128xf32> to vector<8x128xf32>
    %c0_43 = arith.constant 0 : index
    %c384_44 = arith.constant 384 : index
    %82 = vector.load %arg3[%c0_43, %c384_44] : memref<128x512xf32, #tpu.memory_space<vmem>>, vector<128x128xf32>
    %cst_45 = arith.constant dense<0.000000e+00> : vector<8x128xf32>
    %83 = tpu.matmul %49, %82, %cst_45 {dimension_numbers = #tpu.dot_dimension_numbers<[1], [0], [0], [1], [0, 0, 1, 1], [], []>} : vector<8x128xf32>, vector<128x128xf32>, vector<8x128xf32> -> vector<8x128xf32>
    %84 = arith.addf %81, %83 : vector<8x128xf32>
    %85 = arith.negf %84 : vector<8x128xf32>
    %86 = math.exp %85 : vector<8x128xf32>
    %cst_46 = arith.constant 1.000000e+00 : f32
    %87 = vector.broadcast %cst_46 : f32 to vector<8x128xf32>
    %88 = arith.addf %87, %86 : vector<8x128xf32>
    %89 = arith.divf %87, %88 : vector<8x128xf32>
    %90 = arith.mulf %71, %47 : vector<8x128xf32>
    %91 = arith.mulf %60, %78 : vector<8x128xf32>
    %92 = arith.addf %90, %91 : vector<8x128xf32>
    %93 = math.tanh %92 : vector<8x128xf32>
    %94 = arith.mulf %89, %93 : vector<8x128xf32>
    %c2_i32 = arith.constant 2 : i32
    %95 = arith.index_cast %c2_i32 : i32 to index
    %c0_47 = arith.constant 0 : index
    %c0_48 = arith.constant 0 : index
    %96 = vector.load %arg2[%95, %c0_47, %c0_48] : memref<8x8x512xf32, #tpu.memory_space<vmem>>, vector<1x8x128xf32>
    %97 = vector.shape_cast %96 : vector<1x8x128xf32> to vector<8x128xf32>
    %c0_49 = arith.constant 0 : index
    %c0_50 = arith.constant 0 : index
    %98 = vector.load %arg3[%c0_49, %c0_50] : memref<128x512xf32, #tpu.memory_space<vmem>>, vector<128x128xf32>
    %cst_51 = arith.constant dense<0.000000e+00> : vector<8x128xf32>
    %99 = tpu.matmul %94, %98, %cst_51 {dimension_numbers = #tpu.dot_dimension_numbers<[1], [0], [0], [1], [0, 0, 1, 1], [], []>} : vector<8x128xf32>, vector<128x128xf32>, vector<8x128xf32> -> vector<8x128xf32>
    %100 = arith.addf %97, %99 : vector<8x128xf32>
    %101 = arith.negf %100 : vector<8x128xf32>
    %102 = math.exp %101 : vector<8x128xf32>
    %cst_52 = arith.constant 1.000000e+00 : f32
    %103 = vector.broadcast %cst_52 : f32 to vector<8x128xf32>
    %104 = arith.addf %103, %102 : vector<8x128xf32>
    %105 = arith.divf %103, %104 : vector<8x128xf32>
    %106 = arith.index_cast %c2_i32 : i32 to index
    %c0_53 = arith.constant 0 : index
    %c128_54 = arith.constant 128 : index
    %107 = vector.load %arg2[%106, %c0_53, %c128_54] : memref<8x8x512xf32, #tpu.memory_space<vmem>>, vector<1x8x128xf32>
    %108 = vector.shape_cast %107 : vector<1x8x128xf32> to vector<8x128xf32>
    %c0_55 = arith.constant 0 : index
    %c128_56 = arith.constant 128 : index
    %109 = vector.load %arg3[%c0_55, %c128_56] : memref<128x512xf32, #tpu.memory_space<vmem>>, vector<128x128xf32>
    %cst_57 = arith.constant dense<0.000000e+00> : vector<8x128xf32>
    %110 = tpu.matmul %94, %109, %cst_57 {dimension_numbers = #tpu.dot_dimension_numbers<[1], [0], [0], [1], [0, 0, 1, 1], [], []>} : vector<8x128xf32>, vector<128x128xf32>, vector<8x128xf32> -> vector<8x128xf32>
    %111 = arith.addf %108, %110 : vector<8x128xf32>
    %112 = arith.negf %111 : vector<8x128xf32>
    %113 = math.exp %112 : vector<8x128xf32>
    %cst_58 = arith.constant 1.000000e+00 : f32
    %114 = vector.broadcast %cst_58 : f32 to vector<8x128xf32>
    %115 = arith.addf %114, %113 : vector<8x128xf32>
    %116 = arith.divf %114, %115 : vector<8x128xf32>
    %117 = arith.index_cast %c2_i32 : i32 to index
    %c0_59 = arith.constant 0 : index
    %c256_60 = arith.constant 256 : index
    %118 = vector.load %arg2[%117, %c0_59, %c256_60] : memref<8x8x512xf32, #tpu.memory_space<vmem>>, vector<1x8x128xf32>
    %119 = vector.shape_cast %118 : vector<1x8x128xf32> to vector<8x128xf32>
    %c0_61 = arith.constant 0 : index
    %c256_62 = arith.constant 256 : index
    %120 = vector.load %arg3[%c0_61, %c256_62] : memref<128x512xf32, #tpu.memory_space<vmem>>, vector<128x128xf32>
    %cst_63 = arith.constant dense<0.000000e+00> : vector<8x128xf32>
    %121 = tpu.matmul %94, %120, %cst_63 {dimension_numbers = #tpu.dot_dimension_numbers<[1], [0], [0], [1], [0, 0, 1, 1], [], []>} : vector<8x128xf32>, vector<128x128xf32>, vector<8x128xf32> -> vector<8x128xf32>
    %122 = arith.addf %119, %121 : vector<8x128xf32>
    %123 = math.tanh %122 : vector<8x128xf32>
    %124 = arith.index_cast %c2_i32 : i32 to index
    %c0_64 = arith.constant 0 : index
    %c384_65 = arith.constant 384 : index
    %125 = vector.load %arg2[%124, %c0_64, %c384_65] : memref<8x8x512xf32, #tpu.memory_space<vmem>>, vector<1x8x128xf32>
    %126 = vector.shape_cast %125 : vector<1x8x128xf32> to vector<8x128xf32>
    %c0_66 = arith.constant 0 : index
    %c384_67 = arith.constant 384 : index
    %127 = vector.load %arg3[%c0_66, %c384_67] : memref<128x512xf32, #tpu.memory_space<vmem>>, vector<128x128xf32>
    %cst_68 = arith.constant dense<0.000000e+00> : vector<8x128xf32>
    %128 = tpu.matmul %94, %127, %cst_68 {dimension_numbers = #tpu.dot_dimension_numbers<[1], [0], [0], [1], [0, 0, 1, 1], [], []>} : vector<8x128xf32>, vector<128x128xf32>, vector<8x128xf32> -> vector<8x128xf32>
    %129 = arith.addf %126, %128 : vector<8x128xf32>
    %130 = arith.negf %129 : vector<8x128xf32>
    %131 = math.exp %130 : vector<8x128xf32>
    %cst_69 = arith.constant 1.000000e+00 : f32
    %132 = vector.broadcast %cst_69 : f32 to vector<8x128xf32>
    %133 = arith.addf %132, %131 : vector<8x128xf32>
    %134 = arith.divf %132, %133 : vector<8x128xf32>
    %135 = arith.mulf %116, %92 : vector<8x128xf32>
    %136 = arith.mulf %105, %123 : vector<8x128xf32>
    %137 = arith.addf %135, %136 : vector<8x128xf32>
    %138 = math.tanh %137 : vector<8x128xf32>
    %139 = arith.mulf %134, %138 : vector<8x128xf32>
    %c3_i32 = arith.constant 3 : i32
    %140 = arith.index_cast %c3_i32 : i32 to index
    %c0_70 = arith.constant 0 : index
    %c0_71 = arith.constant 0 : index
    %141 = vector.load %arg2[%140, %c0_70, %c0_71] : memref<8x8x512xf32, #tpu.memory_space<vmem>>, vector<1x8x128xf32>
    %142 = vector.shape_cast %141 : vector<1x8x128xf32> to vector<8x128xf32>
    %c0_72 = arith.constant 0 : index
    %c0_73 = arith.constant 0 : index
    %143 = vector.load %arg3[%c0_72, %c0_73] : memref<128x512xf32, #tpu.memory_space<vmem>>, vector<128x128xf32>
    %cst_74 = arith.constant dense<0.000000e+00> : vector<8x128xf32>
    %144 = tpu.matmul %139, %143, %cst_74 {dimension_numbers = #tpu.dot_dimension_numbers<[1], [0], [0], [1], [0, 0, 1, 1], [], []>} : vector<8x128xf32>, vector<128x128xf32>, vector<8x128xf32> -> vector<8x128xf32>
    %145 = arith.addf %142, %144 : vector<8x128xf32>
    %146 = arith.negf %145 : vector<8x128xf32>
    %147 = math.exp %146 : vector<8x128xf32>
    %cst_75 = arith.constant 1.000000e+00 : f32
    %148 = vector.broadcast %cst_75 : f32 to vector<8x128xf32>
    %149 = arith.addf %148, %147 : vector<8x128xf32>
    %150 = arith.divf %148, %149 : vector<8x128xf32>
    %151 = arith.index_cast %c3_i32 : i32 to index
    %c0_76 = arith.constant 0 : index
    %c128_77 = arith.constant 128 : index
    %152 = vector.load %arg2[%151, %c0_76, %c128_77] : memref<8x8x512xf32, #tpu.memory_space<vmem>>, vector<1x8x128xf32>
    %153 = vector.shape_cast %152 : vector<1x8x128xf32> to vector<8x128xf32>
    %c0_78 = arith.constant 0 : index
    %c128_79 = arith.constant 128 : index
    %154 = vector.load %arg3[%c0_78, %c128_79] : memref<128x512xf32, #tpu.memory_space<vmem>>, vector<128x128xf32>
    %cst_80 = arith.constant dense<0.000000e+00> : vector<8x128xf32>
    %155 = tpu.matmul %139, %154, %cst_80 {dimension_numbers = #tpu.dot_dimension_numbers<[1], [0], [0], [1], [0, 0, 1, 1], [], []>} : vector<8x128xf32>, vector<128x128xf32>, vector<8x128xf32> -> vector<8x128xf32>
    %156 = arith.addf %153, %155 : vector<8x128xf32>
    %157 = arith.negf %156 : vector<8x128xf32>
    %158 = math.exp %157 : vector<8x128xf32>
    %cst_81 = arith.constant 1.000000e+00 : f32
    %159 = vector.broadcast %cst_81 : f32 to vector<8x128xf32>
    %160 = arith.addf %159, %158 : vector<8x128xf32>
    %161 = arith.divf %159, %160 : vector<8x128xf32>
    %162 = arith.index_cast %c3_i32 : i32 to index
    %c0_82 = arith.constant 0 : index
    %c256_83 = arith.constant 256 : index
    %163 = vector.load %arg2[%162, %c0_82, %c256_83] : memref<8x8x512xf32, #tpu.memory_space<vmem>>, vector<1x8x128xf32>
    %164 = vector.shape_cast %163 : vector<1x8x128xf32> to vector<8x128xf32>
    %c0_84 = arith.constant 0 : index
    %c256_85 = arith.constant 256 : index
    %165 = vector.load %arg3[%c0_84, %c256_85] : memref<128x512xf32, #tpu.memory_space<vmem>>, vector<128x128xf32>
    %cst_86 = arith.constant dense<0.000000e+00> : vector<8x128xf32>
    %166 = tpu.matmul %139, %165, %cst_86 {dimension_numbers = #tpu.dot_dimension_numbers<[1], [0], [0], [1], [0, 0, 1, 1], [], []>} : vector<8x128xf32>, vector<128x128xf32>, vector<8x128xf32> -> vector<8x128xf32>
    %167 = arith.addf %164, %166 : vector<8x128xf32>
    %168 = math.tanh %167 : vector<8x128xf32>
    %169 = arith.index_cast %c3_i32 : i32 to index
    %c0_87 = arith.constant 0 : index
    %c384_88 = arith.constant 384 : index
    %170 = vector.load %arg2[%169, %c0_87, %c384_88] : memref<8x8x512xf32, #tpu.memory_space<vmem>>, vector<1x8x128xf32>
    %171 = vector.shape_cast %170 : vector<1x8x128xf32> to vector<8x128xf32>
    %c0_89 = arith.constant 0 : index
    %c384_90 = arith.constant 384 : index
    %172 = vector.load %arg3[%c0_89, %c384_90] : memref<128x512xf32, #tpu.memory_space<vmem>>, vector<128x128xf32>
    %cst_91 = arith.constant dense<0.000000e+00> : vector<8x128xf32>
    %173 = tpu.matmul %139, %172, %cst_91 {dimension_numbers = #tpu.dot_dimension_numbers<[1], [0], [0], [1], [0, 0, 1, 1], [], []>} : vector<8x128xf32>, vector<128x128xf32>, vector<8x128xf32> -> vector<8x128xf32>
    %174 = arith.addf %171, %173 : vector<8x128xf32>
    %175 = arith.negf %174 : vector<8x128xf32>
    %176 = math.exp %175 : vector<8x128xf32>
    %cst_92 = arith.constant 1.000000e+00 : f32
    %177 = vector.broadcast %cst_92 : f32 to vector<8x128xf32>
    %178 = arith.addf %177, %176 : vector<8x128xf32>
    %179 = arith.divf %177, %178 : vector<8x128xf32>
    %180 = arith.mulf %161, %137 : vector<8x128xf32>
    %181 = arith.mulf %150, %168 : vector<8x128xf32>
    %182 = arith.addf %180, %181 : vector<8x128xf32>
    %183 = math.tanh %182 : vector<8x128xf32>
    %184 = arith.mulf %179, %183 : vector<8x128xf32>
    %c4_i32 = arith.constant 4 : i32
    %185 = arith.index_cast %c4_i32 : i32 to index
    %c0_93 = arith.constant 0 : index
    %c0_94 = arith.constant 0 : index
    %186 = vector.load %arg2[%185, %c0_93, %c0_94] : memref<8x8x512xf32, #tpu.memory_space<vmem>>, vector<1x8x128xf32>
    %187 = vector.shape_cast %186 : vector<1x8x128xf32> to vector<8x128xf32>
    %c0_95 = arith.constant 0 : index
    %c0_96 = arith.constant 0 : index
    %188 = vector.load %arg3[%c0_95, %c0_96] : memref<128x512xf32, #tpu.memory_space<vmem>>, vector<128x128xf32>
    %cst_97 = arith.constant dense<0.000000e+00> : vector<8x128xf32>
    %189 = tpu.matmul %184, %188, %cst_97 {dimension_numbers = #tpu.dot_dimension_numbers<[1], [0], [0], [1], [0, 0, 1, 1], [], []>} : vector<8x128xf32>, vector<128x128xf32>, vector<8x128xf32> -> vector<8x128xf32>
    %190 = arith.addf %187, %189 : vector<8x128xf32>
    %191 = arith.negf %190 : vector<8x128xf32>
    %192 = math.exp %191 : vector<8x128xf32>
    %cst_98 = arith.constant 1.000000e+00 : f32
    %193 = vector.broadcast %cst_98 : f32 to vector<8x128xf32>
    %194 = arith.addf %193, %192 : vector<8x128xf32>
    %195 = arith.divf %193, %194 : vector<8x128xf32>
    %196 = arith.index_cast %c4_i32 : i32 to index
    %c0_99 = arith.constant 0 : index
    %c128_100 = arith.constant 128 : index
    %197 = vector.load %arg2[%196, %c0_99, %c128_100] : memref<8x8x512xf32, #tpu.memory_space<vmem>>, vector<1x8x128xf32>
    %198 = vector.shape_cast %197 : vector<1x8x128xf32> to vector<8x128xf32>
    %c0_101 = arith.constant 0 : index
    %c128_102 = arith.constant 128 : index
    %199 = vector.load %arg3[%c0_101, %c128_102] : memref<128x512xf32, #tpu.memory_space<vmem>>, vector<128x128xf32>
    %cst_103 = arith.constant dense<0.000000e+00> : vector<8x128xf32>
    %200 = tpu.matmul %184, %199, %cst_103 {dimension_numbers = #tpu.dot_dimension_numbers<[1], [0], [0], [1], [0, 0, 1, 1], [], []>} : vector<8x128xf32>, vector<128x128xf32>, vector<8x128xf32> -> vector<8x128xf32>
    %201 = arith.addf %198, %200 : vector<8x128xf32>
    %202 = arith.negf %201 : vector<8x128xf32>
    %203 = math.exp %202 : vector<8x128xf32>
    %cst_104 = arith.constant 1.000000e+00 : f32
    %204 = vector.broadcast %cst_104 : f32 to vector<8x128xf32>
    %205 = arith.addf %204, %203 : vector<8x128xf32>
    %206 = arith.divf %204, %205 : vector<8x128xf32>
    %207 = arith.index_cast %c4_i32 : i32 to index
    %c0_105 = arith.constant 0 : index
    %c256_106 = arith.constant 256 : index
    %208 = vector.load %arg2[%207, %c0_105, %c256_106] : memref<8x8x512xf32, #tpu.memory_space<vmem>>, vector<1x8x128xf32>
    %209 = vector.shape_cast %208 : vector<1x8x128xf32> to vector<8x128xf32>
    %c0_107 = arith.constant 0 : index
    %c256_108 = arith.constant 256 : index
    %210 = vector.load %arg3[%c0_107, %c256_108] : memref<128x512xf32, #tpu.memory_space<vmem>>, vector<128x128xf32>
    %cst_109 = arith.constant dense<0.000000e+00> : vector<8x128xf32>
    %211 = tpu.matmul %184, %210, %cst_109 {dimension_numbers = #tpu.dot_dimension_numbers<[1], [0], [0], [1], [0, 0, 1, 1], [], []>} : vector<8x128xf32>, vector<128x128xf32>, vector<8x128xf32> -> vector<8x128xf32>
    %212 = arith.addf %209, %211 : vector<8x128xf32>
    %213 = math.tanh %212 : vector<8x128xf32>
    %214 = arith.index_cast %c4_i32 : i32 to index
    %c0_110 = arith.constant 0 : index
    %c384_111 = arith.constant 384 : index
    %215 = vector.load %arg2[%214, %c0_110, %c384_111] : memref<8x8x512xf32, #tpu.memory_space<vmem>>, vector<1x8x128xf32>
    %216 = vector.shape_cast %215 : vector<1x8x128xf32> to vector<8x128xf32>
    %c0_112 = arith.constant 0 : index
    %c384_113 = arith.constant 384 : index
    %217 = vector.load %arg3[%c0_112, %c384_113] : memref<128x512xf32, #tpu.memory_space<vmem>>, vector<128x128xf32>
    %cst_114 = arith.constant dense<0.000000e+00> : vector<8x128xf32>
    %218 = tpu.matmul %184, %217, %cst_114 {dimension_numbers = #tpu.dot_dimension_numbers<[1], [0], [0], [1], [0, 0, 1, 1], [], []>} : vector<8x128xf32>, vector<128x128xf32>, vector<8x128xf32> -> vector<8x128xf32>
    %219 = arith.addf %216, %218 : vector<8x128xf32>
    %220 = arith.negf %219 : vector<8x128xf32>
    %221 = math.exp %220 : vector<8x128xf32>
    %cst_115 = arith.constant 1.000000e+00 : f32
    %222 = vector.broadcast %cst_115 : f32 to vector<8x128xf32>
    %223 = arith.addf %222, %221 : vector<8x128xf32>
    %224 = arith.divf %222, %223 : vector<8x128xf32>
    %225 = arith.mulf %206, %182 : vector<8x128xf32>
    %226 = arith.mulf %195, %213 : vector<8x128xf32>
    %227 = arith.addf %225, %226 : vector<8x128xf32>
    %228 = math.tanh %227 : vector<8x128xf32>
    %229 = arith.mulf %224, %228 : vector<8x128xf32>
    %c5_i32 = arith.constant 5 : i32
    %230 = arith.index_cast %c5_i32 : i32 to index
    %c0_116 = arith.constant 0 : index
    %c0_117 = arith.constant 0 : index
    %231 = vector.load %arg2[%230, %c0_116, %c0_117] : memref<8x8x512xf32, #tpu.memory_space<vmem>>, vector<1x8x128xf32>
    %232 = vector.shape_cast %231 : vector<1x8x128xf32> to vector<8x128xf32>
    %c0_118 = arith.constant 0 : index
    %c0_119 = arith.constant 0 : index
    %233 = vector.load %arg3[%c0_118, %c0_119] : memref<128x512xf32, #tpu.memory_space<vmem>>, vector<128x128xf32>
    %cst_120 = arith.constant dense<0.000000e+00> : vector<8x128xf32>
    %234 = tpu.matmul %229, %233, %cst_120 {dimension_numbers = #tpu.dot_dimension_numbers<[1], [0], [0], [1], [0, 0, 1, 1], [], []>} : vector<8x128xf32>, vector<128x128xf32>, vector<8x128xf32> -> vector<8x128xf32>
    %235 = arith.addf %232, %234 : vector<8x128xf32>
    %236 = arith.negf %235 : vector<8x128xf32>
    %237 = math.exp %236 : vector<8x128xf32>
    %cst_121 = arith.constant 1.000000e+00 : f32
    %238 = vector.broadcast %cst_121 : f32 to vector<8x128xf32>
    %239 = arith.addf %238, %237 : vector<8x128xf32>
    %240 = arith.divf %238, %239 : vector<8x128xf32>
    %241 = arith.index_cast %c5_i32 : i32 to index
    %c0_122 = arith.constant 0 : index
    %c128_123 = arith.constant 128 : index
    %242 = vector.load %arg2[%241, %c0_122, %c128_123] : memref<8x8x512xf32, #tpu.memory_space<vmem>>, vector<1x8x128xf32>
    %243 = vector.shape_cast %242 : vector<1x8x128xf32> to vector<8x128xf32>
    %c0_124 = arith.constant 0 : index
    %c128_125 = arith.constant 128 : index
    %244 = vector.load %arg3[%c0_124, %c128_125] : memref<128x512xf32, #tpu.memory_space<vmem>>, vector<128x128xf32>
    %cst_126 = arith.constant dense<0.000000e+00> : vector<8x128xf32>
    %245 = tpu.matmul %229, %244, %cst_126 {dimension_numbers = #tpu.dot_dimension_numbers<[1], [0], [0], [1], [0, 0, 1, 1], [], []>} : vector<8x128xf32>, vector<128x128xf32>, vector<8x128xf32> -> vector<8x128xf32>
    %246 = arith.addf %243, %245 : vector<8x128xf32>
    %247 = arith.negf %246 : vector<8x128xf32>
    %248 = math.exp %247 : vector<8x128xf32>
    %cst_127 = arith.constant 1.000000e+00 : f32
    %249 = vector.broadcast %cst_127 : f32 to vector<8x128xf32>
    %250 = arith.addf %249, %248 : vector<8x128xf32>
    %251 = arith.divf %249, %250 : vector<8x128xf32>
    %252 = arith.index_cast %c5_i32 : i32 to index
    %c0_128 = arith.constant 0 : index
    %c256_129 = arith.constant 256 : index
    %253 = vector.load %arg2[%252, %c0_128, %c256_129] : memref<8x8x512xf32, #tpu.memory_space<vmem>>, vector<1x8x128xf32>
    %254 = vector.shape_cast %253 : vector<1x8x128xf32> to vector<8x128xf32>
    %c0_130 = arith.constant 0 : index
    %c256_131 = arith.constant 256 : index
    %255 = vector.load %arg3[%c0_130, %c256_131] : memref<128x512xf32, #tpu.memory_space<vmem>>, vector<128x128xf32>
    %cst_132 = arith.constant dense<0.000000e+00> : vector<8x128xf32>
    %256 = tpu.matmul %229, %255, %cst_132 {dimension_numbers = #tpu.dot_dimension_numbers<[1], [0], [0], [1], [0, 0, 1, 1], [], []>} : vector<8x128xf32>, vector<128x128xf32>, vector<8x128xf32> -> vector<8x128xf32>
    %257 = arith.addf %254, %256 : vector<8x128xf32>
    %258 = math.tanh %257 : vector<8x128xf32>
    %259 = arith.index_cast %c5_i32 : i32 to index
    %c0_133 = arith.constant 0 : index
    %c384_134 = arith.constant 384 : index
    %260 = vector.load %arg2[%259, %c0_133, %c384_134] : memref<8x8x512xf32, #tpu.memory_space<vmem>>, vector<1x8x128xf32>
    %261 = vector.shape_cast %260 : vector<1x8x128xf32> to vector<8x128xf32>
    %c0_135 = arith.constant 0 : index
    %c384_136 = arith.constant 384 : index
    %262 = vector.load %arg3[%c0_135, %c384_136] : memref<128x512xf32, #tpu.memory_space<vmem>>, vector<128x128xf32>
    %cst_137 = arith.constant dense<0.000000e+00> : vector<8x128xf32>
    %263 = tpu.matmul %229, %262, %cst_137 {dimension_numbers = #tpu.dot_dimension_numbers<[1], [0], [0], [1], [0, 0, 1, 1], [], []>} : vector<8x128xf32>, vector<128x128xf32>, vector<8x128xf32> -> vector<8x128xf32>
    %264 = arith.addf %261, %263 : vector<8x128xf32>
    %265 = arith.negf %264 : vector<8x128xf32>
    %266 = math.exp %265 : vector<8x128xf32>
    %cst_138 = arith.constant 1.000000e+00 : f32
    %267 = vector.broadcast %cst_138 : f32 to vector<8x128xf32>
    %268 = arith.addf %267, %266 : vector<8x128xf32>
    %269 = arith.divf %267, %268 : vector<8x128xf32>
    %270 = arith.mulf %251, %227 : vector<8x128xf32>
    %271 = arith.mulf %240, %258 : vector<8x128xf32>
    %272 = arith.addf %270, %271 : vector<8x128xf32>
    %273 = math.tanh %272 : vector<8x128xf32>
    %274 = arith.mulf %269, %273 : vector<8x128xf32>
    %c6_i32 = arith.constant 6 : i32
    %275 = arith.index_cast %c6_i32 : i32 to index
    %c0_139 = arith.constant 0 : index
    %c0_140 = arith.constant 0 : index
    %276 = vector.load %arg2[%275, %c0_139, %c0_140] : memref<8x8x512xf32, #tpu.memory_space<vmem>>, vector<1x8x128xf32>
    %277 = vector.shape_cast %276 : vector<1x8x128xf32> to vector<8x128xf32>
    %c0_141 = arith.constant 0 : index
    %c0_142 = arith.constant 0 : index
    %278 = vector.load %arg3[%c0_141, %c0_142] : memref<128x512xf32, #tpu.memory_space<vmem>>, vector<128x128xf32>
    %cst_143 = arith.constant dense<0.000000e+00> : vector<8x128xf32>
    %279 = tpu.matmul %274, %278, %cst_143 {dimension_numbers = #tpu.dot_dimension_numbers<[1], [0], [0], [1], [0, 0, 1, 1], [], []>} : vector<8x128xf32>, vector<128x128xf32>, vector<8x128xf32> -> vector<8x128xf32>
    %280 = arith.addf %277, %279 : vector<8x128xf32>
    %281 = arith.negf %280 : vector<8x128xf32>
    %282 = math.exp %281 : vector<8x128xf32>
    %cst_144 = arith.constant 1.000000e+00 : f32
    %283 = vector.broadcast %cst_144 : f32 to vector<8x128xf32>
    %284 = arith.addf %283, %282 : vector<8x128xf32>
    %285 = arith.divf %283, %284 : vector<8x128xf32>
    %286 = arith.index_cast %c6_i32 : i32 to index
    %c0_145 = arith.constant 0 : index
    %c128_146 = arith.constant 128 : index
    %287 = vector.load %arg2[%286, %c0_145, %c128_146] : memref<8x8x512xf32, #tpu.memory_space<vmem>>, vector<1x8x128xf32>
    %288 = vector.shape_cast %287 : vector<1x8x128xf32> to vector<8x128xf32>
    %c0_147 = arith.constant 0 : index
    %c128_148 = arith.constant 128 : index
    %289 = vector.load %arg3[%c0_147, %c128_148] : memref<128x512xf32, #tpu.memory_space<vmem>>, vector<128x128xf32>
    %cst_149 = arith.constant dense<0.000000e+00> : vector<8x128xf32>
    %290 = tpu.matmul %274, %289, %cst_149 {dimension_numbers = #tpu.dot_dimension_numbers<[1], [0], [0], [1], [0, 0, 1, 1], [], []>} : vector<8x128xf32>, vector<128x128xf32>, vector<8x128xf32> -> vector<8x128xf32>
    %291 = arith.addf %288, %290 : vector<8x128xf32>
    %292 = arith.negf %291 : vector<8x128xf32>
    %293 = math.exp %292 : vector<8x128xf32>
    %cst_150 = arith.constant 1.000000e+00 : f32
    %294 = vector.broadcast %cst_150 : f32 to vector<8x128xf32>
    %295 = arith.addf %294, %293 : vector<8x128xf32>
    %296 = arith.divf %294, %295 : vector<8x128xf32>
    %297 = arith.index_cast %c6_i32 : i32 to index
    %c0_151 = arith.constant 0 : index
    %c256_152 = arith.constant 256 : index
    %298 = vector.load %arg2[%297, %c0_151, %c256_152] : memref<8x8x512xf32, #tpu.memory_space<vmem>>, vector<1x8x128xf32>
    %299 = vector.shape_cast %298 : vector<1x8x128xf32> to vector<8x128xf32>
    %c0_153 = arith.constant 0 : index
    %c256_154 = arith.constant 256 : index
    %300 = vector.load %arg3[%c0_153, %c256_154] : memref<128x512xf32, #tpu.memory_space<vmem>>, vector<128x128xf32>
    %cst_155 = arith.constant dense<0.000000e+00> : vector<8x128xf32>
    %301 = tpu.matmul %274, %300, %cst_155 {dimension_numbers = #tpu.dot_dimension_numbers<[1], [0], [0], [1], [0, 0, 1, 1], [], []>} : vector<8x128xf32>, vector<128x128xf32>, vector<8x128xf32> -> vector<8x128xf32>
    %302 = arith.addf %299, %301 : vector<8x128xf32>
    %303 = math.tanh %302 : vector<8x128xf32>
    %304 = arith.index_cast %c6_i32 : i32 to index
    %c0_156 = arith.constant 0 : index
    %c384_157 = arith.constant 384 : index
    %305 = vector.load %arg2[%304, %c0_156, %c384_157] : memref<8x8x512xf32, #tpu.memory_space<vmem>>, vector<1x8x128xf32>
    %306 = vector.shape_cast %305 : vector<1x8x128xf32> to vector<8x128xf32>
    %c0_158 = arith.constant 0 : index
    %c384_159 = arith.constant 384 : index
    %307 = vector.load %arg3[%c0_158, %c384_159] : memref<128x512xf32, #tpu.memory_space<vmem>>, vector<128x128xf32>
    %cst_160 = arith.constant dense<0.000000e+00> : vector<8x128xf32>
    %308 = tpu.matmul %274, %307, %cst_160 {dimension_numbers = #tpu.dot_dimension_numbers<[1], [0], [0], [1], [0, 0, 1, 1], [], []>} : vector<8x128xf32>, vector<128x128xf32>, vector<8x128xf32> -> vector<8x128xf32>
    %309 = arith.addf %306, %308 : vector<8x128xf32>
    %310 = arith.negf %309 : vector<8x128xf32>
    %311 = math.exp %310 : vector<8x128xf32>
    %cst_161 = arith.constant 1.000000e+00 : f32
    %312 = vector.broadcast %cst_161 : f32 to vector<8x128xf32>
    %313 = arith.addf %312, %311 : vector<8x128xf32>
    %314 = arith.divf %312, %313 : vector<8x128xf32>
    %315 = arith.mulf %296, %272 : vector<8x128xf32>
    %316 = arith.mulf %285, %303 : vector<8x128xf32>
    %317 = arith.addf %315, %316 : vector<8x128xf32>
    %318 = math.tanh %317 : vector<8x128xf32>
    %319 = arith.mulf %314, %318 : vector<8x128xf32>
    %c7_i32 = arith.constant 7 : i32
    %320 = arith.index_cast %c7_i32 : i32 to index
    %c0_162 = arith.constant 0 : index
    %c0_163 = arith.constant 0 : index
    %321 = vector.load %arg2[%320, %c0_162, %c0_163] : memref<8x8x512xf32, #tpu.memory_space<vmem>>, vector<1x8x128xf32>
    %322 = vector.shape_cast %321 : vector<1x8x128xf32> to vector<8x128xf32>
    %c0_164 = arith.constant 0 : index
    %c0_165 = arith.constant 0 : index
    %323 = vector.load %arg3[%c0_164, %c0_165] : memref<128x512xf32, #tpu.memory_space<vmem>>, vector<128x128xf32>
    %cst_166 = arith.constant dense<0.000000e+00> : vector<8x128xf32>
    %324 = tpu.matmul %319, %323, %cst_166 {dimension_numbers = #tpu.dot_dimension_numbers<[1], [0], [0], [1], [0, 0, 1, 1], [], []>} : vector<8x128xf32>, vector<128x128xf32>, vector<8x128xf32> -> vector<8x128xf32>
    %325 = arith.addf %322, %324 : vector<8x128xf32>
    %326 = arith.negf %325 : vector<8x128xf32>
    %327 = math.exp %326 : vector<8x128xf32>
    %cst_167 = arith.constant 1.000000e+00 : f32
    %328 = vector.broadcast %cst_167 : f32 to vector<8x128xf32>
    %329 = arith.addf %328, %327 : vector<8x128xf32>
    %330 = arith.divf %328, %329 : vector<8x128xf32>
    %331 = arith.index_cast %c7_i32 : i32 to index
    %c0_168 = arith.constant 0 : index
    %c128_169 = arith.constant 128 : index
    %332 = vector.load %arg2[%331, %c0_168, %c128_169] : memref<8x8x512xf32, #tpu.memory_space<vmem>>, vector<1x8x128xf32>
    %333 = vector.shape_cast %332 : vector<1x8x128xf32> to vector<8x128xf32>
    %c0_170 = arith.constant 0 : index
    %c128_171 = arith.constant 128 : index
    %334 = vector.load %arg3[%c0_170, %c128_171] : memref<128x512xf32, #tpu.memory_space<vmem>>, vector<128x128xf32>
    %cst_172 = arith.constant dense<0.000000e+00> : vector<8x128xf32>
    %335 = tpu.matmul %319, %334, %cst_172 {dimension_numbers = #tpu.dot_dimension_numbers<[1], [0], [0], [1], [0, 0, 1, 1], [], []>} : vector<8x128xf32>, vector<128x128xf32>, vector<8x128xf32> -> vector<8x128xf32>
    %336 = arith.addf %333, %335 : vector<8x128xf32>
    %337 = arith.negf %336 : vector<8x128xf32>
    %338 = math.exp %337 : vector<8x128xf32>
    %cst_173 = arith.constant 1.000000e+00 : f32
    %339 = vector.broadcast %cst_173 : f32 to vector<8x128xf32>
    %340 = arith.addf %339, %338 : vector<8x128xf32>
    %341 = arith.divf %339, %340 : vector<8x128xf32>
    %342 = arith.index_cast %c7_i32 : i32 to index
    %c0_174 = arith.constant 0 : index
    %c256_175 = arith.constant 256 : index
    %343 = vector.load %arg2[%342, %c0_174, %c256_175] : memref<8x8x512xf32, #tpu.memory_space<vmem>>, vector<1x8x128xf32>
    %344 = vector.shape_cast %343 : vector<1x8x128xf32> to vector<8x128xf32>
    %c0_176 = arith.constant 0 : index
    %c256_177 = arith.constant 256 : index
    %345 = vector.load %arg3[%c0_176, %c256_177] : memref<128x512xf32, #tpu.memory_space<vmem>>, vector<128x128xf32>
    %cst_178 = arith.constant dense<0.000000e+00> : vector<8x128xf32>
    %346 = tpu.matmul %319, %345, %cst_178 {dimension_numbers = #tpu.dot_dimension_numbers<[1], [0], [0], [1], [0, 0, 1, 1], [], []>} : vector<8x128xf32>, vector<128x128xf32>, vector<8x128xf32> -> vector<8x128xf32>
    %347 = arith.addf %344, %346 : vector<8x128xf32>
    %348 = math.tanh %347 : vector<8x128xf32>
    %349 = arith.index_cast %c7_i32 : i32 to index
    %c0_179 = arith.constant 0 : index
    %c384_180 = arith.constant 384 : index
    %350 = vector.load %arg2[%349, %c0_179, %c384_180] : memref<8x8x512xf32, #tpu.memory_space<vmem>>, vector<1x8x128xf32>
    %351 = vector.shape_cast %350 : vector<1x8x128xf32> to vector<8x128xf32>
    %c0_181 = arith.constant 0 : index
    %c384_182 = arith.constant 384 : index
    %352 = vector.load %arg3[%c0_181, %c384_182] : memref<128x512xf32, #tpu.memory_space<vmem>>, vector<128x128xf32>
    %cst_183 = arith.constant dense<0.000000e+00> : vector<8x128xf32>
    %353 = tpu.matmul %319, %352, %cst_183 {dimension_numbers = #tpu.dot_dimension_numbers<[1], [0], [0], [1], [0, 0, 1, 1], [], []>} : vector<8x128xf32>, vector<128x128xf32>, vector<8x128xf32> -> vector<8x128xf32>
    %354 = arith.addf %351, %353 : vector<8x128xf32>
    %355 = arith.negf %354 : vector<8x128xf32>
    %356 = math.exp %355 : vector<8x128xf32>
    %cst_184 = arith.constant 1.000000e+00 : f32
    %357 = vector.broadcast %cst_184 : f32 to vector<8x128xf32>
    %358 = arith.addf %357, %356 : vector<8x128xf32>
    %359 = arith.divf %357, %358 : vector<8x128xf32>
    %360 = arith.mulf %341, %317 : vector<8x128xf32>
    %361 = arith.mulf %330, %348 : vector<8x128xf32>
    %362 = arith.addf %360, %361 : vector<8x128xf32>
    %363 = math.tanh %362 : vector<8x128xf32>
    %364 = arith.mulf %359, %363 : vector<8x128xf32>
    %c8_i32 = arith.constant 8 : i32
    %c0_185 = arith.constant 0 : index
    %c0_186 = arith.constant 0 : index
    %365 = vector.load %arg5[%c0_185, %c0_186] : memref<8x128xf32, #tpu.memory_space<vmem>>, vector<8x128xf32>
    tpu.vector_store %arg5[%c0_185, %c0_186], %364 {strides = array<i32>} : memref<8x128xf32, #tpu.memory_space<vmem>>, vector<8x128xf32>,
    %c0_187 = arith.constant 0 : index
    %c0_188 = arith.constant 0 : index
    %366 = vector.load %arg6[%c0_187, %c0_188] : memref<8x128xf32, #tpu.memory_space<vmem>>, vector<8x128xf32>
    tpu.vector_store %arg6[%c0_187, %c0_188], %362 {strides = array<i32>} : memref<8x128xf32, #tpu.memory_space<vmem>>, vector<8x128xf32>,
    %c0_i32_189 = arith.constant 0 : i32
    %367 = arith.cmpi eq, %arg1, %c0_i32_189 : i32
    %368 = arith.extui %367 : i1 to i32
    %c0_i32_190 = arith.constant 0 : i32
    %369 = arith.cmpi ne, %368, %c0_i32_190 : i32
    scf.if %369 {
      %c0_191 = arith.constant 0 : index
      %c0_192 = arith.constant 0 : index
      %370 = vector.load %arg4[%c0_191, %c0_192] : memref<8x128xf32, #tpu.memory_space<vmem>>, vector<8x128xf32>
      tpu.vector_store %arg4[%c0_191, %c0_192], %364 {strides = array<i32>} : memref<8x128xf32, #tpu.memory_space<vmem>>, vector<8x128xf32>,
    } else {
    }
    return
  }
  func.func @transform_0(%arg0: i32, %arg1: i32) -> (i32, i32, i32) {
    %c0_i32 = arith.constant 0 : i32
    %c0_i32_0 = arith.constant 0 : i32
    return %arg1, %arg0, %c0_i32 : i32, i32, i32
  }
  func.func @transform_1(%arg0: i32, %arg1: i32) -> (i32, i32) {
    %c0_i32 = arith.constant 0 : i32
    %c0_i32_0 = arith.constant 0 : i32
    %c0_i32_1 = arith.constant 0 : i32
    return %c0_i32, %c0_i32_0 : i32, i32
  }
  func.func @transform_2(%arg0: i32, %arg1: i32) -> (i32, i32) {
    %c0_i32 = arith.constant 0 : i32
    %c0_i32_0 = arith.constant 0 : i32
    return %arg0, %c0_i32 : i32, i32
  }
}

module attributes {stable_mosaic.version = 11 : i64} {
  func.func @lstm_kernel(%arg0: i32, %arg1: i32, %arg2: memref<8x8x512xf32, #tpu.memory_space<vmem>>, %arg3: memref<128x512xf32, #tpu.memory_space<vmem>>, %arg4: memref<8x128xf32, #tpu.memory_space<vmem>>, %arg5: memref<8x128xf32, #tpu.memory_space<vmem>>, %arg6: memref<8x128xf32, #tpu.memory_space<vmem>>) attributes {dimension_semantics = [#tpu.dimension_semantics<parallel>, #tpu.dimension_semantics<arbitrary>], iteration_bounds = array<i64: 1, 1>, scalar_prefetch = 0 : i64, scratch_operands = 2 : i64, tpu.core_type = #tpu.core_type<tc>, window_params = [{transform_indices = @transform_0, window_bounds = array<i64: 8, 8, 512>}, {pipeline_mode = #tpu.pipeline_mode<synchronous>, transform_indices = @transform_1, window_bounds = array<i64: 128, 512>}, {transform_indices = @transform_2, window_bounds = array<i64: 8, 128>}]} {
    %c0_i32 = arith.constant 0 : i32
    %0 = arith.cmpi eq, %arg1, %c0_i32 : i32
    %1 = arith.extui %0 : i1 to i32
    %c0_i32_0 = arith.constant 0 : i32
    %2 = arith.cmpi ne, %1, %c0_i32_0 : i32
    scf.if %2 {
      %cst_191 = arith.constant 0.000000e+00 : f32
      %370 = vector.broadcast %cst_191 : f32 to vector<8x128xf32>
      %c0_192 = arith.constant 0 : index
      %c0_193 = arith.constant 0 : index
      %371 = vector.load %arg5[%c0_192, %c0_193] : memref<8x128xf32, #tpu.memory_space<vmem>>, vector<8x128xf32>
      tpu.vector_store %arg5[%c0_192, %c0_193], %370 {strides = array<i32>} : memref<8x128xf32, #tpu.memory_space<vmem>>, vector<8x128xf32>,
      %cst_194 = arith.constant 0.000000e+00 : f32
      %372 = vector.broadcast %cst_194 : f32 to vector<8x128xf32>
      %c0_195 = arith.constant 0 : index
      %c0_196 = arith.constant 0 : index
      %373 = vector.load %arg6[%c0_195, %c0_196] : memref<8x128xf32, #tpu.memory_space<vmem>>, vector<8x128xf32>
      tpu.vector_store %arg6[%c0_195, %c0_196], %372 {strides = array<i32>} : memref<8x128xf32, #tpu.memory_space<vmem>>, vector<8x128xf32>,
    } else {
    }
    %c0 = arith.constant 0 : index
    %c0_1 = arith.constant 0 : index
    %3 = vector.load %arg5[%c0, %c0_1] : memref<8x128xf32, #tpu.memory_space<vmem>>, vector<8x128xf32>
    %c0_2 = arith.constant 0 : index
    %c0_3 = arith.constant 0 : index
    %4 = vector.load %arg6[%c0_2, %c0_3] : memref<8x128xf32, #tpu.memory_space<vmem>>, vector<8x128xf32>
    %c0_i32_4 = arith.constant 0 : i32
    %5 = arith.index_cast %c0_i32_4 : i32 to index
    %c0_5 = arith.constant 0 : index
    %c0_6 = arith.constant 0 : index
    %6 = vector.load %arg2[%5, %c0_5, %c0_6] : memref<8x8x512xf32, #tpu.memory_space<vmem>>, vector<1x8x128xf32>
    %7 = vector.shape_cast %6 : vector<1x8x128xf32> to vector<8x128xf32>
    %c0_7 = arith.constant 0 : index
    %c0_8 = arith.constant 0 : index
    %8 = vector.load %arg3[%c0_7, %c0_8] : memref<128x512xf32, #tpu.memory_space<vmem>>, vector<128x128xf32>
    %cst = arith.constant dense<0.000000e+00> : vector<8x128xf32>
    %9 = tpu.matmul %3, %8, %cst {dimension_numbers = #tpu.dot_dimension_numbers<[1], [0], [0], [1], [0, 0, 1, 1], [], []>} : vector<8x128xf32>, vector<128x128xf32>, vector<8x128xf32> -> vector<8x128xf32>
    %10 = arith.addf %7, %9 : vector<8x128xf32>
    %11 = arith.negf %10 : vector<8x128xf32>
    %12 = math.exp %11 : vector<8x128xf32>
    %cst_9 = arith.constant 1.000000e+00 : f32
    %13 = vector.broadcast %cst_9 : f32 to vector<8x128xf32>
    %14 = arith.addf %13, %12 : vector<8x128xf32>
    %15 = arith.divf %13, %14 : vector<8x128xf32>
    %16 = arith.index_cast %c0_i32_4 : i32 to index
    %c0_10 = arith.constant 0 : index
    %c128 = arith.constant 128 : index
    %17 = vector.load %arg2[%16, %c0_10, %c128] : memref<8x8x512xf32, #tpu.memory_space<vmem>>, vector<1x8x128xf32>
    %18 = vector.shape_cast %17 : vector<1x8x128xf32> to vector<8x128xf32>
    %c0_11 = arith.constant 0 : index
    %c128_12 = arith.constant 128 : index
    %19 = vector.load %arg3[%c0_11, %c128_12] : memref<128x512xf32, #tpu.memory_space<vmem>>, vector<128x128xf32>
    %cst_13 = arith.constant dense<0.000000e+00> : vector<8x128xf32>
    %20 = tpu.matmul %3, %19, %cst_13 {dimension_numbers = #tpu.dot_dimension_numbers<[1], [0], [0], [1], [0, 0, 1, 1], [], []>} : vector<8x128xf32>, vector<128x128xf32>, vector<8x128xf32> -> vector<8x128xf32>
    %21 = arith.addf %18, %20 : vector<8x128xf32>
    %22 = arith.negf %21 : vector<8x128xf32>
    %23 = math.exp %22 : vector<8x128xf32>
    %cst_14 = arith.constant 1.000000e+00 : f32
    %24 = vector.broadcast %cst_14 : f32 to vector<8x128xf32>
    %25 = arith.addf %24, %23 : vector<8x128xf32>
    %26 = arith.divf %24, %25 : vector<8x128xf32>
    %27 = arith.index_cast %c0_i32_4 : i32 to index
    %c0_15 = arith.constant 0 : index
    %c256 = arith.constant 256 : index
    %28 = vector.load %arg2[%27, %c0_15, %c256] : memref<8x8x512xf32, #tpu.memory_space<vmem>>, vector<1x8x128xf32>
    %29 = vector.shape_cast %28 : vector<1x8x128xf32> to vector<8x128xf32>
    %c0_16 = arith.constant 0 : index
    %c256_17 = arith.constant 256 : index
    %30 = vector.load %arg3[%c0_16, %c256_17] : memref<128x512xf32, #tpu.memory_space<vmem>>, vector<128x128xf32>
    %cst_18 = arith.constant dense<0.000000e+00> : vector<8x128xf32>
    %31 = tpu.matmul %3, %30, %cst_18 {dimension_numbers = #tpu.dot_dimension_numbers<[1], [0], [0], [1], [0, 0, 1, 1], [], []>} : vector<8x128xf32>, vector<128x128xf32>, vector<8x128xf32> -> vector<8x128xf32>
    %32 = arith.addf %29, %31 : vector<8x128xf32>
    %33 = math.tanh %32 : vector<8x128xf32>
    %34 = arith.index_cast %c0_i32_4 : i32 to index
    %c0_19 = arith.constant 0 : index
    %c384 = arith.constant 384 : index
    %35 = vector.load %arg2[%34, %c0_19, %c384] : memref<8x8x512xf32, #tpu.memory_space<vmem>>, vector<1x8x128xf32>
    %36 = vector.shape_cast %35 : vector<1x8x128xf32> to vector<8x128xf32>
    %c0_20 = arith.constant 0 : index
    %c384_21 = arith.constant 384 : index
    %37 = vector.load %arg3[%c0_20, %c384_21] : memref<128x512xf32, #tpu.memory_space<vmem>>, vector<128x128xf32>
    %cst_22 = arith.constant dense<0.000000e+00> : vector<8x128xf32>
    %38 = tpu.matmul %3, %37, %cst_22 {dimension_numbers = #tpu.dot_dimension_numbers<[1], [0], [0], [1], [0, 0, 1, 1], [], []>} : vector<8x128xf32>, vector<128x128xf32>, vector<8x128xf32> -> vector<8x128xf32>
    %39 = arith.addf %36, %38 : vector<8x128xf32>
    %40 = arith.negf %39 : vector<8x128xf32>
    %41 = math.exp %40 : vector<8x128xf32>
    %cst_23 = arith.constant 1.000000e+00 : f32
    %42 = vector.broadcast %cst_23 : f32 to vector<8x128xf32>
    %43 = arith.addf %42, %41 : vector<8x128xf32>
    %44 = arith.divf %42, %43 : vector<8x128xf32>
    %45 = arith.mulf %26, %4 : vector<8x128xf32>
    %46 = arith.mulf %15, %33 : vector<8x128xf32>
    %47 = arith.addf %45, %46 : vector<8x128xf32>
    %48 = math.tanh %47 : vector<8x128xf32>
    %49 = arith.mulf %44, %48 : vector<8x128xf32>
    %c1_i32 = arith.constant 1 : i32
    %50 = arith.index_cast %c1_i32 : i32 to index
    %c0_24 = arith.constant 0 : index
    %c0_25 = arith.constant 0 : index
    %51 = vector.load %arg2[%50, %c0_24, %c0_25] : memref<8x8x512xf32, #tpu.memory_space<vmem>>, vector<1x8x128xf32>
    %52 = vector.shape_cast %51 : vector<1x8x128xf32> to vector<8x128xf32>
    %c0_26 = arith.constant 0 : index
    %c0_27 = arith.constant 0 : index
    %53 = vector.load %arg3[%c0_26, %c0_27] : memref<128x512xf32, #tpu.memory_space<vmem>>, vector<128x128xf32>
    %cst_28 = arith.constant dense<0.000000e+00> : vector<8x128xf32>
    %54 = tpu.matmul %49, %53, %cst_28 {dimension_numbers = #tpu.dot_dimension_numbers<[1], [0], [0], [1], [0, 0, 1, 1], [], []>} : vector<8x128xf32>, vector<128x128xf32>, vector<8x128xf32> -> vector<8x128xf32>
    %55 = arith.addf %52, %54 : vector<8x128xf32>
    %56 = arith.negf %55 : vector<8x128xf32>
    %57 = math.exp %56 : vector<8x128xf32>
    %cst_29 = arith.constant 1.000000e+00 : f32
    %58 = vector.broadcast %cst_29 : f32 to vector<8x128xf32>
    %59 = arith.addf %58, %57 : vector<8x128xf32>
    %60 = arith.divf %58, %59 : vector<8x128xf32>
    %61 = arith.index_cast %c1_i32 : i32 to index
    %c0_30 = arith.constant 0 : index
    %c128_31 = arith.constant 128 : index
    %62 = vector.load %arg2[%61, %c0_30, %c128_31] : memref<8x8x512xf32, #tpu.memory_space<vmem>>, vector<1x8x128xf32>
    %63 = vector.shape_cast %62 : vector<1x8x128xf32> to vector<8x128xf32>
    %c0_32 = arith.constant 0 : index
    %c128_33 = arith.constant 128 : index
    %64 = vector.load %arg3[%c0_32, %c128_33] : memref<128x512xf32, #tpu.memory_space<vmem>>, vector<128x128xf32>
    %cst_34 = arith.constant dense<0.000000e+00> : vector<8x128xf32>
    %65 = tpu.matmul %49, %64, %cst_34 {dimension_numbers = #tpu.dot_dimension_numbers<[1], [0], [0], [1], [0, 0, 1, 1], [], []>} : vector<8x128xf32>, vector<128x128xf32>, vector<8x128xf32> -> vector<8x128xf32>
    %66 = arith.addf %63, %65 : vector<8x128xf32>
    %67 = arith.negf %66 : vector<8x128xf32>
    %68 = math.exp %67 : vector<8x128xf32>
    %cst_35 = arith.constant 1.000000e+00 : f32
    %69 = vector.broadcast %cst_35 : f32 to vector<8x128xf32>
    %70 = arith.addf %69, %68 : vector<8x128xf32>
    %71 = arith.divf %69, %70 : vector<8x128xf32>
    %72 = arith.index_cast %c1_i32 : i32 to index
    %c0_36 = arith.constant 0 : index
    %c256_37 = arith.constant 256 : index
    %73 = vector.load %arg2[%72, %c0_36, %c256_37] : memref<8x8x512xf32, #tpu.memory_space<vmem>>, vector<1x8x128xf32>
    %74 = vector.shape_cast %73 : vector<1x8x128xf32> to vector<8x128xf32>
    %c0_38 = arith.constant 0 : index
    %c256_39 = arith.constant 256 : index
    %75 = vector.load %arg3[%c0_38, %c256_39] : memref<128x512xf32, #tpu.memory_space<vmem>>, vector<128x128xf32>
    %cst_40 = arith.constant dense<0.000000e+00> : vector<8x128xf32>
    %76 = tpu.matmul %49, %75, %cst_40 {dimension_numbers = #tpu.dot_dimension_numbers<[1], [0], [0], [1], [0, 0, 1, 1], [], []>} : vector<8x128xf32>, vector<128x128xf32>, vector<8x128xf32> -> vector<8x128xf32>
    %77 = arith.addf %74, %76 : vector<8x128xf32>
    %78 = math.tanh %77 : vector<8x128xf32>
    %79 = arith.index_cast %c1_i32 : i32 to index
    %c0_41 = arith.constant 0 : index
    %c384_42 = arith.constant 384 : index
    %80 = vector.load %arg2[%79, %c0_41, %c384_42] : memref<8x8x512xf32, #tpu.memory_space<vmem>>, vector<1x8x128xf32>
    %81 = vector.shape_cast %80 : vector<1x8x128xf32> to vector<8x128xf32>
    %c0_43 = arith.constant 0 : index
    %c384_44 = arith.constant 384 : index
    %82 = vector.load %arg3[%c0_43, %c384_44] : memref<128x512xf32, #tpu.memory_space<vmem>>, vector<128x128xf32>
    %cst_45 = arith.constant dense<0.000000e+00> : vector<8x128xf32>
    %83 = tpu.matmul %49, %82, %cst_45 {dimension_numbers = #tpu.dot_dimension_numbers<[1], [0], [0], [1], [0, 0, 1, 1], [], []>} : vector<8x128xf32>, vector<128x128xf32>, vector<8x128xf32> -> vector<8x128xf32>
    %84 = arith.addf %81, %83 : vector<8x128xf32>
    %85 = arith.negf %84 : vector<8x128xf32>
    %86 = math.exp %85 : vector<8x128xf32>
    %cst_46 = arith.constant 1.000000e+00 : f32
    %87 = vector.broadcast %cst_46 : f32 to vector<8x128xf32>
    %88 = arith.addf %87, %86 : vector<8x128xf32>
    %89 = arith.divf %87, %88 : vector<8x128xf32>
    %90 = arith.mulf %71, %47 : vector<8x128xf32>
    %91 = arith.mulf %60, %78 : vector<8x128xf32>
    %92 = arith.addf %90, %91 : vector<8x128xf32>
    %93 = math.tanh %92 : vector<8x128xf32>
    %94 = arith.mulf %89, %93 : vector<8x128xf32>
    %c2_i32 = arith.constant 2 : i32
    %95 = arith.index_cast %c2_i32 : i32 to index
    %c0_47 = arith.constant 0 : index
    %c0_48 = arith.constant 0 : index
    %96 = vector.load %arg2[%95, %c0_47, %c0_48] : memref<8x8x512xf32, #tpu.memory_space<vmem>>, vector<1x8x128xf32>
    %97 = vector.shape_cast %96 : vector<1x8x128xf32> to vector<8x128xf32>
    %c0_49 = arith.constant 0 : index
    %c0_50 = arith.constant 0 : index
    %98 = vector.load %arg3[%c0_49, %c0_50] : memref<128x512xf32, #tpu.memory_space<vmem>>, vector<128x128xf32>
    %cst_51 = arith.constant dense<0.000000e+00> : vector<8x128xf32>
    %99 = tpu.matmul %94, %98, %cst_51 {dimension_numbers = #tpu.dot_dimension_numbers<[1], [0], [0], [1], [0, 0, 1, 1], [], []>} : vector<8x128xf32>, vector<128x128xf32>, vector<8x128xf32> -> vector<8x128xf32>
    %100 = arith.addf %97, %99 : vector<8x128xf32>
    %101 = arith.negf %100 : vector<8x128xf32>
    %102 = math.exp %101 : vector<8x128xf32>
    %cst_52 = arith.constant 1.000000e+00 : f32
    %103 = vector.broadcast %cst_52 : f32 to vector<8x128xf32>
    %104 = arith.addf %103, %102 : vector<8x128xf32>
    %105 = arith.divf %103, %104 : vector<8x128xf32>
    %106 = arith.index_cast %c2_i32 : i32 to index
    %c0_53 = arith.constant 0 : index
    %c128_54 = arith.constant 128 : index
    %107 = vector.load %arg2[%106, %c0_53, %c128_54] : memref<8x8x512xf32, #tpu.memory_space<vmem>>, vector<1x8x128xf32>
    %108 = vector.shape_cast %107 : vector<1x8x128xf32> to vector<8x128xf32>
    %c0_55 = arith.constant 0 : index
    %c128_56 = arith.constant 128 : index
    %109 = vector.load %arg3[%c0_55, %c128_56] : memref<128x512xf32, #tpu.memory_space<vmem>>, vector<128x128xf32>
    %cst_57 = arith.constant dense<0.000000e+00> : vector<8x128xf32>
    %110 = tpu.matmul %94, %109, %cst_57 {dimension_numbers = #tpu.dot_dimension_numbers<[1], [0], [0], [1], [0, 0, 1, 1], [], []>} : vector<8x128xf32>, vector<128x128xf32>, vector<8x128xf32> -> vector<8x128xf32>
    %111 = arith.addf %108, %110 : vector<8x128xf32>
    %112 = arith.negf %111 : vector<8x128xf32>
    %113 = math.exp %112 : vector<8x128xf32>
    %cst_58 = arith.constant 1.000000e+00 : f32
    %114 = vector.broadcast %cst_58 : f32 to vector<8x128xf32>
    %115 = arith.addf %114, %113 : vector<8x128xf32>
    %116 = arith.divf %114, %115 : vector<8x128xf32>
    %117 = arith.index_cast %c2_i32 : i32 to index
    %c0_59 = arith.constant 0 : index
    %c256_60 = arith.constant 256 : index
    %118 = vector.load %arg2[%117, %c0_59, %c256_60] : memref<8x8x512xf32, #tpu.memory_space<vmem>>, vector<1x8x128xf32>
    %119 = vector.shape_cast %118 : vector<1x8x128xf32> to vector<8x128xf32>
    %c0_61 = arith.constant 0 : index
    %c256_62 = arith.constant 256 : index
    %120 = vector.load %arg3[%c0_61, %c256_62] : memref<128x512xf32, #tpu.memory_space<vmem>>, vector<128x128xf32>
    %cst_63 = arith.constant dense<0.000000e+00> : vector<8x128xf32>
    %121 = tpu.matmul %94, %120, %cst_63 {dimension_numbers = #tpu.dot_dimension_numbers<[1], [0], [0], [1], [0, 0, 1, 1], [], []>} : vector<8x128xf32>, vector<128x128xf32>, vector<8x128xf32> -> vector<8x128xf32>
    %122 = arith.addf %119, %121 : vector<8x128xf32>
    %123 = math.tanh %122 : vector<8x128xf32>
    %124 = arith.index_cast %c2_i32 : i32 to index
    %c0_64 = arith.constant 0 : index
    %c384_65 = arith.constant 384 : index
    %125 = vector.load %arg2[%124, %c0_64, %c384_65] : memref<8x8x512xf32, #tpu.memory_space<vmem>>, vector<1x8x128xf32>
    %126 = vector.shape_cast %125 : vector<1x8x128xf32> to vector<8x128xf32>
    %c0_66 = arith.constant 0 : index
    %c384_67 = arith.constant 384 : index
    %127 = vector.load %arg3[%c0_66, %c384_67] : memref<128x512xf32, #tpu.memory_space<vmem>>, vector<128x128xf32>
    %cst_68 = arith.constant dense<0.000000e+00> : vector<8x128xf32>
    %128 = tpu.matmul %94, %127, %cst_68 {dimension_numbers = #tpu.dot_dimension_numbers<[1], [0], [0], [1], [0, 0, 1, 1], [], []>} : vector<8x128xf32>, vector<128x128xf32>, vector<8x128xf32> -> vector<8x128xf32>
    %129 = arith.addf %126, %128 : vector<8x128xf32>
    %130 = arith.negf %129 : vector<8x128xf32>
    %131 = math.exp %130 : vector<8x128xf32>
    %cst_69 = arith.constant 1.000000e+00 : f32
    %132 = vector.broadcast %cst_69 : f32 to vector<8x128xf32>
    %133 = arith.addf %132, %131 : vector<8x128xf32>
    %134 = arith.divf %132, %133 : vector<8x128xf32>
    %135 = arith.mulf %116, %92 : vector<8x128xf32>
    %136 = arith.mulf %105, %123 : vector<8x128xf32>
    %137 = arith.addf %135, %136 : vector<8x128xf32>
    %138 = math.tanh %137 : vector<8x128xf32>
    %139 = arith.mulf %134, %138 : vector<8x128xf32>
    %c3_i32 = arith.constant 3 : i32
    %140 = arith.index_cast %c3_i32 : i32 to index
    %c0_70 = arith.constant 0 : index
    %c0_71 = arith.constant 0 : index
    %141 = vector.load %arg2[%140, %c0_70, %c0_71] : memref<8x8x512xf32, #tpu.memory_space<vmem>>, vector<1x8x128xf32>
    %142 = vector.shape_cast %141 : vector<1x8x128xf32> to vector<8x128xf32>
    %c0_72 = arith.constant 0 : index
    %c0_73 = arith.constant 0 : index
    %143 = vector.load %arg3[%c0_72, %c0_73] : memref<128x512xf32, #tpu.memory_space<vmem>>, vector<128x128xf32>
    %cst_74 = arith.constant dense<0.000000e+00> : vector<8x128xf32>
    %144 = tpu.matmul %139, %143, %cst_74 {dimension_numbers = #tpu.dot_dimension_numbers<[1], [0], [0], [1], [0, 0, 1, 1], [], []>} : vector<8x128xf32>, vector<128x128xf32>, vector<8x128xf32> -> vector<8x128xf32>
    %145 = arith.addf %142, %144 : vector<8x128xf32>
    %146 = arith.negf %145 : vector<8x128xf32>
    %147 = math.exp %146 : vector<8x128xf32>
    %cst_75 = arith.constant 1.000000e+00 : f32
    %148 = vector.broadcast %cst_75 : f32 to vector<8x128xf32>
    %149 = arith.addf %148, %147 : vector<8x128xf32>
    %150 = arith.divf %148, %149 : vector<8x128xf32>
    %151 = arith.index_cast %c3_i32 : i32 to index
    %c0_76 = arith.constant 0 : index
    %c128_77 = arith.constant 128 : index
    %152 = vector.load %arg2[%151, %c0_76, %c128_77] : memref<8x8x512xf32, #tpu.memory_space<vmem>>, vector<1x8x128xf32>
    %153 = vector.shape_cast %152 : vector<1x8x128xf32> to vector<8x128xf32>
    %c0_78 = arith.constant 0 : index
    %c128_79 = arith.constant 128 : index
    %154 = vector.load %arg3[%c0_78, %c128_79] : memref<128x512xf32, #tpu.memory_space<vmem>>, vector<128x128xf32>
    %cst_80 = arith.constant dense<0.000000e+00> : vector<8x128xf32>
    %155 = tpu.matmul %139, %154, %cst_80 {dimension_numbers = #tpu.dot_dimension_numbers<[1], [0], [0], [1], [0, 0, 1, 1], [], []>} : vector<8x128xf32>, vector<128x128xf32>, vector<8x128xf32> -> vector<8x128xf32>
    %156 = arith.addf %153, %155 : vector<8x128xf32>
    %157 = arith.negf %156 : vector<8x128xf32>
    %158 = math.exp %157 : vector<8x128xf32>
    %cst_81 = arith.constant 1.000000e+00 : f32
    %159 = vector.broadcast %cst_81 : f32 to vector<8x128xf32>
    %160 = arith.addf %159, %158 : vector<8x128xf32>
    %161 = arith.divf %159, %160 : vector<8x128xf32>
    %162 = arith.index_cast %c3_i32 : i32 to index
    %c0_82 = arith.constant 0 : index
    %c256_83 = arith.constant 256 : index
    %163 = vector.load %arg2[%162, %c0_82, %c256_83] : memref<8x8x512xf32, #tpu.memory_space<vmem>>, vector<1x8x128xf32>
    %164 = vector.shape_cast %163 : vector<1x8x128xf32> to vector<8x128xf32>
    %c0_84 = arith.constant 0 : index
    %c256_85 = arith.constant 256 : index
    %165 = vector.load %arg3[%c0_84, %c256_85] : memref<128x512xf32, #tpu.memory_space<vmem>>, vector<128x128xf32>
    %cst_86 = arith.constant dense<0.000000e+00> : vector<8x128xf32>
    %166 = tpu.matmul %139, %165, %cst_86 {dimension_numbers = #tpu.dot_dimension_numbers<[1], [0], [0], [1], [0, 0, 1, 1], [], []>} : vector<8x128xf32>, vector<128x128xf32>, vector<8x128xf32> -> vector<8x128xf32>
    %167 = arith.addf %164, %166 : vector<8x128xf32>
    %168 = math.tanh %167 : vector<8x128xf32>
    %169 = arith.index_cast %c3_i32 : i32 to index
    %c0_87 = arith.constant 0 : index
    %c384_88 = arith.constant 384 : index
    %170 = vector.load %arg2[%169, %c0_87, %c384_88] : memref<8x8x512xf32, #tpu.memory_space<vmem>>, vector<1x8x128xf32>
    %171 = vector.shape_cast %170 : vector<1x8x128xf32> to vector<8x128xf32>
    %c0_89 = arith.constant 0 : index
    %c384_90 = arith.constant 384 : index
    %172 = vector.load %arg3[%c0_89, %c384_90] : memref<128x512xf32, #tpu.memory_space<vmem>>, vector<128x128xf32>
    %cst_91 = arith.constant dense<0.000000e+00> : vector<8x128xf32>
    %173 = tpu.matmul %139, %172, %cst_91 {dimension_numbers = #tpu.dot_dimension_numbers<[1], [0], [0], [1], [0, 0, 1, 1], [], []>} : vector<8x128xf32>, vector<128x128xf32>, vector<8x128xf32> -> vector<8x128xf32>
    %174 = arith.addf %171, %173 : vector<8x128xf32>
    %175 = arith.negf %174 : vector<8x128xf32>
    %176 = math.exp %175 : vector<8x128xf32>
    %cst_92 = arith.constant 1.000000e+00 : f32
    %177 = vector.broadcast %cst_92 : f32 to vector<8x128xf32>
    %178 = arith.addf %177, %176 : vector<8x128xf32>
    %179 = arith.divf %177, %178 : vector<8x128xf32>
    %180 = arith.mulf %161, %137 : vector<8x128xf32>
    %181 = arith.mulf %150, %168 : vector<8x128xf32>
    %182 = arith.addf %180, %181 : vector<8x128xf32>
    %183 = math.tanh %182 : vector<8x128xf32>
    %184 = arith.mulf %179, %183 : vector<8x128xf32>
    %c4_i32 = arith.constant 4 : i32
    %185 = arith.index_cast %c4_i32 : i32 to index
    %c0_93 = arith.constant 0 : index
    %c0_94 = arith.constant 0 : index
    %186 = vector.load %arg2[%185, %c0_93, %c0_94] : memref<8x8x512xf32, #tpu.memory_space<vmem>>, vector<1x8x128xf32>
    %187 = vector.shape_cast %186 : vector<1x8x128xf32> to vector<8x128xf32>
    %c0_95 = arith.constant 0 : index
    %c0_96 = arith.constant 0 : index
    %188 = vector.load %arg3[%c0_95, %c0_96] : memref<128x512xf32, #tpu.memory_space<vmem>>, vector<128x128xf32>
    %cst_97 = arith.constant dense<0.000000e+00> : vector<8x128xf32>
    %189 = tpu.matmul %184, %188, %cst_97 {dimension_numbers = #tpu.dot_dimension_numbers<[1], [0], [0], [1], [0, 0, 1, 1], [], []>} : vector<8x128xf32>, vector<128x128xf32>, vector<8x128xf32> -> vector<8x128xf32>
    %190 = arith.addf %187, %189 : vector<8x128xf32>
    %191 = arith.negf %190 : vector<8x128xf32>
    %192 = math.exp %191 : vector<8x128xf32>
    %cst_98 = arith.constant 1.000000e+00 : f32
    %193 = vector.broadcast %cst_98 : f32 to vector<8x128xf32>
    %194 = arith.addf %193, %192 : vector<8x128xf32>
    %195 = arith.divf %193, %194 : vector<8x128xf32>
    %196 = arith.index_cast %c4_i32 : i32 to index
    %c0_99 = arith.constant 0 : index
    %c128_100 = arith.constant 128 : index
    %197 = vector.load %arg2[%196, %c0_99, %c128_100] : memref<8x8x512xf32, #tpu.memory_space<vmem>>, vector<1x8x128xf32>
    %198 = vector.shape_cast %197 : vector<1x8x128xf32> to vector<8x128xf32>
    %c0_101 = arith.constant 0 : index
    %c128_102 = arith.constant 128 : index
    %199 = vector.load %arg3[%c0_101, %c128_102] : memref<128x512xf32, #tpu.memory_space<vmem>>, vector<128x128xf32>
    %cst_103 = arith.constant dense<0.000000e+00> : vector<8x128xf32>
    %200 = tpu.matmul %184, %199, %cst_103 {dimension_numbers = #tpu.dot_dimension_numbers<[1], [0], [0], [1], [0, 0, 1, 1], [], []>} : vector<8x128xf32>, vector<128x128xf32>, vector<8x128xf32> -> vector<8x128xf32>
    %201 = arith.addf %198, %200 : vector<8x128xf32>
    %202 = arith.negf %201 : vector<8x128xf32>
    %203 = math.exp %202 : vector<8x128xf32>
    %cst_104 = arith.constant 1.000000e+00 : f32
    %204 = vector.broadcast %cst_104 : f32 to vector<8x128xf32>
    %205 = arith.addf %204, %203 : vector<8x128xf32>
    %206 = arith.divf %204, %205 : vector<8x128xf32>
    %207 = arith.index_cast %c4_i32 : i32 to index
    %c0_105 = arith.constant 0 : index
    %c256_106 = arith.constant 256 : index
    %208 = vector.load %arg2[%207, %c0_105, %c256_106] : memref<8x8x512xf32, #tpu.memory_space<vmem>>, vector<1x8x128xf32>
    %209 = vector.shape_cast %208 : vector<1x8x128xf32> to vector<8x128xf32>
    %c0_107 = arith.constant 0 : index
    %c256_108 = arith.constant 256 : index
    %210 = vector.load %arg3[%c0_107, %c256_108] : memref<128x512xf32, #tpu.memory_space<vmem>>, vector<128x128xf32>
    %cst_109 = arith.constant dense<0.000000e+00> : vector<8x128xf32>
    %211 = tpu.matmul %184, %210, %cst_109 {dimension_numbers = #tpu.dot_dimension_numbers<[1], [0], [0], [1], [0, 0, 1, 1], [], []>} : vector<8x128xf32>, vector<128x128xf32>, vector<8x128xf32> -> vector<8x128xf32>
    %212 = arith.addf %209, %211 : vector<8x128xf32>
    %213 = math.tanh %212 : vector<8x128xf32>
    %214 = arith.index_cast %c4_i32 : i32 to index
    %c0_110 = arith.constant 0 : index
    %c384_111 = arith.constant 384 : index
    %215 = vector.load %arg2[%214, %c0_110, %c384_111] : memref<8x8x512xf32, #tpu.memory_space<vmem>>, vector<1x8x128xf32>
    %216 = vector.shape_cast %215 : vector<1x8x128xf32> to vector<8x128xf32>
    %c0_112 = arith.constant 0 : index
    %c384_113 = arith.constant 384 : index
    %217 = vector.load %arg3[%c0_112, %c384_113] : memref<128x512xf32, #tpu.memory_space<vmem>>, vector<128x128xf32>
    %cst_114 = arith.constant dense<0.000000e+00> : vector<8x128xf32>
    %218 = tpu.matmul %184, %217, %cst_114 {dimension_numbers = #tpu.dot_dimension_numbers<[1], [0], [0], [1], [0, 0, 1, 1], [], []>} : vector<8x128xf32>, vector<128x128xf32>, vector<8x128xf32> -> vector<8x128xf32>
    %219 = arith.addf %216, %218 : vector<8x128xf32>
    %220 = arith.negf %219 : vector<8x128xf32>
    %221 = math.exp %220 : vector<8x128xf32>
    %cst_115 = arith.constant 1.000000e+00 : f32
    %222 = vector.broadcast %cst_115 : f32 to vector<8x128xf32>
    %223 = arith.addf %222, %221 : vector<8x128xf32>
    %224 = arith.divf %222, %223 : vector<8x128xf32>
    %225 = arith.mulf %206, %182 : vector<8x128xf32>
    %226 = arith.mulf %195, %213 : vector<8x128xf32>
    %227 = arith.addf %225, %226 : vector<8x128xf32>
    %228 = math.tanh %227 : vector<8x128xf32>
    %229 = arith.mulf %224, %228 : vector<8x128xf32>
    %c5_i32 = arith.constant 5 : i32
    %230 = arith.index_cast %c5_i32 : i32 to index
    %c0_116 = arith.constant 0 : index
    %c0_117 = arith.constant 0 : index
    %231 = vector.load %arg2[%230, %c0_116, %c0_117] : memref<8x8x512xf32, #tpu.memory_space<vmem>>, vector<1x8x128xf32>
    %232 = vector.shape_cast %231 : vector<1x8x128xf32> to vector<8x128xf32>
    %c0_118 = arith.constant 0 : index
    %c0_119 = arith.constant 0 : index
    %233 = vector.load %arg3[%c0_118, %c0_119] : memref<128x512xf32, #tpu.memory_space<vmem>>, vector<128x128xf32>
    %cst_120 = arith.constant dense<0.000000e+00> : vector<8x128xf32>
    %234 = tpu.matmul %229, %233, %cst_120 {dimension_numbers = #tpu.dot_dimension_numbers<[1], [0], [0], [1], [0, 0, 1, 1], [], []>} : vector<8x128xf32>, vector<128x128xf32>, vector<8x128xf32> -> vector<8x128xf32>
    %235 = arith.addf %232, %234 : vector<8x128xf32>
    %236 = arith.negf %235 : vector<8x128xf32>
    %237 = math.exp %236 : vector<8x128xf32>
    %cst_121 = arith.constant 1.000000e+00 : f32
    %238 = vector.broadcast %cst_121 : f32 to vector<8x128xf32>
    %239 = arith.addf %238, %237 : vector<8x128xf32>
    %240 = arith.divf %238, %239 : vector<8x128xf32>
    %241 = arith.index_cast %c5_i32 : i32 to index
    %c0_122 = arith.constant 0 : index
    %c128_123 = arith.constant 128 : index
    %242 = vector.load %arg2[%241, %c0_122, %c128_123] : memref<8x8x512xf32, #tpu.memory_space<vmem>>, vector<1x8x128xf32>
    %243 = vector.shape_cast %242 : vector<1x8x128xf32> to vector<8x128xf32>
    %c0_124 = arith.constant 0 : index
    %c128_125 = arith.constant 128 : index
    %244 = vector.load %arg3[%c0_124, %c128_125] : memref<128x512xf32, #tpu.memory_space<vmem>>, vector<128x128xf32>
    %cst_126 = arith.constant dense<0.000000e+00> : vector<8x128xf32>
    %245 = tpu.matmul %229, %244, %cst_126 {dimension_numbers = #tpu.dot_dimension_numbers<[1], [0], [0], [1], [0, 0, 1, 1], [], []>} : vector<8x128xf32>, vector<128x128xf32>, vector<8x128xf32> -> vector<8x128xf32>
    %246 = arith.addf %243, %245 : vector<8x128xf32>
    %247 = arith.negf %246 : vector<8x128xf32>
    %248 = math.exp %247 : vector<8x128xf32>
    %cst_127 = arith.constant 1.000000e+00 : f32
    %249 = vector.broadcast %cst_127 : f32 to vector<8x128xf32>
    %250 = arith.addf %249, %248 : vector<8x128xf32>
    %251 = arith.divf %249, %250 : vector<8x128xf32>
    %252 = arith.index_cast %c5_i32 : i32 to index
    %c0_128 = arith.constant 0 : index
    %c256_129 = arith.constant 256 : index
    %253 = vector.load %arg2[%252, %c0_128, %c256_129] : memref<8x8x512xf32, #tpu.memory_space<vmem>>, vector<1x8x128xf32>
    %254 = vector.shape_cast %253 : vector<1x8x128xf32> to vector<8x128xf32>
    %c0_130 = arith.constant 0 : index
    %c256_131 = arith.constant 256 : index
    %255 = vector.load %arg3[%c0_130, %c256_131] : memref<128x512xf32, #tpu.memory_space<vmem>>, vector<128x128xf32>
    %cst_132 = arith.constant dense<0.000000e+00> : vector<8x128xf32>
    %256 = tpu.matmul %229, %255, %cst_132 {dimension_numbers = #tpu.dot_dimension_numbers<[1], [0], [0], [1], [0, 0, 1, 1], [], []>} : vector<8x128xf32>, vector<128x128xf32>, vector<8x128xf32> -> vector<8x128xf32>
    %257 = arith.addf %254, %256 : vector<8x128xf32>
    %258 = math.tanh %257 : vector<8x128xf32>
    %259 = arith.index_cast %c5_i32 : i32 to index
    %c0_133 = arith.constant 0 : index
    %c384_134 = arith.constant 384 : index
    %260 = vector.load %arg2[%259, %c0_133, %c384_134] : memref<8x8x512xf32, #tpu.memory_space<vmem>>, vector<1x8x128xf32>
    %261 = vector.shape_cast %260 : vector<1x8x128xf32> to vector<8x128xf32>
    %c0_135 = arith.constant 0 : index
    %c384_136 = arith.constant 384 : index
    %262 = vector.load %arg3[%c0_135, %c384_136] : memref<128x512xf32, #tpu.memory_space<vmem>>, vector<128x128xf32>
    %cst_137 = arith.constant dense<0.000000e+00> : vector<8x128xf32>
    %263 = tpu.matmul %229, %262, %cst_137 {dimension_numbers = #tpu.dot_dimension_numbers<[1], [0], [0], [1], [0, 0, 1, 1], [], []>} : vector<8x128xf32>, vector<128x128xf32>, vector<8x128xf32> -> vector<8x128xf32>
    %264 = arith.addf %261, %263 : vector<8x128xf32>
    %265 = arith.negf %264 : vector<8x128xf32>
    %266 = math.exp %265 : vector<8x128xf32>
    %cst_138 = arith.constant 1.000000e+00 : f32
    %267 = vector.broadcast %cst_138 : f32 to vector<8x128xf32>
    %268 = arith.addf %267, %266 : vector<8x128xf32>
    %269 = arith.divf %267, %268 : vector<8x128xf32>
    %270 = arith.mulf %251, %227 : vector<8x128xf32>
    %271 = arith.mulf %240, %258 : vector<8x128xf32>
    %272 = arith.addf %270, %271 : vector<8x128xf32>
    %273 = math.tanh %272 : vector<8x128xf32>
    %274 = arith.mulf %269, %273 : vector<8x128xf32>
    %c6_i32 = arith.constant 6 : i32
    %275 = arith.index_cast %c6_i32 : i32 to index
    %c0_139 = arith.constant 0 : index
    %c0_140 = arith.constant 0 : index
    %276 = vector.load %arg2[%275, %c0_139, %c0_140] : memref<8x8x512xf32, #tpu.memory_space<vmem>>, vector<1x8x128xf32>
    %277 = vector.shape_cast %276 : vector<1x8x128xf32> to vector<8x128xf32>
    %c0_141 = arith.constant 0 : index
    %c0_142 = arith.constant 0 : index
    %278 = vector.load %arg3[%c0_141, %c0_142] : memref<128x512xf32, #tpu.memory_space<vmem>>, vector<128x128xf32>
    %cst_143 = arith.constant dense<0.000000e+00> : vector<8x128xf32>
    %279 = tpu.matmul %274, %278, %cst_143 {dimension_numbers = #tpu.dot_dimension_numbers<[1], [0], [0], [1], [0, 0, 1, 1], [], []>} : vector<8x128xf32>, vector<128x128xf32>, vector<8x128xf32> -> vector<8x128xf32>
    %280 = arith.addf %277, %279 : vector<8x128xf32>
    %281 = arith.negf %280 : vector<8x128xf32>
    %282 = math.exp %281 : vector<8x128xf32>
    %cst_144 = arith.constant 1.000000e+00 : f32
    %283 = vector.broadcast %cst_144 : f32 to vector<8x128xf32>
    %284 = arith.addf %283, %282 : vector<8x128xf32>
    %285 = arith.divf %283, %284 : vector<8x128xf32>
    %286 = arith.index_cast %c6_i32 : i32 to index
    %c0_145 = arith.constant 0 : index
    %c128_146 = arith.constant 128 : index
    %287 = vector.load %arg2[%286, %c0_145, %c128_146] : memref<8x8x512xf32, #tpu.memory_space<vmem>>, vector<1x8x128xf32>
    %288 = vector.shape_cast %287 : vector<1x8x128xf32> to vector<8x128xf32>
    %c0_147 = arith.constant 0 : index
    %c128_148 = arith.constant 128 : index
    %289 = vector.load %arg3[%c0_147, %c128_148] : memref<128x512xf32, #tpu.memory_space<vmem>>, vector<128x128xf32>
    %cst_149 = arith.constant dense<0.000000e+00> : vector<8x128xf32>
    %290 = tpu.matmul %274, %289, %cst_149 {dimension_numbers = #tpu.dot_dimension_numbers<[1], [0], [0], [1], [0, 0, 1, 1], [], []>} : vector<8x128xf32>, vector<128x128xf32>, vector<8x128xf32> -> vector<8x128xf32>
    %291 = arith.addf %288, %290 : vector<8x128xf32>
    %292 = arith.negf %291 : vector<8x128xf32>
    %293 = math.exp %292 : vector<8x128xf32>
    %cst_150 = arith.constant 1.000000e+00 : f32
    %294 = vector.broadcast %cst_150 : f32 to vector<8x128xf32>
    %295 = arith.addf %294, %293 : vector<8x128xf32>
    %296 = arith.divf %294, %295 : vector<8x128xf32>
    %297 = arith.index_cast %c6_i32 : i32 to index
    %c0_151 = arith.constant 0 : index
    %c256_152 = arith.constant 256 : index
    %298 = vector.load %arg2[%297, %c0_151, %c256_152] : memref<8x8x512xf32, #tpu.memory_space<vmem>>, vector<1x8x128xf32>
    %299 = vector.shape_cast %298 : vector<1x8x128xf32> to vector<8x128xf32>
    %c0_153 = arith.constant 0 : index
    %c256_154 = arith.constant 256 : index
    %300 = vector.load %arg3[%c0_153, %c256_154] : memref<128x512xf32, #tpu.memory_space<vmem>>, vector<128x128xf32>
    %cst_155 = arith.constant dense<0.000000e+00> : vector<8x128xf32>
    %301 = tpu.matmul %274, %300, %cst_155 {dimension_numbers = #tpu.dot_dimension_numbers<[1], [0], [0], [1], [0, 0, 1, 1], [], []>} : vector<8x128xf32>, vector<128x128xf32>, vector<8x128xf32> -> vector<8x128xf32>
    %302 = arith.addf %299, %301 : vector<8x128xf32>
    %303 = math.tanh %302 : vector<8x128xf32>
    %304 = arith.index_cast %c6_i32 : i32 to index
    %c0_156 = arith.constant 0 : index
    %c384_157 = arith.constant 384 : index
    %305 = vector.load %arg2[%304, %c0_156, %c384_157] : memref<8x8x512xf32, #tpu.memory_space<vmem>>, vector<1x8x128xf32>
    %306 = vector.shape_cast %305 : vector<1x8x128xf32> to vector<8x128xf32>
    %c0_158 = arith.constant 0 : index
    %c384_159 = arith.constant 384 : index
    %307 = vector.load %arg3[%c0_158, %c384_159] : memref<128x512xf32, #tpu.memory_space<vmem>>, vector<128x128xf32>
    %cst_160 = arith.constant dense<0.000000e+00> : vector<8x128xf32>
    %308 = tpu.matmul %274, %307, %cst_160 {dimension_numbers = #tpu.dot_dimension_numbers<[1], [0], [0], [1], [0, 0, 1, 1], [], []>} : vector<8x128xf32>, vector<128x128xf32>, vector<8x128xf32> -> vector<8x128xf32>
    %309 = arith.addf %306, %308 : vector<8x128xf32>
    %310 = arith.negf %309 : vector<8x128xf32>
    %311 = math.exp %310 : vector<8x128xf32>
    %cst_161 = arith.constant 1.000000e+00 : f32
    %312 = vector.broadcast %cst_161 : f32 to vector<8x128xf32>
    %313 = arith.addf %312, %311 : vector<8x128xf32>
    %314 = arith.divf %312, %313 : vector<8x128xf32>
    %315 = arith.mulf %296, %272 : vector<8x128xf32>
    %316 = arith.mulf %285, %303 : vector<8x128xf32>
    %317 = arith.addf %315, %316 : vector<8x128xf32>
    %318 = math.tanh %317 : vector<8x128xf32>
    %319 = arith.mulf %314, %318 : vector<8x128xf32>
    %c7_i32 = arith.constant 7 : i32
    %320 = arith.index_cast %c7_i32 : i32 to index
    %c0_162 = arith.constant 0 : index
    %c0_163 = arith.constant 0 : index
    %321 = vector.load %arg2[%320, %c0_162, %c0_163] : memref<8x8x512xf32, #tpu.memory_space<vmem>>, vector<1x8x128xf32>
    %322 = vector.shape_cast %321 : vector<1x8x128xf32> to vector<8x128xf32>
    %c0_164 = arith.constant 0 : index
    %c0_165 = arith.constant 0 : index
    %323 = vector.load %arg3[%c0_164, %c0_165] : memref<128x512xf32, #tpu.memory_space<vmem>>, vector<128x128xf32>
    %cst_166 = arith.constant dense<0.000000e+00> : vector<8x128xf32>
    %324 = tpu.matmul %319, %323, %cst_166 {dimension_numbers = #tpu.dot_dimension_numbers<[1], [0], [0], [1], [0, 0, 1, 1], [], []>} : vector<8x128xf32>, vector<128x128xf32>, vector<8x128xf32> -> vector<8x128xf32>
    %325 = arith.addf %322, %324 : vector<8x128xf32>
    %326 = arith.negf %325 : vector<8x128xf32>
    %327 = math.exp %326 : vector<8x128xf32>
    %cst_167 = arith.constant 1.000000e+00 : f32
    %328 = vector.broadcast %cst_167 : f32 to vector<8x128xf32>
    %329 = arith.addf %328, %327 : vector<8x128xf32>
    %330 = arith.divf %328, %329 : vector<8x128xf32>
    %331 = arith.index_cast %c7_i32 : i32 to index
    %c0_168 = arith.constant 0 : index
    %c128_169 = arith.constant 128 : index
    %332 = vector.load %arg2[%331, %c0_168, %c128_169] : memref<8x8x512xf32, #tpu.memory_space<vmem>>, vector<1x8x128xf32>
    %333 = vector.shape_cast %332 : vector<1x8x128xf32> to vector<8x128xf32>
    %c0_170 = arith.constant 0 : index
    %c128_171 = arith.constant 128 : index
    %334 = vector.load %arg3[%c0_170, %c128_171] : memref<128x512xf32, #tpu.memory_space<vmem>>, vector<128x128xf32>
    %cst_172 = arith.constant dense<0.000000e+00> : vector<8x128xf32>
    %335 = tpu.matmul %319, %334, %cst_172 {dimension_numbers = #tpu.dot_dimension_numbers<[1], [0], [0], [1], [0, 0, 1, 1], [], []>} : vector<8x128xf32>, vector<128x128xf32>, vector<8x128xf32> -> vector<8x128xf32>
    %336 = arith.addf %333, %335 : vector<8x128xf32>
    %337 = arith.negf %336 : vector<8x128xf32>
    %338 = math.exp %337 : vector<8x128xf32>
    %cst_173 = arith.constant 1.000000e+00 : f32
    %339 = vector.broadcast %cst_173 : f32 to vector<8x128xf32>
    %340 = arith.addf %339, %338 : vector<8x128xf32>
    %341 = arith.divf %339, %340 : vector<8x128xf32>
    %342 = arith.index_cast %c7_i32 : i32 to index
    %c0_174 = arith.constant 0 : index
    %c256_175 = arith.constant 256 : index
    %343 = vector.load %arg2[%342, %c0_174, %c256_175] : memref<8x8x512xf32, #tpu.memory_space<vmem>>, vector<1x8x128xf32>
    %344 = vector.shape_cast %343 : vector<1x8x128xf32> to vector<8x128xf32>
    %c0_176 = arith.constant 0 : index
    %c256_177 = arith.constant 256 : index
    %345 = vector.load %arg3[%c0_176, %c256_177] : memref<128x512xf32, #tpu.memory_space<vmem>>, vector<128x128xf32>
    %cst_178 = arith.constant dense<0.000000e+00> : vector<8x128xf32>
    %346 = tpu.matmul %319, %345, %cst_178 {dimension_numbers = #tpu.dot_dimension_numbers<[1], [0], [0], [1], [0, 0, 1, 1], [], []>} : vector<8x128xf32>, vector<128x128xf32>, vector<8x128xf32> -> vector<8x128xf32>
    %347 = arith.addf %344, %346 : vector<8x128xf32>
    %348 = math.tanh %347 : vector<8x128xf32>
    %349 = arith.index_cast %c7_i32 : i32 to index
    %c0_179 = arith.constant 0 : index
    %c384_180 = arith.constant 384 : index
    %350 = vector.load %arg2[%349, %c0_179, %c384_180] : memref<8x8x512xf32, #tpu.memory_space<vmem>>, vector<1x8x128xf32>
    %351 = vector.shape_cast %350 : vector<1x8x128xf32> to vector<8x128xf32>
    %c0_181 = arith.constant 0 : index
    %c384_182 = arith.constant 384 : index
    %352 = vector.load %arg3[%c0_181, %c384_182] : memref<128x512xf32, #tpu.memory_space<vmem>>, vector<128x128xf32>
    %cst_183 = arith.constant dense<0.000000e+00> : vector<8x128xf32>
    %353 = tpu.matmul %319, %352, %cst_183 {dimension_numbers = #tpu.dot_dimension_numbers<[1], [0], [0], [1], [0, 0, 1, 1], [], []>} : vector<8x128xf32>, vector<128x128xf32>, vector<8x128xf32> -> vector<8x128xf32>
    %354 = arith.addf %351, %353 : vector<8x128xf32>
    %355 = arith.negf %354 : vector<8x128xf32>
    %356 = math.exp %355 : vector<8x128xf32>
    %cst_184 = arith.constant 1.000000e+00 : f32
    %357 = vector.broadcast %cst_184 : f32 to vector<8x128xf32>
    %358 = arith.addf %357, %356 : vector<8x128xf32>
    %359 = arith.divf %357, %358 : vector<8x128xf32>
    %360 = arith.mulf %341, %317 : vector<8x128xf32>
    %361 = arith.mulf %330, %348 : vector<8x128xf32>
    %362 = arith.addf %360, %361 : vector<8x128xf32>
    %363 = math.tanh %362 : vector<8x128xf32>
    %364 = arith.mulf %359, %363 : vector<8x128xf32>
    %c8_i32 = arith.constant 8 : i32
    %c0_185 = arith.constant 0 : index
    %c0_186 = arith.constant 0 : index
    %365 = vector.load %arg5[%c0_185, %c0_186] : memref<8x128xf32, #tpu.memory_space<vmem>>, vector<8x128xf32>
    tpu.vector_store %arg5[%c0_185, %c0_186], %364 {strides = array<i32>} : memref<8x128xf32, #tpu.memory_space<vmem>>, vector<8x128xf32>,
    %c0_187 = arith.constant 0 : index
    %c0_188 = arith.constant 0 : index
    %366 = vector.load %arg6[%c0_187, %c0_188] : memref<8x128xf32, #tpu.memory_space<vmem>>, vector<8x128xf32>
    tpu.vector_store %arg6[%c0_187, %c0_188], %362 {strides = array<i32>} : memref<8x128xf32, #tpu.memory_space<vmem>>, vector<8x128xf32>,
    %c0_i32_189 = arith.constant 0 : i32
    %367 = arith.cmpi eq, %arg1, %c0_i32_189 : i32
    %368 = arith.extui %367 : i1 to i32
    %c0_i32_190 = arith.constant 0 : i32
    %369 = arith.cmpi ne, %368, %c0_i32_190 : i32
    scf.if %369 {
      %c0_191 = arith.constant 0 : index
      %c0_192 = arith.constant 0 : index
      %370 = vector.load %arg4[%c0_191, %c0_192] : memref<8x128xf32, #tpu.memory_space<vmem>>, vector<8x128xf32>
      tpu.vector_store %arg4[%c0_191, %c0_192], %364 {strides = array<i32>} : memref<8x128xf32, #tpu.memory_space<vmem>>, vector<8x128xf32>,
    } else {
    }
    return
  }
  func.func @transform_0(%arg0: i32, %arg1: i32) -> (i32, i32, i32) {
    %c0_i32 = arith.constant 0 : i32
    %c0_i32_0 = arith.constant 0 : i32
    return %arg1, %arg0, %c0_i32 : i32, i32, i32
  }
  func.func @transform_1(%arg0: i32, %arg1: i32) -> (i32, i32) {
    %c0_i32 = arith.constant 0 : i32
    %c0_i32_0 = arith.constant 0 : i32
    %c0_i32_1 = arith.constant 0 : i32
    return %c0_i32, %c0_i32_0 : i32, i32
  }
  func.func @transform_2(%arg0: i32, %arg1: i32) -> (i32, i32) {
    %c0_i32 = arith.constant 0 : i32
    %c0_i32_0 = arith.constant 0 : i32
    return %arg0, %c0_i32 : i32, i32
  }
}

</mosaic_0001>

<bundles_post_ra>
// kernel: tpu_custom_call.1
= control target key start
LH: loop header
LB: loop body
LE: loop exit
PB: predicated region body
PF: predicated region fallthrough
CT: control target
= control target key end

     0   :  { %7 = vsyncpa [#allocation5], 0  ;;  %s2481_s0 = inlined_call_operand.hbm [shape: f32[8,8,512], index: 0, kind: input, shape index: {}]   ;;  %s2482_s1 = inlined_call_operand.hbm [shape: f32[128,512], index: 1, kind: input, shape index: {}]   ;;  %s2483_s2 = inlined_call_operand.hbm [shape: f32[8,128], index: 2, kind: output, shape index: {}]  }
   0x1   :  { %8 = vsyncpa [#allocation8], 0 }
   0x2   :  { %9 = vsyncpa [#allocation6], 0  ;;  %s14_s11 = sshll.u32 %s2481_s0, 4  ;;  %s1655_s12 = smov [#allocation4]   ;;  %s15_s11 = int_to_ptr.hbm [resolvable:$true] %s14_s11 }
   0x3   :  { %s16_s13 = sshll.u32 %s1655_s12, 4  ;;  %s27_s16 = sshll.u32 %s2482_s1, 4  ;;  %s17_s13 = int_to_ptr.vmem [resolvable:$true] %s16_s13  ;;  %s28_s16 = int_to_ptr.hbm [resolvable:$true] %s27_s16 }
   0x4   :  { %s1656_s17 = smov 512   ;;  %s1657_s18 = smov 32  }
   0x5   :  { %22 = dma.hbm_to_vmem [thread:$0]  %s15_s11, 4096, %s17_s13, [#allocation5], %s1656_s17, %s1656_s17, %s1657_s18  }
   0x6   :  { %s1658_s19 = smov [#allocation7]  }
   0x7   :  { %s29_s20 = sshll.u32 %s1658_s19, 4  ;;  %s30_s20 = int_to_ptr.vmem [resolvable:$true] %s29_s20 }
   0x8   :  { %35 = dma.hbm_to_vmem [thread:$0]  %s28_s16, 8192, %s30_s20, [#allocation8], %s1656_s17, %s1656_s17, %s1657_s18  }
   0x9   :  { %1649 = dma.done.wait [#allocation5], 4096  }
   0xa   :  { %1650 = vsyncadd [#allocation5], 4294963200 }
   0xb   :  { %1651 = dma.done.wait [#allocation8], 8192  }
   0xc   :  { %1652 = vsyncadd [#allocation8], 4294959104  ;;  %v1682_v0 = vld [vmem:[#allocation7 + $0x1e0] sm:$0xff]  ;;  %v1684_v1 = vld [vmem:[#allocation7 + $0x1e8] sm:$0xff]  ;;  %v1659_v60 = vmov 0.0   ;;  %s1660_s0 = smov [#allocation9]  }
   0xd   :  { %2590 = vst [vmem:[#allocation13_spill] sm:$0xff] %v1682_v0  ;;  %v1686_v2 = vld [vmem:[#allocation7 + $0x1f8] sm:$0xff]  ;;  %69 = vmatpush.msra.mxu0 %v1682_v0  ;;  %126 = vmatpush.msra.mxu1 %v1684_v1  ;;  %v1690_v3 = vld [vmem:[#allocation7 + $0x1c0] sm:$0xff]  ;;  %v1692_v4 = vld [vmem:[#allocation7 + $0x1c8] sm:$0xff]  ;;  %s1342_s1 = sshll.u32 %s1660_s0, 4  ;;  %s1344_s23 = sshll.u32 %s2483_s2, 4  ;;  %s1343_s1 = int_to_ptr.vmem [resolvable:$true] %s1342_s1  ;;  %s1345_s23 = int_to_ptr.hbm [resolvable:$true] %s1344_s23 }
   0xe   :  { %v1694_v5 = vld [vmem:[#allocation7 + $0x1d8] sm:$0xff]  ;;  %222 = vmatpush.msra.mxu3 %v1686_v2  ;;  %v1697_v6 = vld [vmem:[#allocation7 + $0x1a0] sm:$0xff]  ;;  %v1699_v7 = vld [vmem:[#allocation7 + $0x1a8] sm:$0xff] }
   0xf   :  { %70 = vmatpush.msra.mxu0 %v1690_v3  ;;  %127 = vmatpush.msra.mxu1 %v1692_v4  ;;  %v1703_v8 = vld [vmem:[#allocation7 + $0x1b8] sm:$0xff]  ;;  %v1706_v9 = vld [vmem:[#allocation7 + $0x180] sm:$0xff]  ;;  %v1708_v10 = vld [vmem:[#allocation7 + $0x188] sm:$0xff] }
  0x10   :  { %223 = vmatpush.msra.mxu3 %v1694_v5  ;;  %v1712_v11 = vld [vmem:[#allocation7 + $0x198] sm:$0xff]  ;;  %v1715_v12 = vld [vmem:[#allocation7 + $0x160] sm:$0xff]  ;;  %v1717_v13 = vld [vmem:[#allocation7 + $0x168] sm:$0xff] }
  0x11   :  { %71 = vmatpush.msra.mxu0 %v1697_v6  ;;  %128 = vmatpush.msra.mxu1 %v1699_v7  ;;  %v1721_v14 = vld [vmem:[#allocation7 + $0x178] sm:$0xff]  ;;  %v1724_v15 = vld [vmem:[#allocation7 + $0x140] sm:$0xff]  ;;  %v1726_v16 = vld [vmem:[#allocation7 + $0x148] sm:$0xff] }
  0x12   :  { %224 = vmatpush.msra.mxu3 %v1703_v8  ;;  %v1728_v17 = vld [vmem:[#allocation7 + $0x1f0] sm:$0xff]  ;;  %v1732_v18 = vld [vmem:[#allocation7 + $0x158] sm:$0xff]  ;;  %v1737_v20 = vld [vmem:[#allocation7 + $0x120] sm:$0xff] }
  0x13   :  { %72 = vmatpush.msra.mxu0 %v1706_v9  ;;  %129 = vmatpush.msra.mxu1 %v1708_v10  ;;  %v1734_v19 = vld [vmem:[#allocation7 + $0x1d0] sm:$0xff]  ;;  %v1739_v21 = vld [vmem:[#allocation7 + $0x128] sm:$0xff]  ;;  %v1744_v22 = vld [vmem:[#allocation7 + $0x138] sm:$0xff] }
  0x14   :  { %225 = vmatpush.msra.mxu3 %v1712_v11  ;;  %183 = vmatpush.msra.mxu2 %v1728_v17  ;;  %v1746_v23 = vld [vmem:[#allocation7 + $0x1b0] sm:$0xff]  ;;  %v1749_v24 = vld [vmem:[#allocation7 + $0x100] sm:$0xff]  ;;  %v1751_v25 = vld [vmem:[#allocation7 + $0x108] sm:$0xff] }
  0x15   :  { %73 = vmatpush.msra.mxu0 %v1715_v12  ;;  %130 = vmatpush.msra.mxu1 %v1717_v13  ;;  %v1756_v26 = vld [vmem:[#allocation7 + $0x118] sm:$0xff]  ;;  %v1758_v27 = vld [vmem:[#allocation7 + $0x190] sm:$0xff]  ;;  %v1761_v28 = vld [vmem:[#allocation7 + $0xe0] sm:$0xff] }
  0x16   :  { %226 = vmatpush.msra.mxu3 %v1721_v14  ;;  %184 = vmatpush.msra.mxu2 %v1734_v19  ;;  %v1763_v29 = vld [vmem:[#allocation7 + $0xe8] sm:$0xff]  ;;  %v1768_v30 = vld [vmem:[#allocation7 + $0xf8] sm:$0xff]  ;;  %v1770_v31 = vld [vmem:[#allocation7 + $0x170] sm:$0xff] }
  0x17   :  { %74 = vmatpush.msra.mxu0 %v1724_v15  ;;  %131 = vmatpush.msra.mxu1 %v1726_v16  ;;  %v1773_v32 = vld [vmem:[#allocation7 + $0xc0] sm:$0xff]  ;;  %v1775_v33 = vld [vmem:[#allocation7 + $0xc8] sm:$0xff]  ;;  %v1780_v34 = vld [vmem:[#allocation7 + $0xd8] sm:$0xff] }
  0x18   :  { %227 = vmatpush.msra.mxu3 %v1732_v18  ;;  %185 = vmatpush.msra.mxu2 %v1746_v23  ;;  %2591 = vst [vmem:[#allocation14_spill] sm:$0xff] %v1780_v34  ;;  %v1782_v35 = vld [vmem:[#allocation7 + $0x150] sm:$0xff]  ;;  %v1785_v36 = vld [vmem:[#allocation7 + $0xa0] sm:$0xff]  ;;  %v1787_v37 = vld [vmem:[#allocation7 + $0xa8] sm:$0xff] }
  0x19   :  { %75 = vmatpush.msra.mxu0 %v1737_v20  ;;  %132 = vmatpush.msra.mxu1 %v1739_v21  ;;  %2592 = vst [vmem:[#allocation15_spill] sm:$0xff] %v1785_v36  ;;  %v1792_v38 = vld [vmem:[#allocation7 + $0xb8] sm:$0xff]  ;;  %v1794_v39 = vld [vmem:[#allocation7 + $0x130] sm:$0xff]  ;;  %v1797_v40 = vld [vmem:[#allocation7 + $0x80] sm:$0xff] }
  0x1a   :  { %228 = vmatpush.msra.mxu3 %v1744_v22  ;;  %186 = vmatpush.msra.mxu2 %v1758_v27  ;;  %2593 = vst [vmem:[#allocation16_spill] sm:$0xff] %v1787_v37  ;;  %v1799_v41 = vld [vmem:[#allocation7 + $0x88] sm:$0xff]  ;;  %v1804_v42 = vld [vmem:[#allocation7 + $0x98] sm:$0xff]  ;;  %v1806_v43 = vld [vmem:[#allocation7 + $0x110] sm:$0xff] }
  0x1b   :  { %76 = vmatpush.msra.mxu0 %v1749_v24  ;;  %133 = vmatpush.msra.mxu1 %v1751_v25  ;;  %2594 = vst [vmem:[#allocation17_spill] sm:$0xff] %v1792_v38  ;;  %v1809_v44 = vld [vmem:[#allocation7 + $0x60] sm:$0xff]  ;;  %v1811_v45 = vld [vmem:[#allocation7 + $0x68] sm:$0xff]  ;;  %v1816_v46 = vld [vmem:[#allocation7 + $0x78] sm:$0xff] }
  0x1c   :  { %229 = vmatpush.msra.mxu3 %v1756_v26  ;;  %187 = vmatpush.msra.mxu2 %v1770_v31  ;;  %2595 = vst [vmem:[#allocation18_spill] sm:$0xff] %v1797_v40  ;;  %v1818_v47 = vld [vmem:[#allocation7 + $0xf0] sm:$0xff]  ;;  %v1821_v48 = vld [vmem:[#allocation7 + $0x40] sm:$0xff]  ;;  %v1823_v49 = vld [vmem:[#allocation7 + $0x48] sm:$0xff] }
  0x1d   :  { %77 = vmatpush.msra.mxu0 %v1761_v28  ;;  %134 = vmatpush.msra.mxu1 %v1763_v29  ;;  %2596 = vst [vmem:[#allocation19_spill] sm:$0xff] %v1799_v41  ;;  %v1828_v50 = vld [vmem:[#allocation7 + $0x58] sm:$0xff]  ;;  %v1830_v51 = vld [vmem:[#allocation7 + $0xd0] sm:$0xff]  ;;  %v1833_v52 = vld [vmem:[#allocation7 + $0x20] sm:$0xff] }
  0x1e   :  { %230 = vmatpush.msra.mxu3 %v1768_v30  ;;  %188 = vmatpush.msra.mxu2 %v1782_v35  ;;  %2597 = vst [vmem:[#allocation20_spill] sm:$0xff] %v1804_v42  ;;  %v1835_v53 = vld [vmem:[#allocation7 + $0x28] sm:$0xff]  ;;  %v1840_v54 = vld [vmem:[#allocation7 + $0x38] sm:$0xff]  ;;  %v1842_v55 = vld [vmem:[#allocation7 + $0xb0] sm:$0xff] }
  0x1f   :  { %78 = vmatpush.msra.mxu0 %v1773_v32  ;;  %135 = vmatpush.msra.mxu1 %v1775_v33  ;;  %2598 = vst [vmem:[#allocation21_spill] sm:$0xff] %v1809_v44  ;;  %v1845_v56 = vld [vmem:[#allocation7] sm:$0xff]  ;;  %v1847_v57 = vld [vmem:[#allocation7 + $0x8] sm:$0xff]  ;;  %v1852_v58 = vld [vmem:[#allocation7 + $0x18] sm:$0xff] }
  0x20   :  { %231 = vmatpush.msra.mxu3 %v1780_v34  ;;  %2599 = vst [vmem:[#allocation22_spill] sm:$0xff] %v1811_v45  ;;  %189 = vmatpush.msra.mxu2 %v1794_v39  ;;  %v1858_v59 = vld [vmem:[#allocation7 + $0x90] sm:$0xff] }
  0x21   :  { %79 = vmatpush.msra.mxu0 %v1785_v36  ;;  %136 = vmatpush.msra.mxu1 %v1787_v37  ;;  %2600 = vst [vmem:[#allocation23_spill] sm:$0xff] %v1816_v46  ;;  %v1861_v61 = vld [vmem:[#allocation7 + $0x70] sm:$0xff] }
  0x22   :  { %232 = vmatpush.msra.mxu3 %v1792_v38  ;;  %2601 = vst [vmem:[#allocation24_spill] sm:$0xff] %v1821_v48  ;;  %190 = vmatpush.msra.mxu2 %v1806_v43  ;;  %v1865_v62 = vld [vmem:[#allocation7 + $0x50] sm:$0xff] }
  0x23   :  { %80 = vmatpush.msra.mxu0 %v1797_v40  ;;  %137 = vmatpush.msra.mxu1 %v1799_v41  ;;  %2602 = vst [vmem:[#allocation25_spill] sm:$0xff] %v1823_v49  ;;  %v1871_v63 = vld [vmem:[#allocation7 + $0x30] sm:$0xff] }
  0x24   :  { %233 = vmatpush.msra.mxu3 %v1804_v42  ;;  %2603 = vst [vmem:[#allocation26_spill] sm:$0xff] %v1828_v50  ;;  %191 = vmatpush.msra.mxu2 %v1818_v47 }
  0x25   :  { %81 = vmatpush.msra.mxu0 %v1809_v44  ;;  %138 = vmatpush.msra.mxu1 %v1811_v45  ;;  %2604 = vst [vmem:[#allocation27_spill] sm:$0xff] %v1830_v51 }
  0x26   :  { %234 = vmatpush.msra.mxu3 %v1816_v46  ;;  %2605 = vst [vmem:[#allocation28_spill] sm:$0xff] %v1833_v52  ;;  %192 = vmatpush.msra.mxu2 %v1830_v51 }
  0x27   :  { %2606 = vst [vmem:[#allocation29_spill] sm:$0xff] %v1835_v53  ;;  %82 = vmatpush.msra.mxu0 %v1821_v48  ;;  %139 = vmatpush.msra.mxu1 %v1823_v49 }
  0x28   :  { %2607 = vst [vmem:[#allocation30_spill] sm:$0xff] %v1840_v54  ;;  %235 = vmatpush.msra.mxu3 %v1828_v50  ;;  %193 = vmatpush.msra.mxu2 %v1842_v55 }
  0x29   :  { %2608 = vst [vmem:[#allocation31_spill] sm:$0xff] %v1842_v55  ;;  %83 = vmatpush.msra.mxu0 %v1833_v52  ;;  %140 = vmatpush.msra.mxu1 %v1835_v53 }
  0x2a   :  { %2609 = vst [vmem:[#allocation32_spill] sm:$0xff] %v1845_v56  ;;  %236 = vmatpush.msra.mxu3 %v1840_v54  ;;  %194 = vmatpush.msra.mxu2 %v1858_v59 }
  0x2b   :  { %2610 = vst [vmem:[#allocation33_spill] sm:$0xff] %v1847_v57  ;;  %84 = vmatpush.msra.mxu0 %v1845_v56  ;;  %141 = vmatpush.msra.mxu1 %v1847_v57 }
  0x2c   :  { %2611 = vst [vmem:[#allocation34_spill] sm:$0xff] %v1852_v58  ;;  %237 = vmatpush.msra.mxu3 %v1852_v58  ;;  %85 = vmatmul.f32.vlgmr.msra.gmra.mxu0 %v1659_v60 }
  0x2d   :  { %2612 = vst [vmem:[#allocation35_spill] sm:$0xff] %v1858_v59  ;;  %142 = vmatmul.f32.vlgmr.msra.gmra.mxu1 %v1659_v60  ;;  %238 = vmatmul.f32.vlgmr.msra.gmra.mxu3 %v1659_v60 }
  0x2e   :  { %2613 = vst [vmem:[#allocation36_spill] sm:$0xff] %v1861_v61  ;;  %269 = vmatpush.msrb.mxu0 %v1682_v0  ;;  %310 = vmatpush.msrb.mxu1 %v1684_v1  ;;  %v1877_v0 = vld [vmem:[#allocation7 + $0x10] sm:$0xff] }
  0x2f   :  { %2614 = vst [vmem:[#allocation37_spill] sm:$0xff] %v1865_v62  ;;  %374 = vmatpush.msrb.mxu3 %v1686_v2  ;;  %195 = vmatpush.msra.mxu2 %v1861_v61 }
  0x30   :  { %270 = vmatpush.msrb.mxu0 %v1690_v3  ;;  %2615 = vst [vmem:[#allocation38_spill] sm:$0xff] %v1871_v63  ;;  %311 = vmatpush.msrb.mxu1 %v1692_v4 }
  0x31   :  { %375 = vmatpush.msrb.mxu3 %v1694_v5  ;;  %196 = vmatpush.msra.mxu2 %v1865_v62  ;;  %2616 = vst [vmem:[#allocation39_spill] sm:$0xff] %v1877_v0 }
  0x32   :  { %271 = vmatpush.msrb.mxu0 %v1697_v6  ;;  %312 = vmatpush.msrb.mxu1 %v1699_v7 }
  0x33   :  { %376 = vmatpush.msrb.mxu3 %v1703_v8  ;;  %197 = vmatpush.msra.mxu2 %v1871_v63 }
  0x34   :  { %272 = vmatpush.msrb.mxu0 %v1706_v9  ;;  %313 = vmatpush.msrb.mxu1 %v1708_v10 }
  0x35   :  { %377 = vmatpush.msrb.mxu3 %v1712_v11  ;;  %198 = vmatpush.msra.mxu2 %v1877_v0 }
  0x36   :  { %273 = vmatpush.msrb.mxu0 %v1715_v12  ;;  %199 = vmatmul.f32.vlgmr.msra.gmra.mxu2 %v1659_v60  ;;  %v2617_v60 = vld [vmem:[#allocation13_spill] sm:$0xff] }
  0x37   :  { %314 = vmatpush.msrb.mxu1 %v1717_v13  ;;  %351 = vmatpush.msrb.mxu2 %v1728_v17 }
  0x38   :  { %378 = vmatpush.msrb.mxu3 %v1721_v14  ;;  %274 = vmatpush.msrb.mxu0 %v1724_v15 }
  0x39   :  { %315 = vmatpush.msrb.mxu1 %v1726_v16  ;;  %352 = vmatpush.msrb.mxu2 %v1734_v19 }
  0x3a   :  { %379 = vmatpush.msrb.mxu3 %v1732_v18  ;;  %275 = vmatpush.msrb.mxu0 %v1737_v20 }
  0x3b   :  { %316 = vmatpush.msrb.mxu1 %v1739_v21  ;;  %353 = vmatpush.msrb.mxu2 %v1746_v23 }
  0x3c   :  { %380 = vmatpush.msrb.mxu3 %v1744_v22  ;;  %276 = vmatpush.msrb.mxu0 %v1749_v24 }
  0x3d   :  { %317 = vmatpush.msrb.mxu1 %v1751_v25  ;;  %354 = vmatpush.msrb.mxu2 %v1758_v27 }
  0x3e   :  { %381 = vmatpush.msrb.mxu3 %v1756_v26  ;;  %277 = vmatpush.msrb.mxu0 %v1761_v28 }
  0x3f   :  { %318 = vmatpush.msrb.mxu1 %v1763_v29  ;;  %355 = vmatpush.msrb.mxu2 %v1770_v31 }
  0x40   :  { %382 = vmatpush.msrb.mxu3 %v1768_v30  ;;  %278 = vmatpush.msrb.mxu0 %v1773_v32 }
  0x41   :  { %319 = vmatpush.msrb.mxu1 %v1775_v33  ;;  %356 = vmatpush.msrb.mxu2 %v1782_v35 }
  0x42   :  { %383 = vmatpush.msrb.mxu3 %v1780_v34  ;;  %279 = vmatpush.msrb.mxu0 %v1785_v36 }
  0x43   :  { %320 = vmatpush.msrb.mxu1 %v1787_v37  ;;  %357 = vmatpush.msrb.mxu2 %v1794_v39 }
  0x44   :  { %384 = vmatpush.msrb.mxu3 %v1792_v38  ;;  %280 = vmatpush.msrb.mxu0 %v1797_v40 }
  0x45   :  { %321 = vmatpush.msrb.mxu1 %v1799_v41  ;;  %358 = vmatpush.msrb.mxu2 %v1806_v43 }
  0x46   :  { %385 = vmatpush.msrb.mxu3 %v1804_v42  ;;  %281 = vmatpush.msrb.mxu0 %v1809_v44 }
  0x47   :  { %322 = vmatpush.msrb.mxu1 %v1811_v45  ;;  %359 = vmatpush.msrb.mxu2 %v1818_v47 }
  0x48   :  { %386 = vmatpush.msrb.mxu3 %v1816_v46  ;;  %282 = vmatpush.msrb.mxu0 %v1821_v48 }
  0x49   :  { %323 = vmatpush.msrb.mxu1 %v1823_v49  ;;  %360 = vmatpush.msrb.mxu2 %v1830_v51 }
  0x4a   :  { %387 = vmatpush.msrb.mxu3 %v1828_v50  ;;  %283 = vmatpush.msrb.mxu0 %v1833_v52 }
  0x4b   :  { %324 = vmatpush.msrb.mxu1 %v1835_v53  ;;  %361 = vmatpush.msrb.mxu2 %v1842_v55 }
  0x4c   :  { %388 = vmatpush.msrb.mxu3 %v1840_v54  ;;  %284 = vmatpush.msrb.mxu0 %v1845_v56 }
  0x4d   :  { %325 = vmatpush.msrb.mxu1 %v1847_v57  ;;  %362 = vmatpush.msrb.mxu2 %v1858_v59 }
  0x4e   :  { %389 = vmatpush.msrb.mxu3 %v1852_v58  ;;  %421 = vmatpush.msra.mxu0 %v2617_v60 }
  0x4f   :  { %462 = vmatpush.msra.mxu1 %v1684_v1  ;;  %363 = vmatpush.msrb.mxu2 %v1861_v61 }
  0x50   :  { %526 = vmatpush.msra.mxu3 %v1686_v2  ;;  %422 = vmatpush.msra.mxu0 %v1690_v3 }
  0x51   :  { %463 = vmatpush.msra.mxu1 %v1692_v4  ;;  %364 = vmatpush.msrb.mxu2 %v1865_v62 }
  0x52   :  { %527 = vmatpush.msra.mxu3 %v1694_v5  ;;  %423 = vmatpush.msra.mxu0 %v1697_v6 }
  0x53   :  { %464 = vmatpush.msra.mxu1 %v1699_v7  ;;  %365 = vmatpush.msrb.mxu2 %v1871_v63 }
  0x54   :  { %528 = vmatpush.msra.mxu3 %v1703_v8  ;;  %424 = vmatpush.msra.mxu0 %v1706_v9 }
  0x55   :  { %465 = vmatpush.msra.mxu1 %v1708_v10  ;;  %366 = vmatpush.msrb.mxu2 %v1877_v0 }
  0x56   :  { %529 = vmatpush.msra.mxu3 %v1712_v11  ;;  %425 = vmatpush.msra.mxu0 %v1715_v12 }
  0x57   :  { %503 = vmatpush.msra.mxu2 %v1728_v17  ;;  %466 = vmatpush.msra.mxu1 %v1717_v13 }
  0x58   :  { %530 = vmatpush.msra.mxu3 %v1721_v14  ;;  %426 = vmatpush.msra.mxu0 %v1724_v15 }
  0x59   :  { %504 = vmatpush.msra.mxu2 %v1734_v19  ;;  %467 = vmatpush.msra.mxu1 %v1726_v16 }
  0x5a   :  { %531 = vmatpush.msra.mxu3 %v1732_v18  ;;  %427 = vmatpush.msra.mxu0 %v1737_v20 }
  0x5b   :  { %505 = vmatpush.msra.mxu2 %v1746_v23  ;;  %468 = vmatpush.msra.mxu1 %v1739_v21 }
  0x5c   :  { %532 = vmatpush.msra.mxu3 %v1744_v22  ;;  %428 = vmatpush.msra.mxu0 %v1749_v24 }
  0x5d   :  { %506 = vmatpush.msra.mxu2 %v1758_v27  ;;  %469 = vmatpush.msra.mxu1 %v1751_v25 }
  0x5e   :  { %533 = vmatpush.msra.mxu3 %v1756_v26  ;;  %429 = vmatpush.msra.mxu0 %v1761_v28 }
  0x5f   :  { %507 = vmatpush.msra.mxu2 %v1770_v31  ;;  %470 = vmatpush.msra.mxu1 %v1763_v29 }
  0x60   :  { %534 = vmatpush.msra.mxu3 %v1768_v30  ;;  %430 = vmatpush.msra.mxu0 %v1773_v32 }
  0x61   :  { %508 = vmatpush.msra.mxu2 %v1782_v35  ;;  %471 = vmatpush.msra.mxu1 %v1775_v33 }
  0x62   :  { %535 = vmatpush.msra.mxu3 %v1780_v34  ;;  %431 = vmatpush.msra.mxu0 %v1785_v36 }
  0x63   :  { %509 = vmatpush.msra.mxu2 %v1794_v39  ;;  %472 = vmatpush.msra.mxu1 %v1787_v37 }
  0x64   :  { %536 = vmatpush.msra.mxu3 %v1792_v38  ;;  %432 = vmatpush.msra.mxu0 %v1797_v40 }
  0x65   :  { %510 = vmatpush.msra.mxu2 %v1806_v43  ;;  %473 = vmatpush.msra.mxu1 %v1799_v41 }
  0x66   :  { %537 = vmatpush.msra.mxu3 %v1804_v42  ;;  %433 = vmatpush.msra.mxu0 %v1809_v44 }
  0x67   :  { %511 = vmatpush.msra.mxu2 %v1818_v47  ;;  %474 = vmatpush.msra.mxu1 %v1811_v45 }
  0x68   :  { %538 = vmatpush.msra.mxu3 %v1816_v46  ;;  %434 = vmatpush.msra.mxu0 %v1821_v48 }
  0x69   :  { %512 = vmatpush.msra.mxu2 %v1830_v51  ;;  %475 = vmatpush.msra.mxu1 %v1823_v49 }
  0x6a   :  { %539 = vmatpush.msra.mxu3 %v1828_v50  ;;  %435 = vmatpush.msra.mxu0 %v1833_v52  ;;  %v52_v52 = vld [vmem:[#allocation4] sm:$0xff] }
  0x6b   :  { %513 = vmatpush.msra.mxu2 %v1842_v55  ;;  %476 = vmatpush.msra.mxu1 %v1835_v53  ;;  %v109_v53 = vld [vmem:[#allocation4 + $0x8] sm:$0xff] }
  0x6c   :  { %540 = vmatpush.msra.mxu3 %v1840_v54  ;;  %436 = vmatpush.msra.mxu0 %v1845_v56 }
  0x6d   :  { %514 = vmatpush.msra.mxu2 %v1858_v59  ;;  %477 = vmatpush.msra.mxu1 %v1847_v57  ;;  %v205_v57 = vld [vmem:[#allocation4 + $0x18] sm:$0xff] }
  0x6e   :  { %541 = vmatpush.msra.mxu3 %v1852_v58 }
  0x6f   :  { %515 = vmatpush.msra.mxu2 %v1861_v61 }
  0x71   :  { %516 = vmatpush.msra.mxu2 %v1865_v62 }
  0x73   :  { %517 = vmatpush.msra.mxu2 %v1871_v63 }
  0x75   :  { %518 = vmatpush.msra.mxu2 %v1877_v0  ;;  %v166_v0 = vld [vmem:[#allocation4 + $0x10] sm:$0xff] }
  0xa9   :  { %v86_v50 = vpop.f32.mrf.mxu0 }
  0xaa   :  { %v89_v54 = vadd.f32 %v86_v50, %v52_v52  ;;  %v143_v49 = vpop.f32.mrf.mxu1 }
  0xab   :  { %v146_v48 = vadd.f32 %v143_v49, %v109_v53 }
  0xac   :  { %v1355_v46 = vmul.f32 -1.442695, %v89_v54 }
  0xad   :  { %v1356_v56 = vmul.f32 -1.442695, %v146_v48 }
  0xae   :  { %1385 = vpow2.f32 %v1355_v46 }
  0xaf   :  { %1387 = vpow2.f32 %v1356_v56 }
  0xb0   :  { %v239_v58 = vpop.f32.mrf.mxu3 }
  0xb1   :  { %v242_v45 = vadd.f32 %v239_v58, %v205_v57 }
  0xb3   :  { %v1357_v61 = vmul.f32 -1.442695, %v242_v45 }
  0xb4   :  { %v1386_v44 = vpop.eup %1385 }
  0xb5   :  { %v1388_v62 = vpop.eup %1387  ;;  %v93_v42 = vadd.f32 1.0, %v1386_v44  ;;  %1389 = vpow2.f32 %v1357_v61 }
  0xb6   :  { %v150_v63 = vadd.f32 1.0, %v1388_v62 }
  0xb7   :  { %1391 = vrcp.f32 %v93_v42  ;;  %v105_v57 = vand.u32 2147483648, %v93_v42  ;;  %v103_v61 = vand.u32 2147483647, %v93_v42  ;;  %vm99_vm2 = vweird.f32 %v93_v42 }
  0xb8   :  { %1393 = vrcp.f32 %v150_v63  ;;  %v162_v58 = vand.u32 2147483648, %v150_v63  ;;  %v160_v41 = vand.u32 2147483647, %v150_v63  ;;  %vm156_vm3 = vweird.f32 %v150_v63 }
  0xb9   :  { %v200_v59 = vpop.f32.mrf.mxu2  ;;  %vm104_vm5 = vcmp.eq.f32.partialorder %v103_v61, 8.507059e+37  ;;  %v2625_v61 = vld [vmem:[#allocation19_spill] sm:$0xff] }
  0xba   :  { %v203_v52 = vadd.f32 %v200_v59, %v166_v0  ;;  %vm161_vm7 = vcmp.eq.f32.partialorder %v160_v41, 8.507059e+37 }
  0xbb   :  { %v1390_v50 = vpop.eup %1389 }
  0xbc   :  { %v246_v49 = vadd.f32 1.0, %v1390_v50  ;;  %v106_v50 = vor.u32 1.1754944e-38, %v105_v57 }
  0xbd   :  { %v1392_v53 = vpop.eup %1391 }
  0xbe   :  { %v1394_v48 = vpop.eup %1393  ;;  %v95_v46 = vmul.f32 %v1392_v53, %v93_v42  ;;  %1395 = vrcp.f32 %v246_v49  ;;  %vm100_vm0 = vweird.f32 %v1392_v53  ;;  %vm252_vm9 = vweird.f32 %v246_v49 }
  0xbf   :  { %v152_v54 = vmul.f32 %v1394_v48, %v150_v63  ;;  %1397 = vtanh.f32 %v203_v52  ;;  %vm157_vm1 = vweird.f32 %v1394_v48  ;;  %vm101_vm4 = vmor %vm99_vm2, %vm100_vm0  ;;  %v163_v52 = vor.u32 1.1754944e-38, %v162_v58 }
  0xc0   :  { %v96_v56 = vsub.f32 1.0, %v95_v46  ;;  %vm158_vm6 = vmor %vm156_vm3, %vm157_vm1  ;;  %v258_v63 = vand.u32 2147483648, %v246_v49  ;;  %v256_v57 = vand.u32 2147483647, %v246_v49 }
  0xc1   :  { %v153_v45 = vsub.f32 1.0, %v152_v54 }
  0xc2   :  { %v97_v44 = vmul.f32 %v1392_v53, %v96_v56  ;;  %vm257_vm11 = vcmp.eq.f32.partialorder %v256_v57, 8.507059e+37  ;;  %v2637_v57 = vld [vmem:[#allocation29_spill] sm:$0xff] }
  0xc3   :  { %v154_v62 = vmul.f32 %v1394_v48, %v153_v45 }
  0xc4   :  { %v1396_v40 = vpop.eup %1395  ;;  %v98_v38 = vadd.f32 %v1392_v53, %v97_v44 }
  0xc5   :  { %v1398_v0 = vpop.eup %1397  ;;  %v248_v59 = vmul.f32 %v1396_v40, %v246_v49  ;;  %v155_v55 = vadd.f32 %v1394_v48, %v154_v62  ;;  %vm253_vm8 = vweird.f32 %v1396_v40  ;;  %v2623_v49 = vld [vmem:[#allocation17_spill] sm:$0xff]  ;;  %v2626_v62 = vld [vmem:[#allocation35_spill] sm:$0xff] }
  0xc6   :  { %v102_v46 = vsel %vm101_vm4, %v1392_v53, %v98_v38  ;;  %vm254_vm10 = vmor %vm252_vm9, %vm253_vm8  ;;  %v259_v53 = vor.u32 1.1754944e-38, %v258_v63  ;;  %v2636_v63 = vld [vmem:[#allocation28_spill] sm:$0xff] }
  0xc7   :  { %v249_v54 = vsub.f32 1.0, %v248_v59  ;;  %v107_v56 = vsel %vm104_vm5, %v106_v50, %v102_v46  ;;  %v159_v37 = vsel %vm158_vm6, %v1394_v48, %v155_v55  ;;  %v2624_v48 = vld [vmem:[#allocation18_spill] sm:$0xff]  ;;  %v2628_v59 = vld [vmem:[#allocation21_spill] sm:$0xff]  ;;  %v2631_v46 = vld [vmem:[#allocation23_spill] sm:$0xff] }
  0xc8   :  { %v164_v45 = vsel %vm161_vm7, %v163_v52, %v159_v37  ;;  %v263_v36 = vmul.f32 %v1398_v0, %v107_v56  ;;  %v2620_v37 = vld [vmem:[#allocation15_spill] sm:$0xff]  ;;  %v2627_v0 = vld [vmem:[#allocation20_spill] sm:$0xff]  ;;  %v2629_v50 = vld [vmem:[#allocation22_spill] sm:$0xff] }
  0xc9   :  { %v262_v34 = vmul.f32 0.0, %v164_v45  ;;  %v250_v51 = vmul.f32 %v1396_v40, %v249_v54  ;;  %v2630_v52 = vld [vmem:[#allocation36_spill] sm:$0xff]  ;;  %v2633_v56 = vld [vmem:[#allocation25_spill] sm:$0xff] }
  0xca   :  { %v2632_v54 = vld [vmem:[#allocation24_spill] sm:$0xff]  ;;  %v2634_v45 = vld [vmem:[#allocation37_spill] sm:$0xff] }
  0xcb   :  { %v2002_v44 = vadd.f32 %v263_v36, %v262_v34  ;;  %v251_v42 = vadd.f32 %v1396_v40, %v250_v51  ;;  %v2618_v34 = vld [vmem:[#allocation27_spill] sm:$0xff]  ;;  %v2619_v36 = vld [vmem:[#allocation14_spill] sm:$0xff] }
  0xcc   :  { %v2622_v51 = vld [vmem:[#allocation31_spill] sm:$0xff] }
  0xcd   :  { %1399 = vtanh.f32 %v2002_v44  ;;  %v255_v38 = vsel %vm254_vm10, %v1396_v40, %v251_v42  ;;  %v2621_v40 = vld [vmem:[#allocation16_spill] sm:$0xff]  ;;  %v2635_v42 = vld [vmem:[#allocation26_spill] sm:$0xff] }
  0xce   :  { %v260_v55 = vsel %vm257_vm11, %v259_v53, %v255_v38  ;;  %v2638_v38 = vld [vmem:[#allocation38_spill] sm:$0xff] }
  0xcf   :  { %v2639_v53 = vld [vmem:[#allocation30_spill] sm:$0xff] }
  0xd3   :  { %v1400_v58 = vpop.eup %1399 }
  0xd4   :  { %v266_v41 = vmul.f32 %v1400_v58, %v260_v55  ;;  %v2640_v58 = vld [vmem:[#allocation32_spill] sm:$0xff]  ;;  %v2641_v55 = vld [vmem:[#allocation33_spill] sm:$0xff] }
  0xd6   :  { %285 = vmatmul.f32.vlgmr.msrb.gmra.mxu0 %v266_v41  ;;  %326 = vmatmul.f32.vlgmr.msrb.gmra.mxu1 %v266_v41 }
  0xd7   :  { %367 = vmatmul.f32.vlgmr.msrb.gmra.mxu2 %v266_v41  ;;  %390 = vmatmul.f32.vlgmr.msrb.gmra.mxu3 %v266_v41  ;;  %v2642_v41 = vld [vmem:[#allocation39_spill] sm:$0xff] }
  0xd8   :  { %573 = vmatpush.msrb.mxu0 %v2617_v60  ;;  %614 = vmatpush.msrb.mxu1 %v1684_v1 }
  0xd9   :  { %655 = vmatpush.msrb.mxu2 %v1728_v17  ;;  %678 = vmatpush.msrb.mxu3 %v1686_v2 }
  0xda   :  { %574 = vmatpush.msrb.mxu0 %v1690_v3  ;;  %615 = vmatpush.msrb.mxu1 %v1692_v4 }
  0xdb   :  { %656 = vmatpush.msrb.mxu2 %v1734_v19  ;;  %679 = vmatpush.msrb.mxu3 %v1694_v5 }
  0xdc   :  { %575 = vmatpush.msrb.mxu0 %v1697_v6  ;;  %616 = vmatpush.msrb.mxu1 %v1699_v7 }
  0xdd   :  { %657 = vmatpush.msrb.mxu2 %v1746_v23  ;;  %680 = vmatpush.msrb.mxu3 %v1703_v8 }
  0xde   :  { %576 = vmatpush.msrb.mxu0 %v1706_v9  ;;  %617 = vmatpush.msrb.mxu1 %v1708_v10 }
  0xdf   :  { %658 = vmatpush.msrb.mxu2 %v1758_v27  ;;  %681 = vmatpush.msrb.mxu3 %v1712_v11 }
  0xe0   :  { %577 = vmatpush.msrb.mxu0 %v1715_v12  ;;  %618 = vmatpush.msrb.mxu1 %v1717_v13 }
  0xe1   :  { %659 = vmatpush.msrb.mxu2 %v1770_v31  ;;  %682 = vmatpush.msrb.mxu3 %v1721_v14 }
  0xe2   :  { %578 = vmatpush.msrb.mxu0 %v1724_v15  ;;  %619 = vmatpush.msrb.mxu1 %v1726_v16 }
  0xe3   :  { %660 = vmatpush.msrb.mxu2 %v1782_v35  ;;  %683 = vmatpush.msrb.mxu3 %v1732_v18 }
  0xe4   :  { %579 = vmatpush.msrb.mxu0 %v1737_v20  ;;  %620 = vmatpush.msrb.mxu1 %v1739_v21 }
  0xe5   :  { %661 = vmatpush.msrb.mxu2 %v1794_v39  ;;  %684 = vmatpush.msrb.mxu3 %v1744_v22 }
  0xe6   :  { %580 = vmatpush.msrb.mxu0 %v1749_v24  ;;  %621 = vmatpush.msrb.mxu1 %v1751_v25 }
  0xe7   :  { %662 = vmatpush.msrb.mxu2 %v1806_v43  ;;  %685 = vmatpush.msrb.mxu3 %v1756_v26 }
  0xe8   :  { %581 = vmatpush.msrb.mxu0 %v1761_v28  ;;  %622 = vmatpush.msrb.mxu1 %v1763_v29 }
  0xe9   :  { %663 = vmatpush.msrb.mxu2 %v1818_v47  ;;  %686 = vmatpush.msrb.mxu3 %v1768_v30 }
  0xea   :  { %582 = vmatpush.msrb.mxu0 %v1773_v32  ;;  %623 = vmatpush.msrb.mxu1 %v1775_v33 }
  0xeb   :  { %664 = vmatpush.msrb.mxu2 %v2618_v34  ;;  %687 = vmatpush.msrb.mxu3 %v2619_v36 }
  0xec   :  { %583 = vmatpush.msrb.mxu0 %v2620_v37  ;;  %624 = vmatpush.msrb.mxu1 %v2621_v40 }
  0xed   :  { %665 = vmatpush.msrb.mxu2 %v2622_v51  ;;  %688 = vmatpush.msrb.mxu3 %v2623_v49 }
  0xee   :  { %584 = vmatpush.msrb.mxu0 %v2624_v48  ;;  %625 = vmatpush.msrb.mxu1 %v2625_v61 }
  0xef   :  { %666 = vmatpush.msrb.mxu2 %v2626_v62  ;;  %689 = vmatpush.msrb.mxu3 %v2627_v0 }
  0xf0   :  { %585 = vmatpush.msrb.mxu0 %v2628_v59  ;;  %626 = vmatpush.msrb.mxu1 %v2629_v50 }
  0xf1   :  { %667 = vmatpush.msrb.mxu2 %v2630_v52  ;;  %690 = vmatpush.msrb.mxu3 %v2631_v46 }
  0xf2   :  { %586 = vmatpush.msrb.mxu0 %v2632_v54  ;;  %627 = vmatpush.msrb.mxu1 %v2633_v56  ;;  %v2643_v54 = vld [vmem:[#allocation34_spill] sm:$0xff]  ;;  %v268_v56 = vld [vmem:[#allocation4 + $0x20] sm:$0xff] }
  0xf3   :  { %668 = vmatpush.msrb.mxu2 %v2634_v45  ;;  %691 = vmatpush.msrb.mxu3 %v2635_v42  ;;  %v309_v45 = vld [vmem:[#allocation4 + $0x28] sm:$0xff] }
  0xf4   :  { %587 = vmatpush.msrb.mxu0 %v2636_v63  ;;  %628 = vmatpush.msrb.mxu1 %v2637_v57 }
  0xf5   :  { %669 = vmatpush.msrb.mxu2 %v2638_v38  ;;  %692 = vmatpush.msrb.mxu3 %v2639_v53  ;;  %v373_v38 = vld [vmem:[#allocation4 + $0x38] sm:$0xff] }
  0xf6   :  { %588 = vmatpush.msrb.mxu0 %v2640_v58  ;;  %629 = vmatpush.msrb.mxu1 %v2641_v55 }
  0xf7   :  { %670 = vmatpush.msrb.mxu2 %v2642_v41  ;;  %693 = vmatpush.msrb.mxu3 %v2643_v54  ;;  %v350_v54 = vld [vmem:[#allocation4 + $0x30] sm:$0xff] }
 0x153   :  { %v286_v46 = vpop.f32.mrf.mxu0  ;;  %v327_v42 = vpop.f32.mrf.mxu1 }
 0x154   :  { %v289_v52 = vadd.f32 %v286_v46, %v268_v56  ;;  %v330_v63 = vadd.f32 %v327_v42, %v309_v45 }
 0x156   :  { %v1358_v50 = vmul.f32 -1.442695, %v289_v52  ;;  %v1359_v57 = vmul.f32 -1.442695, %v330_v63 }
 0x158   :  { %1401 = vpow2.f32 %v1358_v50 }
 0x159   :  { %1403 = vpow2.f32 %v1359_v57 }
 0x15a   :  { %v391_v53 = vpop.f32.mrf.mxu3  ;;  %v368_v61 = vpop.f32.mrf.mxu2 }
 0x15b   :  { %v394_v59 = vadd.f32 %v391_v53, %v373_v38  ;;  %v371_v52 = vadd.f32 %v368_v61, %v350_v54 }
 0x15d   :  { %v1360_v58 = vmul.f32 -1.442695, %v394_v59 }
 0x15e   :  { %v1402_v0 = vpop.eup %1401 }
 0x15f   :  { %v1404_v55 = vpop.eup %1403  ;;  %v293_v62 = vadd.f32 1.0, %v1402_v0  ;;  %1405 = vpow2.f32 %v1360_v58 }
 0x160   :  { %v334_v41 = vadd.f32 1.0, %v1404_v55 }
 0x161   :  { %1407 = vrcp.f32 %v293_v62  ;;  %v305_v59 = vand.u32 2147483648, %v293_v62  ;;  %v303_v53 = vand.u32 2147483647, %v293_v62  ;;  %vm299_vm14 = vweird.f32 %v293_v62 }
 0x162   :  { %1409 = vrcp.f32 %v334_v41  ;;  %v346_v38 = vand.u32 2147483648, %v334_v41  ;;  %v344_v55 = vand.u32 2147483647, %v334_v41  ;;  %vm340_vm15 = vweird.f32 %v334_v41 }
 0x163   :  { %vm304_vm2 = vcmp.eq.f32.partialorder %v303_v53, 8.507059e+37 }
 0x164   :  { %vm345_vm3 = vcmp.eq.f32.partialorder %v344_v55, 8.507059e+37 }
 0x165   :  { %v1406_v48 = vpop.eup %1405 }
 0x166   :  { %v398_v46 = vadd.f32 1.0, %v1406_v48  ;;  %v306_v48 = vor.u32 1.1754944e-38, %v305_v59 }
 0x167   :  { %v1408_v56 = vpop.eup %1407 }
 0x168   :  { %v1410_v45 = vpop.eup %1409  ;;  %v295_v50 = vmul.f32 %v1408_v56, %v293_v62  ;;  %1411 = vrcp.f32 %v398_v46  ;;  %vm300_vm12 = vweird.f32 %v1408_v56  ;;  %v410_v59 = vand.u32 2147483648, %v398_v46 }
 0x169   :  { %v336_v42 = vmul.f32 %v1410_v45, %v334_v41  ;;  %1413 = vtanh.f32 %v371_v52  ;;  %vm341_vm13 = vweird.f32 %v1410_v45  ;;  %vm301_vm0 = vmor %vm299_vm14, %vm300_vm12  ;;  %vm404_vm5 = vweird.f32 %v398_v46 }
 0x16a   :  { %v296_v63 = vsub.f32 1.0, %v295_v50  ;;  %vm342_vm1 = vmor %vm340_vm15, %vm341_vm13  ;;  %v347_v50 = vor.u32 1.1754944e-38, %v346_v38  ;;  %v411_v38 = vor.u32 1.1754944e-38, %v410_v59 }
 0x16b   :  { %v337_v57 = vsub.f32 1.0, %v336_v42 }
 0x16c   :  { %v297_v0 = vmul.f32 %v1408_v56, %v296_v63 }
 0x16d   :  { %v338_v58 = vmul.f32 %v1410_v45, %v337_v57 }
 0x16e   :  { %v1412_v49 = vpop.eup %1411  ;;  %v298_v51 = vadd.f32 %v1408_v56, %v297_v0 }
 0x16f   :  { %v339_v61 = vadd.f32 %v1410_v45, %v338_v58  ;;  %v400_v54 = vmul.f32 %v1412_v49, %v398_v46  ;;  %v1414_v52 = vpop.eup %1413  ;;  %vm405_vm4 = vweird.f32 %v1412_v49 }
 0x170   :  { %v302_v42 = vsel %vm301_vm0, %v1408_v56, %v298_v51  ;;  %v408_v51 = vand.u32 2147483647, %v398_v46  ;;  %vm406_vm6 = vmor %vm404_vm5, %vm405_vm4 }
 0x171   :  { %v307_v40 = vsel %vm304_vm2, %v306_v48, %v302_v42  ;;  %v343_v63 = vsel %vm342_vm1, %v1410_v45, %v339_v61  ;;  %v401_v37 = vsub.f32 1.0, %v400_v54 }
 0x172   :  { %v348_v57 = vsel %vm345_vm3, %v347_v50, %v343_v63  ;;  %v415_v36 = vmul.f32 %v1414_v52, %v307_v40  ;;  %vm409_vm7 = vcmp.eq.f32.partialorder %v408_v51, 8.507059e+37  ;;  %v502_v40 = vld [vmem:[#allocation4 + $0x50] sm:$0xff] }
 0x173   :  { %v414_v34 = vmul.f32 %v348_v57, %v2002_v44  ;;  %v402_v0 = vmul.f32 %v1412_v49, %v401_v37 }
 0x175   :  { %v2070_v62 = vadd.f32 %v415_v36, %v414_v34  ;;  %v403_v41 = vadd.f32 %v1412_v49, %v402_v0 }
 0x177   :  { %1415 = vtanh.f32 %v2070_v62  ;;  %v407_v56 = vsel %vm406_vm6, %v1412_v49, %v403_v41 }
 0x178   :  { %v412_v53 = vsel %vm409_vm7, %v411_v38, %v407_v56 }
 0x17d   :  { %v1416_v45 = vpop.eup %1415 }
 0x17e   :  { %v418_v58 = vmul.f32 %v1416_v45, %v412_v53 }
 0x180   :  { %437 = vmatmul.f32.vlgmr.msra.gmra.mxu0 %v418_v58  ;;  %478 = vmatmul.f32.vlgmr.msra.gmra.mxu1 %v418_v58 }
 0x181   :  { %519 = vmatmul.f32.vlgmr.msra.gmra.mxu2 %v418_v58  ;;  %542 = vmatmul.f32.vlgmr.msra.gmra.mxu3 %v418_v58 }
 0x182   :  { %725 = vmatpush.msra.mxu0 %v2617_v60  ;;  %766 = vmatpush.msra.mxu1 %v1684_v1  ;;  %v2644_v1 = vld [vmem:[#allocation27_spill] sm:$0xff] }
 0x183   :  { %807 = vmatpush.msra.mxu2 %v1728_v17  ;;  %830 = vmatpush.msra.mxu3 %v1686_v2  ;;  %v2645_v2 = vld [vmem:[#allocation14_spill] sm:$0xff]  ;;  %v2660_v17 = vld [vmem:[#allocation37_spill] sm:$0xff] }
 0x184   :  { %726 = vmatpush.msra.mxu0 %v1690_v3  ;;  %767 = vmatpush.msra.mxu1 %v1692_v4  ;;  %v2646_v3 = vld [vmem:[#allocation15_spill] sm:$0xff]  ;;  %v2647_v4 = vld [vmem:[#allocation16_spill] sm:$0xff] }
 0x185   :  { %808 = vmatpush.msra.mxu2 %v1734_v19  ;;  %831 = vmatpush.msra.mxu3 %v1694_v5  ;;  %v2648_v5 = vld [vmem:[#allocation31_spill] sm:$0xff]  ;;  %v2662_v19 = vld [vmem:[#allocation28_spill] sm:$0xff] }
 0x186   :  { %727 = vmatpush.msra.mxu0 %v1697_v6  ;;  %768 = vmatpush.msra.mxu1 %v1699_v7  ;;  %v2649_v6 = vld [vmem:[#allocation17_spill] sm:$0xff]  ;;  %v2650_v7 = vld [vmem:[#allocation18_spill] sm:$0xff] }
 0x187   :  { %809 = vmatpush.msra.mxu2 %v1746_v23  ;;  %832 = vmatpush.msra.mxu3 %v1703_v8  ;;  %v2651_v8 = vld [vmem:[#allocation19_spill] sm:$0xff]  ;;  %v2666_v23 = vld [vmem:[#allocation32_spill] sm:$0xff] }
 0x188   :  { %728 = vmatpush.msra.mxu0 %v1706_v9  ;;  %769 = vmatpush.msra.mxu1 %v1708_v10  ;;  %v2652_v9 = vld [vmem:[#allocation35_spill] sm:$0xff]  ;;  %v2653_v10 = vld [vmem:[#allocation20_spill] sm:$0xff] }
 0x189   :  { %810 = vmatpush.msra.mxu2 %v1758_v27  ;;  %833 = vmatpush.msra.mxu3 %v1712_v11  ;;  %v2654_v11 = vld [vmem:[#allocation21_spill] sm:$0xff]  ;;  %v420_v27 = vld [vmem:[#allocation4 + $0x40] sm:$0xff] }
 0x18a   :  { %729 = vmatpush.msra.mxu0 %v1715_v12  ;;  %770 = vmatpush.msra.mxu1 %v1717_v13  ;;  %v2655_v12 = vld [vmem:[#allocation22_spill] sm:$0xff]  ;;  %v2656_v13 = vld [vmem:[#allocation36_spill] sm:$0xff] }
 0x18b   :  { %811 = vmatpush.msra.mxu2 %v1770_v31  ;;  %834 = vmatpush.msra.mxu3 %v1721_v14  ;;  %v2657_v14 = vld [vmem:[#allocation23_spill] sm:$0xff] }
 0x18c   :  { %730 = vmatpush.msra.mxu0 %v1724_v15  ;;  %771 = vmatpush.msra.mxu1 %v1726_v16  ;;  %v2658_v15 = vld [vmem:[#allocation24_spill] sm:$0xff]  ;;  %v2659_v16 = vld [vmem:[#allocation25_spill] sm:$0xff] }
 0x18d   :  { %812 = vmatpush.msra.mxu2 %v1782_v35  ;;  %835 = vmatpush.msra.mxu3 %v1732_v18  ;;  %v2661_v18 = vld [vmem:[#allocation26_spill] sm:$0xff] }
 0x18e   :  { %731 = vmatpush.msra.mxu0 %v1737_v20  ;;  %772 = vmatpush.msra.mxu1 %v1739_v21  ;;  %v2663_v20 = vld [vmem:[#allocation29_spill] sm:$0xff]  ;;  %v2664_v21 = vld [vmem:[#allocation38_spill] sm:$0xff] }
 0x18f   :  { %813 = vmatpush.msra.mxu2 %v1794_v39  ;;  %836 = vmatpush.msra.mxu3 %v1744_v22  ;;  %v2665_v22 = vld [vmem:[#allocation30_spill] sm:$0xff]  ;;  %v525_v39 = vld [vmem:[#allocation4 + $0x58] sm:$0xff] }
 0x190   :  { %732 = vmatpush.msra.mxu0 %v1749_v24  ;;  %773 = vmatpush.msra.mxu1 %v1751_v25  ;;  %v2667_v24 = vld [vmem:[#allocation33_spill] sm:$0xff]  ;;  %v2668_v25 = vld [vmem:[#allocation39_spill] sm:$0xff] }
 0x191   :  { %814 = vmatpush.msra.mxu2 %v1806_v43  ;;  %837 = vmatpush.msra.mxu3 %v1756_v26  ;;  %v2669_v26 = vld [vmem:[#allocation34_spill] sm:$0xff] }
 0x192   :  { %733 = vmatpush.msra.mxu0 %v1761_v28  ;;  %774 = vmatpush.msra.mxu1 %v1763_v29  ;;  %v461_v28 = vld [vmem:[#allocation4 + $0x48] sm:$0xff] }
 0x193   :  { %815 = vmatpush.msra.mxu2 %v1818_v47  ;;  %838 = vmatpush.msra.mxu3 %v1768_v30 }
 0x194   :  { %734 = vmatpush.msra.mxu0 %v1773_v32  ;;  %775 = vmatpush.msra.mxu1 %v1775_v33 }
 0x195   :  { %816 = vmatpush.msra.mxu2 %v2644_v1  ;;  %839 = vmatpush.msra.mxu3 %v2645_v2 }
 0x196   :  { %735 = vmatpush.msra.mxu0 %v2646_v3  ;;  %776 = vmatpush.msra.mxu1 %v2647_v4 }
 0x197   :  { %817 = vmatpush.msra.mxu2 %v2648_v5  ;;  %840 = vmatpush.msra.mxu3 %v2649_v6 }
 0x198   :  { %736 = vmatpush.msra.mxu0 %v2650_v7  ;;  %777 = vmatpush.msra.mxu1 %v2651_v8 }
 0x199   :  { %818 = vmatpush.msra.mxu2 %v2652_v9  ;;  %841 = vmatpush.msra.mxu3 %v2653_v10 }
 0x19a   :  { %737 = vmatpush.msra.mxu0 %v2654_v11  ;;  %778 = vmatpush.msra.mxu1 %v2655_v12 }
 0x19b   :  { %819 = vmatpush.msra.mxu2 %v2656_v13  ;;  %842 = vmatpush.msra.mxu3 %v2657_v14 }
 0x19c   :  { %738 = vmatpush.msra.mxu0 %v2658_v15  ;;  %779 = vmatpush.msra.mxu1 %v2659_v16 }
 0x19d   :  { %820 = vmatpush.msra.mxu2 %v2660_v17  ;;  %843 = vmatpush.msra.mxu3 %v2661_v18 }
 0x19e   :  { %739 = vmatpush.msra.mxu0 %v2662_v19  ;;  %780 = vmatpush.msra.mxu1 %v2663_v20 }
 0x19f   :  { %821 = vmatpush.msra.mxu2 %v2664_v21  ;;  %844 = vmatpush.msra.mxu3 %v2665_v22  ;;  %v2144_v21 = vld [vmem:[#allocation7 + $0x1e8] sm:$0xff]  ;;  %v2147_v22 = vld [vmem:[#allocation7 + $0x1f0] sm:$0xff] }
 0x1a0   :  { %740 = vmatpush.msra.mxu0 %v2666_v23  ;;  %781 = vmatpush.msra.mxu1 %v2667_v24  ;;  %v2150_v23 = vld [vmem:[#allocation7 + $0x1f8] sm:$0xff]  ;;  %v2153_v24 = vld [vmem:[#allocation7 + $0x1c0] sm:$0xff] }
 0x1a1   :  { %822 = vmatpush.msra.mxu2 %v2668_v25  ;;  %845 = vmatpush.msra.mxu3 %v2669_v26  ;;  %v2156_v25 = vld [vmem:[#allocation7 + $0x1c8] sm:$0xff]  ;;  %v2159_v26 = vld [vmem:[#allocation7 + $0x1d0] sm:$0xff] }
 0x1fd   :  { %v438_v29 = vpop.f32.mrf.mxu0  ;;  %v479_v30 = vpop.f32.mrf.mxu1 }
 0x1fe   :  { %v441_v31 = vadd.f32 %v438_v29, %v420_v27  ;;  %v482_v32 = vadd.f32 %v479_v30, %v461_v28  ;;  %v2162_v27 = vld [vmem:[#allocation7 + $0x1d8] sm:$0xff]  ;;  %v2165_v28 = vld [vmem:[#allocation7 + $0x1a0] sm:$0xff]  ;;  %v2168_v29 = vld [vmem:[#allocation7 + $0x1a8] sm:$0xff] }
 0x1ff   :  { %v2171_v30 = vld [vmem:[#allocation7 + $0x1b0] sm:$0xff] }
 0x200   :  { %v1361_v33 = vmul.f32 -1.442695, %v441_v31  ;;  %v1362_v35 = vmul.f32 -1.442695, %v482_v32  ;;  %v2174_v31 = vld [vmem:[#allocation7 + $0x1b8] sm:$0xff]  ;;  %v2177_v32 = vld [vmem:[#allocation7 + $0x180] sm:$0xff] }
 0x202   :  { %1417 = vpow2.f32 %v1361_v33  ;;  %v2180_v33 = vld [vmem:[#allocation7 + $0x188] sm:$0xff] }
 0x203   :  { %1419 = vpow2.f32 %v1362_v35  ;;  %v2183_v35 = vld [vmem:[#allocation7 + $0x190] sm:$0xff] }
 0x204   :  { %v543_v43 = vpop.f32.mrf.mxu3  ;;  %v520_v49 = vpop.f32.mrf.mxu2 }
 0x205   :  { %v546_v47 = vadd.f32 %v543_v43, %v525_v39  ;;  %v523_v61 = vadd.f32 %v520_v49, %v502_v40  ;;  %v2186_v39 = vld [vmem:[#allocation7 + $0x198] sm:$0xff]  ;;  %v2189_v43 = vld [vmem:[#allocation7 + $0x160] sm:$0xff] }
 0x206   :  { %v2210_v40 = vld [vmem:[#allocation7 + $0x158] sm:$0xff]  ;;  %v2213_v49 = vld [vmem:[#allocation7 + $0x120] sm:$0xff] }
 0x207   :  { %v1363_v60 = vmul.f32 -1.442695, %v546_v47  ;;  %v2192_v47 = vld [vmem:[#allocation7 + $0x168] sm:$0xff] }
 0x208   :  { %v1418_v44 = vpop.eup %1417 }
 0x209   :  { %v1420_v34 = vpop.eup %1419  ;;  %v445_v36 = vadd.f32 1.0, %v1418_v44  ;;  %1421 = vpow2.f32 %v1363_v60  ;;  %v2195_v60 = vld [vmem:[#allocation7 + $0x170] sm:$0xff]  ;;  %v2198_v44 = vld [vmem:[#allocation7 + $0x178] sm:$0xff] }
 0x20a   :  { %v486_v37 = vadd.f32 1.0, %v1420_v34  ;;  %v2201_v34 = vld [vmem:[#allocation7 + $0x140] sm:$0xff] }
 0x20b   :  { %1423 = vrcp.f32 %v445_v36  ;;  %v457_v57 = vand.u32 2147483648, %v445_v36  ;;  %v455_v59 = vand.u32 2147483647, %v445_v36  ;;  %vm451_vm10 = vweird.f32 %v445_v36 }
 0x20c   :  { %1425 = vrcp.f32 %v486_v37  ;;  %v498_v0 = vand.u32 2147483648, %v486_v37  ;;  %v496_v56 = vand.u32 2147483647, %v486_v37  ;;  %vm492_vm11 = vweird.f32 %v486_v37 }
 0x20d   :  { %v458_v53 = vor.u32 1.1754944e-38, %v457_v57  ;;  %vm456_vm14 = vcmp.eq.f32.partialorder %v455_v59, 8.507059e+37  ;;  %v2243_v57 = vld [vmem:[#allocation7 + $0xf0] sm:$0xff]  ;;  %v2252_v59 = vld [vmem:[#allocation7 + $0xc8] sm:$0xff] }
 0x20e   :  { %v499_v2 = vor.u32 1.1754944e-38, %v498_v0  ;;  %vm497_vm15 = vcmp.eq.f32.partialorder %v496_v56, 8.507059e+37  ;;  %v2246_v0 = vld [vmem:[#allocation7 + $0xf8] sm:$0xff] }
 0x20f   :  { %v1422_v46 = vpop.eup %1421  ;;  %v2258_v56 = vld [vmem:[#allocation7 + $0xd8] sm:$0xff] }
 0x210   :  { %v550_v55 = vadd.f32 1.0, %v1422_v46  ;;  %v2216_v46 = vld [vmem:[#allocation7 + $0x128] sm:$0xff]  ;;  %2671 = vst [vmem:[#allocation27_spill] sm:$0xff] %v2258_v56 }
 0x211   :  { %v1424_v48 = vpop.eup %1423 }
 0x212   :  { %v1426_v54 = vpop.eup %1425  ;;  %v447_v50 = vmul.f32 %v1424_v48, %v445_v36  ;;  %1427 = vrcp.f32 %v550_v55  ;;  %vm452_vm8 = vweird.f32 %v1424_v48  ;;  %v562_v14 = vand.u32 2147483648, %v550_v55  ;;  %v2204_v36 = vld [vmem:[#allocation7 + $0x148] sm:$0xff] }
 0x213   :  { %v488_v42 = vmul.f32 %v1426_v54, %v486_v37  ;;  %1429 = vtanh.f32 %v523_v61  ;;  %vm493_vm9 = vweird.f32 %v1426_v54  ;;  %vm453_vm12 = vmor %vm451_vm10, %vm452_vm8  ;;  %vm556_vm1 = vweird.f32 %v550_v55  ;;  %v2207_v37 = vld [vmem:[#allocation7 + $0x150] sm:$0xff]  ;;  %v2225_v61 = vld [vmem:[#allocation7 + $0x100] sm:$0xff] }
 0x214   :  { %v448_v52 = vsub.f32 1.0, %v447_v50  ;;  %vm494_vm13 = vmor %vm492_vm11, %vm493_vm9  ;;  %v560_v15 = vand.u32 2147483647, %v550_v55  ;;  %v563_v17 = vor.u32 1.1754944e-38, %v562_v14  ;;  %v2231_v50 = vld [vmem:[#allocation7 + $0x110] sm:$0xff]  ;;  %v2309_v14 = vld [vmem:[#allocation7 + $0x20] sm:$0xff] }
 0x215   :  { %v489_v63 = vsub.f32 1.0, %v488_v42  ;;  %v2234_v42 = vld [vmem:[#allocation7 + $0x118] sm:$0xff]  ;;  %2688 = vst [vmem:[#allocation26_spill] sm:$0xff] %v2309_v14 }
 0x216   :  { %v449_v41 = vmul.f32 %v1424_v48, %v448_v52  ;;  %vm561_vm3 = vcmp.eq.f32.partialorder %v560_v15, 8.507059e+37  ;;  %v2237_v52 = vld [vmem:[#allocation7 + $0xe0] sm:$0xff]  ;;  %v2312_v15 = vld [vmem:[#allocation7 + $0x28] sm:$0xff] }
 0x217   :  { %v490_v51 = vmul.f32 %v1426_v54, %v489_v63  ;;  %v2240_v63 = vld [vmem:[#allocation7 + $0xe8] sm:$0xff]  ;;  %2689 = vst [vmem:[#allocation28_spill] sm:$0xff] %v2312_v15 }
 0x218   :  { %v1428_v38 = vpop.eup %1427  ;;  %v450_v45 = vadd.f32 %v1424_v48, %v449_v41  ;;  %v2249_v41 = vld [vmem:[#allocation7 + $0xc0] sm:$0xff] }
 0x219   :  { %v491_v58 = vadd.f32 %v1426_v54, %v490_v51  ;;  %v552_v1 = vmul.f32 %v1428_v38, %v550_v55  ;;  %v1430_v4 = vpop.eup %1429  ;;  %vm557_vm0 = vweird.f32 %v1428_v38  ;;  %v2219_v55 = vld [vmem:[#allocation7 + $0x130] sm:$0xff] }
 0x21a   :  { %v454_v3 = vsel %vm453_vm12, %v1424_v48, %v450_v45  ;;  %vm558_vm2 = vmor %vm556_vm1, %vm557_vm0  ;;  %v2222_v48 = vld [vmem:[#allocation7 + $0x138] sm:$0xff]  ;;  %v2255_v51 = vld [vmem:[#allocation7 + $0xd0] sm:$0xff] }
 0x21b   :  { %v459_v5 = vsel %vm456_vm14, %v458_v53, %v454_v3  ;;  %v495_v6 = vsel %vm494_vm13, %v1426_v54, %v491_v58  ;;  %v553_v7 = vsub.f32 1.0, %v552_v1  ;;  %v2228_v54 = vld [vmem:[#allocation7 + $0x108] sm:$0xff]  ;;  %2670 = vst [vmem:[#allocation13_spill] sm:$0xff] %v2255_v51  ;;  %v2267_v53 = vld [vmem:[#allocation7 + $0xb0] sm:$0xff]  ;;  %v2270_v58 = vld [vmem:[#allocation7 + $0xb8] sm:$0xff] }
 0x21c   :  { %v500_v8 = vsel %vm497_vm15, %v499_v2, %v495_v6  ;;  %v567_v9 = vmul.f32 %v1430_v4, %v459_v5  ;;  %v2264_v45 = vld [vmem:[#allocation7 + $0xa8] sm:$0xff]  ;;  %2674 = vst [vmem:[#allocation16_spill] sm:$0xff] %v2267_v53  ;;  %v2273_v1 = vld [vmem:[#allocation7 + $0x80] sm:$0xff]  ;;  %v2279_v3 = vld [vmem:[#allocation7 + $0x90] sm:$0xff] }
 0x21d   :  { %v566_v10 = vmul.f32 %v500_v8, %v2070_v62  ;;  %v554_v11 = vmul.f32 %v1428_v38, %v553_v7  ;;  %v2141_v62 = vld [vmem:[#allocation7 + $0x1e0] sm:$0xff]  ;;  %2673 = vst [vmem:[#allocation15_spill] sm:$0xff] %v2264_v45  ;;  %v2276_v2 = vld [vmem:[#allocation7 + $0x88] sm:$0xff]  ;;  %v2282_v4 = vld [vmem:[#allocation7 + $0x98] sm:$0xff] }
 0x21e   :  { %2675 = vst [vmem:[#allocation31_spill] sm:$0xff] %v2270_v58  ;;  %v2285_v5 = vld [vmem:[#allocation7 + $0x60] sm:$0xff]  ;;  %v2288_v6 = vld [vmem:[#allocation7 + $0x68] sm:$0xff]  ;;  %v2291_v7 = vld [vmem:[#allocation7 + $0x70] sm:$0xff] }
 0x21f   :  { %v2138_v12 = vadd.f32 %v567_v9, %v566_v10  ;;  %v555_v13 = vadd.f32 %v1428_v38, %v554_v11  ;;  %2676 = vst [vmem:[#allocation17_spill] sm:$0xff] %v2273_v1  ;;  %v2294_v8 = vld [vmem:[#allocation7 + $0x78] sm:$0xff]  ;;  %v2297_v9 = vld [vmem:[#allocation7 + $0x40] sm:$0xff]  ;;  %v2300_v10 = vld [vmem:[#allocation7 + $0x48] sm:$0xff] }
 0x220   :  { %2677 = vst [vmem:[#allocation18_spill] sm:$0xff] %v2276_v2  ;;  %v2303_v11 = vld [vmem:[#allocation7 + $0x50] sm:$0xff] }
 0x221   :  { %1431 = vtanh.f32 %v2138_v12  ;;  %v559_v16 = vsel %vm558_vm2, %v1428_v38, %v555_v13  ;;  %v2261_v38 = vld [vmem:[#allocation7 + $0xa0] sm:$0xff]  ;;  %2678 = vst [vmem:[#allocation19_spill] sm:$0xff] %v2279_v3  ;;  %v2306_v13 = vld [vmem:[#allocation7 + $0x58] sm:$0xff] }
 0x222   :  { %v564_v19 = vsel %vm561_vm3, %v563_v17, %v559_v16  ;;  %2672 = vst [vmem:[#allocation14_spill] sm:$0xff] %v2261_v38  ;;  %v2315_v16 = vld [vmem:[#allocation7 + $0x30] sm:$0xff]  ;;  %v2318_v17 = vld [vmem:[#allocation7 + $0x38] sm:$0xff] }
 0x223   :  { %2679 = vst [vmem:[#allocation35_spill] sm:$0xff] %v2282_v4 }
 0x224   :  { %2680 = vst [vmem:[#allocation20_spill] sm:$0xff] %v2285_v5 }
 0x225   :  { %2681 = vst [vmem:[#allocation21_spill] sm:$0xff] %v2288_v6 }
 0x226   :  { %2682 = vst [vmem:[#allocation22_spill] sm:$0xff] %v2291_v7 }
 0x227   :  { %v1432_v18 = vpop.eup %1431  ;;  %2683 = vst [vmem:[#allocation36_spill] sm:$0xff] %v2294_v8 }
 0x228   :  { %v570_v20 = vmul.f32 %v1432_v18, %v564_v19  ;;  %2684 = vst [vmem:[#allocation23_spill] sm:$0xff] %v2297_v9  ;;  %v2321_v18 = vld [vmem:[#allocation7] sm:$0xff]  ;;  %v2324_v19 = vld [vmem:[#allocation7 + $0x8] sm:$0xff] }
 0x229   :  { %2685 = vst [vmem:[#allocation24_spill] sm:$0xff] %v2300_v10 }
 0x22a   :  { %589 = vmatmul.f32.vlgmr.msrb.gmra.mxu0 %v570_v20  ;;  %630 = vmatmul.f32.vlgmr.msrb.gmra.mxu1 %v570_v20  ;;  %2686 = vst [vmem:[#allocation25_spill] sm:$0xff] %v2303_v11 }
 0x22b   :  { %671 = vmatmul.f32.vlgmr.msrb.gmra.mxu2 %v570_v20  ;;  %694 = vmatmul.f32.vlgmr.msrb.gmra.mxu3 %v570_v20  ;;  %2687 = vst [vmem:[#allocation37_spill] sm:$0xff] %v2306_v13  ;;  %v2327_v20 = vld [vmem:[#allocation7 + $0x10] sm:$0xff] }
 0x22c   :  { %877 = vmatpush.msrb.mxu0 %v2141_v62  ;;  %918 = vmatpush.msrb.mxu1 %v2144_v21  ;;  %2690 = vst [vmem:[#allocation29_spill] sm:$0xff] %v2315_v16 }
 0x22d   :  { %959 = vmatpush.msrb.mxu2 %v2147_v22  ;;  %982 = vmatpush.msrb.mxu3 %v2150_v23  ;;  %2691 = vst [vmem:[#allocation38_spill] sm:$0xff] %v2318_v17 }
 0x22e   :  { %878 = vmatpush.msrb.mxu0 %v2153_v24  ;;  %919 = vmatpush.msrb.mxu1 %v2156_v25  ;;  %2692 = vst [vmem:[#allocation30_spill] sm:$0xff] %v2321_v18 }
 0x22f   :  { %960 = vmatpush.msrb.mxu2 %v2159_v26  ;;  %983 = vmatpush.msrb.mxu3 %v2162_v27  ;;  %2693 = vst [vmem:[#allocation32_spill] sm:$0xff] %v2324_v19 }
 0x230   :  { %879 = vmatpush.msrb.mxu0 %v2165_v28  ;;  %920 = vmatpush.msrb.mxu1 %v2168_v29  ;;  %2694 = vst [vmem:[#allocation33_spill] sm:$0xff] %v2327_v20 }
 0x231   :  { %961 = vmatpush.msrb.mxu2 %v2171_v30  ;;  %984 = vmatpush.msrb.mxu3 %v2174_v31 }
 0x232   :  { %880 = vmatpush.msrb.mxu0 %v2177_v32  ;;  %921 = vmatpush.msrb.mxu1 %v2180_v33 }
 0x233   :  { %962 = vmatpush.msrb.mxu2 %v2183_v35  ;;  %985 = vmatpush.msrb.mxu3 %v2186_v39 }
 0x234   :  { %881 = vmatpush.msrb.mxu0 %v2189_v43  ;;  %922 = vmatpush.msrb.mxu1 %v2192_v47 }
 0x235   :  { %963 = vmatpush.msrb.mxu2 %v2195_v60  ;;  %986 = vmatpush.msrb.mxu3 %v2198_v44 }
 0x236   :  { %882 = vmatpush.msrb.mxu0 %v2201_v34  ;;  %923 = vmatpush.msrb.mxu1 %v2204_v36 }
 0x237   :  { %964 = vmatpush.msrb.mxu2 %v2207_v37  ;;  %987 = vmatpush.msrb.mxu3 %v2210_v40 }
 0x238   :  { %883 = vmatpush.msrb.mxu0 %v2213_v49  ;;  %924 = vmatpush.msrb.mxu1 %v2216_v46 }
 0x239   :  { %965 = vmatpush.msrb.mxu2 %v2219_v55  ;;  %988 = vmatpush.msrb.mxu3 %v2222_v48 }
 0x23a   :  { %884 = vmatpush.msrb.mxu0 %v2225_v61  ;;  %925 = vmatpush.msrb.mxu1 %v2228_v54 }
 0x23b   :  { %966 = vmatpush.msrb.mxu2 %v2231_v50  ;;  %989 = vmatpush.msrb.mxu3 %v2234_v42 }
 0x23c   :  { %885 = vmatpush.msrb.mxu0 %v2237_v52  ;;  %926 = vmatpush.msrb.mxu1 %v2240_v63 }
 0x23d   :  { %967 = vmatpush.msrb.mxu2 %v2243_v57  ;;  %990 = vmatpush.msrb.mxu3 %v2246_v0 }
 0x23e   :  { %886 = vmatpush.msrb.mxu0 %v2249_v41  ;;  %927 = vmatpush.msrb.mxu1 %v2252_v59 }
 0x23f   :  { %968 = vmatpush.msrb.mxu2 %v2255_v51  ;;  %991 = vmatpush.msrb.mxu3 %v2258_v56 }
 0x240   :  { %887 = vmatpush.msrb.mxu0 %v2261_v38  ;;  %928 = vmatpush.msrb.mxu1 %v2264_v45 }
 0x241   :  { %969 = vmatpush.msrb.mxu2 %v2267_v53  ;;  %992 = vmatpush.msrb.mxu3 %v2270_v58 }
 0x242   :  { %888 = vmatpush.msrb.mxu0 %v2273_v1  ;;  %929 = vmatpush.msrb.mxu1 %v2276_v2 }
 0x243   :  { %970 = vmatpush.msrb.mxu2 %v2279_v3  ;;  %993 = vmatpush.msrb.mxu3 %v2282_v4 }
 0x244   :  { %889 = vmatpush.msrb.mxu0 %v2285_v5  ;;  %930 = vmatpush.msrb.mxu1 %v2288_v6 }
 0x245   :  { %971 = vmatpush.msrb.mxu2 %v2291_v7  ;;  %994 = vmatpush.msrb.mxu3 %v2294_v8  ;;  %v677_v8 = vld [vmem:[#allocation4 + $0x78] sm:$0xff] }
 0x246   :  { %890 = vmatpush.msrb.mxu0 %v2297_v9  ;;  %931 = vmatpush.msrb.mxu1 %v2300_v10 }
 0x247   :  { %972 = vmatpush.msrb.mxu2 %v2303_v11  ;;  %995 = vmatpush.msrb.mxu3 %v2306_v13 }
 0x248   :  { %891 = vmatpush.msrb.mxu0 %v2309_v14  ;;  %932 = vmatpush.msrb.mxu1 %v2312_v15  ;;  %v2330_v15 = vld [vmem:[#allocation7 + $0x18] sm:$0xff]  ;;  %v613_v14 = vld [vmem:[#allocation4 + $0x68] sm:$0xff] }
 0x249   :  { %973 = vmatpush.msrb.mxu2 %v2315_v16  ;;  %996 = vmatpush.msrb.mxu3 %v2318_v17  ;;  %2695 = vst [vmem:[#allocation39_spill] sm:$0xff] %v2330_v15  ;;  %v572_v16 = vld [vmem:[#allocation4 + $0x60] sm:$0xff] }
 0x24a   :  { %892 = vmatpush.msrb.mxu0 %v2321_v18  ;;  %933 = vmatpush.msrb.mxu1 %v2324_v19 }
 0x24b   :  { %974 = vmatpush.msrb.mxu2 %v2327_v20  ;;  %997 = vmatpush.msrb.mxu3 %v2330_v15  ;;  %v654_v15 = vld [vmem:[#allocation4 + $0x70] sm:$0xff] }
 0x2a7   :  { %v590_v13 = vpop.f32.mrf.mxu0  ;;  %v631_v17 = vpop.f32.mrf.mxu1 }
 0x2a8   :  { %v593_v11 = vadd.f32 %v590_v13, %v572_v16  ;;  %v634_v10 = vadd.f32 %v631_v17, %v613_v14 }
 0x2aa   :  { %v1364_v9 = vmul.f32 -1.442695, %v593_v11  ;;  %v1365_v18 = vmul.f32 -1.442695, %v634_v10 }
 0x2ac   :  { %1433 = vpow2.f32 %v1364_v9 }
 0x2ad   :  { %1435 = vpow2.f32 %v1365_v18 }
 0x2ae   :  { %v695_v19 = vpop.f32.mrf.mxu3  ;;  %v672_v2 = vpop.f32.mrf.mxu2 }
 0x2af   :  { %v698_v7 = vadd.f32 %v695_v19, %v677_v8  ;;  %v675_v11 = vadd.f32 %v672_v2, %v654_v15 }
 0x2b1   :  { %v1366_v6 = vmul.f32 -1.442695, %v698_v7 }
 0x2b2   :  { %v1434_v5 = vpop.eup %1433 }
 0x2b3   :  { %v1436_v20 = vpop.eup %1435  ;;  %v597_v4 = vadd.f32 1.0, %v1434_v5  ;;  %1437 = vpow2.f32 %v1366_v6 }
 0x2b4   :  { %v638_v3 = vadd.f32 1.0, %v1436_v20 }
 0x2b5   :  { %1439 = vrcp.f32 %v597_v4  ;;  %v609_v7 = vand.u32 2147483648, %v597_v4  ;;  %v607_v6 = vand.u32 2147483647, %v597_v4  ;;  %vm603_vm6 = vweird.f32 %v597_v4 }
 0x2b6   :  { %1441 = vrcp.f32 %v638_v3  ;;  %v650_v18 = vand.u32 2147483648, %v638_v3  ;;  %v648_v20 = vand.u32 2147483647, %v638_v3  ;;  %vm644_vm7 = vweird.f32 %v638_v3 }
 0x2b7   :  { %vm608_vm10 = vcmp.eq.f32.partialorder %v607_v6, 8.507059e+37 }
 0x2b8   :  { %vm649_vm11 = vcmp.eq.f32.partialorder %v648_v20, 8.507059e+37  ;;  %v2703_v20 = vld [vmem:[#allocation18_spill] sm:$0xff] }
 0x2b9   :  { %v1438_v1 = vpop.eup %1437 }
 0x2ba   :  { %v702_v13 = vadd.f32 1.0, %v1438_v1  ;;  %v610_v1 = vor.u32 1.1754944e-38, %v609_v7 }
 0x2bb   :  { %v1440_v14 = vpop.eup %1439 }
 0x2bc   :  { %v1442_v10 = vpop.eup %1441  ;;  %v599_v9 = vmul.f32 %v1440_v14, %v597_v4  ;;  %1443 = vrcp.f32 %v702_v13  ;;  %vm604_vm4 = vweird.f32 %v1440_v14  ;;  %v714_v7 = vand.u32 2147483648, %v702_v13 }
 0x2bd   :  { %v640_v16 = vmul.f32 %v1442_v10, %v638_v3  ;;  %1445 = vtanh.f32 %v675_v11  ;;  %vm645_vm5 = vweird.f32 %v1442_v10  ;;  %vm605_vm8 = vmor %vm603_vm6, %vm604_vm4  ;;  %vm708_vm13 = vweird.f32 %v702_v13 }
 0x2be   :  { %v600_v17 = vsub.f32 1.0, %v599_v9  ;;  %vm646_vm9 = vmor %vm644_vm7, %vm645_vm5  ;;  %v651_v9 = vor.u32 1.1754944e-38, %v650_v18  ;;  %v715_v18 = vor.u32 1.1754944e-38, %v714_v7  ;;  %v2714_v7 = vld [vmem:[#allocation26_spill] sm:$0xff] }
 0x2bf   :  { %v641_v8 = vsub.f32 1.0, %v640_v16 }
 0x2c0   :  { %v601_v5 = vmul.f32 %v1440_v14, %v600_v17 }
 0x2c1   :  { %v642_v19 = vmul.f32 %v1442_v10, %v641_v8 }
 0x2c2   :  { %v1444_v58 = vpop.eup %1443  ;;  %v602_v53 = vadd.f32 %v1440_v14, %v601_v5 }
 0x2c3   :  { %v643_v2 = vadd.f32 %v1442_v10, %v642_v19  ;;  %v704_v15 = vmul.f32 %v1444_v58, %v702_v13  ;;  %v1446_v11 = vpop.eup %1445  ;;  %vm709_vm12 = vweird.f32 %v1444_v58 }
 0x2c4   :  { %v606_v16 = vsel %vm605_vm8, %v1440_v14, %v602_v53  ;;  %v712_v53 = vand.u32 2147483647, %v702_v13  ;;  %vm710_vm14 = vmor %vm708_vm13, %vm709_vm12  ;;  %v2702_v13 = vld [vmem:[#allocation17_spill] sm:$0xff] }
 0x2c5   :  { %v611_v45 = vsel %vm608_vm10, %v610_v1, %v606_v16  ;;  %v647_v17 = vsel %vm646_vm9, %v1442_v10, %v643_v2  ;;  %v705_v38 = vsub.f32 1.0, %v704_v15  ;;  %v2704_v1 = vld [vmem:[#allocation19_spill] sm:$0xff]  ;;  %v2706_v15 = vld [vmem:[#allocation20_spill] sm:$0xff]  ;;  %v2708_v16 = vld [vmem:[#allocation22_spill] sm:$0xff] }
 0x2c6   :  { %v652_v8 = vsel %vm649_vm11, %v651_v9, %v647_v17  ;;  %v719_v56 = vmul.f32 %v1446_v11, %v611_v45  ;;  %vm713_vm15 = vcmp.eq.f32.partialorder %v712_v53, 8.507059e+37  ;;  %v2700_v45 = vld [vmem:[#allocation16_spill] sm:$0xff]  ;;  %v2705_v2 = vld [vmem:[#allocation35_spill] sm:$0xff]  ;;  %v2707_v9 = vld [vmem:[#allocation21_spill] sm:$0xff] }
 0x2c7   :  { %v718_v51 = vmul.f32 %v652_v8, %v2138_v12  ;;  %v706_v5 = vmul.f32 %v1444_v58, %v705_v38  ;;  %v2696_v12 = vld [vmem:[#allocation13_spill] sm:$0xff]  ;;  %v2699_v38 = vld [vmem:[#allocation15_spill] sm:$0xff]  ;;  %v2709_v11 = vld [vmem:[#allocation36_spill] sm:$0xff] }
 0x2c8   :  { %v2710_v17 = vld [vmem:[#allocation23_spill] sm:$0xff]  ;;  %v2711_v8 = vld [vmem:[#allocation24_spill] sm:$0xff] }
 0x2c9   :  { %v2334_v4 = vadd.f32 %v719_v56, %v718_v51  ;;  %v707_v3 = vadd.f32 %v1444_v58, %v706_v5  ;;  %v2697_v51 = vld [vmem:[#allocation27_spill] sm:$0xff]  ;;  %v2698_v56 = vld [vmem:[#allocation14_spill] sm:$0xff]  ;;  %v2712_v5 = vld [vmem:[#allocation25_spill] sm:$0xff] }
 0x2ca   :  { %v2715_v53 = vld [vmem:[#allocation28_spill] sm:$0xff] }
 0x2cb   :  { %1447 = vtanh.f32 %v2334_v4  ;;  %v711_v14 = vsel %vm710_vm14, %v1444_v58, %v707_v3  ;;  %v2701_v58 = vld [vmem:[#allocation31_spill] sm:$0xff]  ;;  %v2713_v3 = vld [vmem:[#allocation37_spill] sm:$0xff] }
 0x2cc   :  { %v716_v6 = vsel %vm713_vm15, %v715_v18, %v711_v14  ;;  %v2716_v14 = vld [vmem:[#allocation29_spill] sm:$0xff]  ;;  %v2717_v18 = vld [vmem:[#allocation38_spill] sm:$0xff] }
 0x2d1   :  { %v1448_v10 = vpop.eup %1447 }
 0x2d2   :  { %v722_v19 = vmul.f32 %v1448_v10, %v716_v6  ;;  %v2718_v10 = vld [vmem:[#allocation30_spill] sm:$0xff]  ;;  %v2719_v6 = vld [vmem:[#allocation32_spill] sm:$0xff] }
 0x2d4   :  { %741 = vmatmul.f32.vlgmr.msra.gmra.mxu0 %v722_v19  ;;  %782 = vmatmul.f32.vlgmr.msra.gmra.mxu1 %v722_v19 }
 0x2d5   :  { %823 = vmatmul.f32.vlgmr.msra.gmra.mxu2 %v722_v19  ;;  %846 = vmatmul.f32.vlgmr.msra.gmra.mxu3 %v722_v19  ;;  %v2720_v19 = vld [vmem:[#allocation33_spill] sm:$0xff] }
 0x2d6   :  { %1029 = vmatpush.msra.mxu0 %v2141_v62  ;;  %1070 = vmatpush.msra.mxu1 %v2144_v21 }
 0x2d7   :  { %1111 = vmatpush.msra.mxu2 %v2147_v22  ;;  %1134 = vmatpush.msra.mxu3 %v2150_v23 }
 0x2d8   :  { %1030 = vmatpush.msra.mxu0 %v2153_v24  ;;  %1071 = vmatpush.msra.mxu1 %v2156_v25 }
 0x2d9   :  { %1112 = vmatpush.msra.mxu2 %v2159_v26  ;;  %1135 = vmatpush.msra.mxu3 %v2162_v27 }
 0x2da   :  { %1031 = vmatpush.msra.mxu0 %v2165_v28  ;;  %1072 = vmatpush.msra.mxu1 %v2168_v29 }
 0x2db   :  { %1113 = vmatpush.msra.mxu2 %v2171_v30  ;;  %1136 = vmatpush.msra.mxu3 %v2174_v31 }
 0x2dc   :  { %1032 = vmatpush.msra.mxu0 %v2177_v32  ;;  %1073 = vmatpush.msra.mxu1 %v2180_v33 }
 0x2dd   :  { %1114 = vmatpush.msra.mxu2 %v2183_v35  ;;  %1137 = vmatpush.msra.mxu3 %v2186_v39 }
 0x2de   :  { %1033 = vmatpush.msra.mxu0 %v2189_v43  ;;  %1074 = vmatpush.msra.mxu1 %v2192_v47 }
 0x2df   :  { %1115 = vmatpush.msra.mxu2 %v2195_v60  ;;  %1138 = vmatpush.msra.mxu3 %v2198_v44 }
 0x2e0   :  { %1034 = vmatpush.msra.mxu0 %v2201_v34  ;;  %1075 = vmatpush.msra.mxu1 %v2204_v36 }
 0x2e1   :  { %1116 = vmatpush.msra.mxu2 %v2207_v37  ;;  %1139 = vmatpush.msra.mxu3 %v2210_v40 }
 0x2e2   :  { %1035 = vmatpush.msra.mxu0 %v2213_v49  ;;  %1076 = vmatpush.msra.mxu1 %v2216_v46 }
 0x2e3   :  { %1117 = vmatpush.msra.mxu2 %v2219_v55  ;;  %1140 = vmatpush.msra.mxu3 %v2222_v48 }
 0x2e4   :  { %1036 = vmatpush.msra.mxu0 %v2225_v61  ;;  %1077 = vmatpush.msra.mxu1 %v2228_v54 }
 0x2e5   :  { %1118 = vmatpush.msra.mxu2 %v2231_v50  ;;  %1141 = vmatpush.msra.mxu3 %v2234_v42 }
 0x2e6   :  { %1037 = vmatpush.msra.mxu0 %v2237_v52  ;;  %1078 = vmatpush.msra.mxu1 %v2240_v63 }
 0x2e7   :  { %1119 = vmatpush.msra.mxu2 %v2243_v57  ;;  %1142 = vmatpush.msra.mxu3 %v2246_v0 }
 0x2e8   :  { %1038 = vmatpush.msra.mxu0 %v2249_v41  ;;  %1079 = vmatpush.msra.mxu1 %v2252_v59 }
 0x2e9   :  { %1120 = vmatpush.msra.mxu2 %v2696_v12  ;;  %1143 = vmatpush.msra.mxu3 %v2697_v51 }
 0x2ea   :  { %1039 = vmatpush.msra.mxu0 %v2698_v56  ;;  %1080 = vmatpush.msra.mxu1 %v2699_v38 }
 0x2eb   :  { %1121 = vmatpush.msra.mxu2 %v2700_v45  ;;  %1144 = vmatpush.msra.mxu3 %v2701_v58 }
 0x2ec   :  { %1040 = vmatpush.msra.mxu0 %v2702_v13  ;;  %1081 = vmatpush.msra.mxu1 %v2703_v20 }
 0x2ed   :  { %1122 = vmatpush.msra.mxu2 %v2704_v1  ;;  %1145 = vmatpush.msra.mxu3 %v2705_v2 }
 0x2ee   :  { %1041 = vmatpush.msra.mxu0 %v2706_v15  ;;  %1082 = vmatpush.msra.mxu1 %v2707_v9 }
 0x2ef   :  { %1123 = vmatpush.msra.mxu2 %v2708_v16  ;;  %1146 = vmatpush.msra.mxu3 %v2709_v11 }
 0x2f0   :  { %1042 = vmatpush.msra.mxu0 %v2710_v17  ;;  %1083 = vmatpush.msra.mxu1 %v2711_v8  ;;  %v2721_v17 = vld [vmem:[#allocation39_spill] sm:$0xff]  ;;  %v724_v8 = vld [vmem:[#allocation4 + $0x80] sm:$0xff] }
 0x2f1   :  { %1124 = vmatpush.msra.mxu2 %v2712_v5  ;;  %1147 = vmatpush.msra.mxu3 %v2713_v3  ;;  %v765_v5 = vld [vmem:[#allocation4 + $0x88] sm:$0xff] }
 0x2f2   :  { %1043 = vmatpush.msra.mxu0 %v2714_v7  ;;  %1084 = vmatpush.msra.mxu1 %v2715_v53 }
 0x2f3   :  { %1125 = vmatpush.msra.mxu2 %v2716_v14  ;;  %1148 = vmatpush.msra.mxu3 %v2717_v18  ;;  %v829_v14 = vld [vmem:[#allocation4 + $0x98] sm:$0xff] }
 0x2f4   :  { %1044 = vmatpush.msra.mxu0 %v2718_v10  ;;  %1085 = vmatpush.msra.mxu1 %v2719_v6 }
 0x2f5   :  { %1126 = vmatpush.msra.mxu2 %v2720_v19  ;;  %1149 = vmatpush.msra.mxu3 %v2721_v17  ;;  %v806_v17 = vld [vmem:[#allocation4 + $0x90] sm:$0xff] }
 0x351   :  { %v742_v11 = vpop.f32.mrf.mxu0  ;;  %v783_v3 = vpop.f32.mrf.mxu1 }
 0x352   :  { %v745_v16 = vadd.f32 %v742_v11, %v724_v8  ;;  %v786_v7 = vadd.f32 %v783_v3, %v765_v5 }
 0x354   :  { %v1367_v9 = vmul.f32 -1.442695, %v745_v16  ;;  %v1368_v53 = vmul.f32 -1.442695, %v786_v7 }
 0x356   :  { %1449 = vpow2.f32 %v1367_v9 }
 0x357   :  { %1451 = vpow2.f32 %v1368_v53 }
 0x358   :  { %v847_v18 = vpop.f32.mrf.mxu3  ;;  %v824_v20 = vpop.f32.mrf.mxu2 }
 0x359   :  { %v850_v15 = vadd.f32 %v847_v18, %v829_v14  ;;  %v827_v16 = vadd.f32 %v824_v20, %v806_v17 }
 0x35b   :  { %v1369_v10 = vmul.f32 -1.442695, %v850_v15 }
 0x35c   :  { %v1450_v2 = vpop.eup %1449 }
 0x35d   :  { %v1452_v6 = vpop.eup %1451  ;;  %v749_v1 = vadd.f32 1.0, %v1450_v2  ;;  %1453 = vpow2.f32 %v1369_v10 }
 0x35e   :  { %v790_v19 = vadd.f32 1.0, %v1452_v6 }
 0x35f   :  { %1455 = vrcp.f32 %v749_v1  ;;  %v761_v15 = vand.u32 2147483648, %v749_v1  ;;  %v759_v18 = vand.u32 2147483647, %v749_v1  ;;  %vm755_vm2 = vweird.f32 %v749_v1 }
 0x360   :  { %1457 = vrcp.f32 %v790_v19  ;;  %v802_v14 = vand.u32 2147483648, %v790_v19  ;;  %v800_v6 = vand.u32 2147483647, %v790_v19  ;;  %vm796_vm3 = vweird.f32 %v790_v19 }
 0x361   :  { %vm760_vm6 = vcmp.eq.f32.partialorder %v759_v18, 8.507059e+37 }
 0x362   :  { %vm801_vm7 = vcmp.eq.f32.partialorder %v800_v6, 8.507059e+37 }
 0x363   :  { %v1454_v13 = vpop.eup %1453 }
 0x364   :  { %v854_v11 = vadd.f32 1.0, %v1454_v13  ;;  %v762_v13 = vor.u32 1.1754944e-38, %v761_v15 }
 0x365   :  { %v1456_v8 = vpop.eup %1455 }
 0x366   :  { %v1458_v5 = vpop.eup %1457  ;;  %v751_v9 = vmul.f32 %v1456_v8, %v749_v1  ;;  %1459 = vrcp.f32 %v854_v11  ;;  %vm756_vm0 = vweird.f32 %v1456_v8  ;;  %v866_v15 = vand.u32 2147483648, %v854_v11 }
 0x367   :  { %v792_v3 = vmul.f32 %v1458_v5, %v790_v19  ;;  %1461 = vtanh.f32 %v827_v16  ;;  %vm797_vm1 = vweird.f32 %v1458_v5  ;;  %vm757_vm4 = vmor %vm755_vm2, %vm756_vm0  ;;  %vm860_vm9 = vweird.f32 %v854_v11 }
 0x368   :  { %v752_v7 = vsub.f32 1.0, %v751_v9  ;;  %vm798_vm5 = vmor %vm796_vm3, %vm797_vm1  ;;  %v803_v9 = vor.u32 1.1754944e-38, %v802_v14  ;;  %v867_v14 = vor.u32 1.1754944e-38, %v866_v15 }
 0x369   :  { %v793_v53 = vsub.f32 1.0, %v792_v3 }
 0x36a   :  { %v753_v2 = vmul.f32 %v1456_v8, %v752_v7 }
 0x36b   :  { %v794_v10 = vmul.f32 %v1458_v5, %v793_v53 }
 0x36c   :  { %v1460_v58 = vpop.eup %1459  ;;  %v754_v45 = vadd.f32 %v1456_v8, %v753_v2 }
 0x36d   :  { %v795_v20 = vadd.f32 %v1458_v5, %v794_v10  ;;  %v856_v17 = vmul.f32 %v1460_v58, %v854_v11  ;;  %v1462_v16 = vpop.eup %1461  ;;  %vm861_vm8 = vweird.f32 %v1460_v58 }
 0x36e   :  { %v758_v3 = vsel %vm757_vm4, %v1456_v8, %v754_v45  ;;  %v864_v45 = vand.u32 2147483647, %v854_v11  ;;  %vm862_vm10 = vmor %vm860_vm9, %vm861_vm8 }
 0x36f   :  { %v763_v38 = vsel %vm760_vm6, %v762_v13, %v758_v3  ;;  %v799_v7 = vsel %vm798_vm5, %v1458_v5, %v795_v20  ;;  %v857_v56 = vsub.f32 1.0, %v856_v17 }
 0x370   :  { %v804_v53 = vsel %vm801_vm7, %v803_v9, %v799_v7  ;;  %v871_v51 = vmul.f32 %v1462_v16, %v763_v38  ;;  %vm865_vm11 = vcmp.eq.f32.partialorder %v864_v45, 8.507059e+37  ;;  %v958_v38 = vld [vmem:[#allocation4 + $0xb0] sm:$0xff] }
 0x371   :  { %v870_v12 = vmul.f32 %v804_v53, %v2334_v4  ;;  %v858_v2 = vmul.f32 %v1460_v58, %v857_v56 }
 0x373   :  { %v2402_v1 = vadd.f32 %v871_v51, %v870_v12  ;;  %v859_v19 = vadd.f32 %v1460_v58, %v858_v2 }
 0x375   :  { %1463 = vtanh.f32 %v2402_v1  ;;  %v863_v8 = vsel %vm862_vm10, %v1460_v58, %v859_v19 }
 0x376   :  { %v868_v18 = vsel %vm865_vm11, %v867_v14, %v863_v8 }
 0x37b   :  { %v1464_v5 = vpop.eup %1463 }
 0x37c   :  { %v874_v10 = vmul.f32 %v1464_v5, %v868_v18 }
 0x37e   :  { %893 = vmatmul.f32.vlgmr.msrb.gmra.mxu0 %v874_v10  ;;  %934 = vmatmul.f32.vlgmr.msrb.gmra.mxu1 %v874_v10 }
 0x37f   :  { %975 = vmatmul.f32.vlgmr.msrb.gmra.mxu2 %v874_v10  ;;  %998 = vmatmul.f32.vlgmr.msrb.gmra.mxu3 %v874_v10 }
 0x380   :  { %1181 = vmatpush.msrb.mxu0 %v2141_v62  ;;  %1222 = vmatpush.msrb.mxu1 %v2144_v21  ;;  %v2722_v62 = vld [vmem:[#allocation13_spill] sm:$0xff]  ;;  %v2723_v21 = vld [vmem:[#allocation27_spill] sm:$0xff] }
 0x381   :  { %1263 = vmatpush.msrb.mxu2 %v2147_v22  ;;  %1286 = vmatpush.msrb.mxu3 %v2150_v23  ;;  %v2724_v22 = vld [vmem:[#allocation14_spill] sm:$0xff]  ;;  %v2725_v23 = vld [vmem:[#allocation15_spill] sm:$0xff] }
 0x382   :  { %1182 = vmatpush.msrb.mxu0 %v2153_v24  ;;  %1223 = vmatpush.msrb.mxu1 %v2156_v25  ;;  %v2726_v24 = vld [vmem:[#allocation16_spill] sm:$0xff]  ;;  %v2727_v25 = vld [vmem:[#allocation31_spill] sm:$0xff] }
 0x383   :  { %1264 = vmatpush.msrb.mxu2 %v2159_v26  ;;  %1287 = vmatpush.msrb.mxu3 %v2162_v27  ;;  %v2728_v26 = vld [vmem:[#allocation17_spill] sm:$0xff]  ;;  %v2729_v27 = vld [vmem:[#allocation18_spill] sm:$0xff] }
 0x384   :  { %1183 = vmatpush.msrb.mxu0 %v2165_v28  ;;  %1224 = vmatpush.msrb.mxu1 %v2168_v29  ;;  %v2730_v28 = vld [vmem:[#allocation19_spill] sm:$0xff] }
 0x385   :  { %1265 = vmatpush.msrb.mxu2 %v2171_v30  ;;  %1288 = vmatpush.msrb.mxu3 %v2174_v31  ;;  %v2731_v29 = vld [vmem:[#allocation35_spill] sm:$0xff]  ;;  %v2732_v30 = vld [vmem:[#allocation20_spill] sm:$0xff]  ;;  %v2733_v31 = vld [vmem:[#allocation21_spill] sm:$0xff] }
 0x386   :  { %1184 = vmatpush.msrb.mxu0 %v2177_v32  ;;  %1225 = vmatpush.msrb.mxu1 %v2180_v33  ;;  %v2734_v32 = vld [vmem:[#allocation22_spill] sm:$0xff]  ;;  %v2735_v33 = vld [vmem:[#allocation36_spill] sm:$0xff] }
 0x387   :  { %1266 = vmatpush.msrb.mxu2 %v2183_v35  ;;  %1289 = vmatpush.msrb.mxu3 %v2186_v39  ;;  %v2736_v35 = vld [vmem:[#allocation23_spill] sm:$0xff]  ;;  %v2737_v39 = vld [vmem:[#allocation24_spill] sm:$0xff] }
 0x388   :  { %1185 = vmatpush.msrb.mxu0 %v2189_v43  ;;  %1226 = vmatpush.msrb.mxu1 %v2192_v47  ;;  %v2738_v43 = vld [vmem:[#allocation25_spill] sm:$0xff] }
 0x389   :  { %1267 = vmatpush.msrb.mxu2 %v2195_v60  ;;  %1290 = vmatpush.msrb.mxu3 %v2198_v44  ;;  %v2739_v47 = vld [vmem:[#allocation37_spill] sm:$0xff]  ;;  %v2740_v60 = vld [vmem:[#allocation26_spill] sm:$0xff]  ;;  %v2741_v44 = vld [vmem:[#allocation28_spill] sm:$0xff] }
 0x38a   :  { %1186 = vmatpush.msrb.mxu0 %v2201_v34  ;;  %1227 = vmatpush.msrb.mxu1 %v2204_v36  ;;  %v2742_v34 = vld [vmem:[#allocation29_spill] sm:$0xff]  ;;  %v2743_v36 = vld [vmem:[#allocation38_spill] sm:$0xff] }
 0x38b   :  { %1268 = vmatpush.msrb.mxu2 %v2207_v37  ;;  %1291 = vmatpush.msrb.mxu3 %v2210_v40  ;;  %v2744_v37 = vld [vmem:[#allocation30_spill] sm:$0xff]  ;;  %v2745_v40 = vld [vmem:[#allocation32_spill] sm:$0xff] }
 0x38c   :  { %1187 = vmatpush.msrb.mxu0 %v2213_v49  ;;  %1228 = vmatpush.msrb.mxu1 %v2216_v46  ;;  %v2746_v49 = vld [vmem:[#allocation33_spill] sm:$0xff]  ;;  %v2747_v46 = vld [vmem:[#allocation39_spill] sm:$0xff] }
 0x38d   :  { %1269 = vmatpush.msrb.mxu2 %v2219_v55  ;;  %1292 = vmatpush.msrb.mxu3 %v2222_v48  ;;  %v876_v55 = vld [vmem:[#allocation4 + $0xa0] sm:$0xff]  ;;  %v917_v48 = vld [vmem:[#allocation4 + $0xa8] sm:$0xff] }
 0x38e   :  { %1188 = vmatpush.msrb.mxu0 %v2225_v61  ;;  %1229 = vmatpush.msrb.mxu1 %v2228_v54 }
 0x38f   :  { %1270 = vmatpush.msrb.mxu2 %v2231_v50  ;;  %1293 = vmatpush.msrb.mxu3 %v2234_v42 }
 0x390   :  { %1189 = vmatpush.msrb.mxu0 %v2237_v52  ;;  %1230 = vmatpush.msrb.mxu1 %v2240_v63 }
 0x391   :  { %1271 = vmatpush.msrb.mxu2 %v2243_v57  ;;  %1294 = vmatpush.msrb.mxu3 %v2246_v0  ;;  %v981_v57 = vld [vmem:[#allocation4 + $0xb8] sm:$0xff] }
 0x392   :  { %1190 = vmatpush.msrb.mxu0 %v2249_v41  ;;  %1231 = vmatpush.msrb.mxu1 %v2252_v59 }
 0x393   :  { %1272 = vmatpush.msrb.mxu2 %v2722_v62  ;;  %1295 = vmatpush.msrb.mxu3 %v2723_v21 }
 0x394   :  { %1191 = vmatpush.msrb.mxu0 %v2724_v22  ;;  %1232 = vmatpush.msrb.mxu1 %v2725_v23 }
 0x395   :  { %1273 = vmatpush.msrb.mxu2 %v2726_v24  ;;  %1296 = vmatpush.msrb.mxu3 %v2727_v25 }
 0x396   :  { %1192 = vmatpush.msrb.mxu0 %v2728_v26  ;;  %1233 = vmatpush.msrb.mxu1 %v2729_v27 }
 0x397   :  { %1274 = vmatpush.msrb.mxu2 %v2730_v28  ;;  %1297 = vmatpush.msrb.mxu3 %v2731_v29 }
 0x398   :  { %1193 = vmatpush.msrb.mxu0 %v2732_v30  ;;  %1234 = vmatpush.msrb.mxu1 %v2733_v31 }
 0x399   :  { %1275 = vmatpush.msrb.mxu2 %v2734_v32  ;;  %1298 = vmatpush.msrb.mxu3 %v2735_v33 }
 0x39a   :  { %1194 = vmatpush.msrb.mxu0 %v2736_v35  ;;  %1235 = vmatpush.msrb.mxu1 %v2737_v39 }
 0x39b   :  { %1276 = vmatpush.msrb.mxu2 %v2738_v43  ;;  %1299 = vmatpush.msrb.mxu3 %v2739_v47 }
 0x39c   :  { %1195 = vmatpush.msrb.mxu0 %v2740_v60  ;;  %1236 = vmatpush.msrb.mxu1 %v2741_v44 }
 0x39d   :  { %1277 = vmatpush.msrb.mxu2 %v2742_v34  ;;  %1300 = vmatpush.msrb.mxu3 %v2743_v36  ;;  %v1069_v34 = vld [vmem:[#allocation4 + $0xc8] sm:$0xff] }
 0x39e   :  { %1196 = vmatpush.msrb.mxu0 %v2744_v37  ;;  %1237 = vmatpush.msrb.mxu1 %v2745_v40 }
 0x39f   :  { %1278 = vmatpush.msrb.mxu2 %v2746_v49  ;;  %1301 = vmatpush.msrb.mxu3 %v2747_v46 }
 0x3fb   :  { %v894_v61 = vpop.f32.mrf.mxu0  ;;  %v935_v54 = vpop.f32.mrf.mxu1 }
 0x3fc   :  { %v897_v50 = vadd.f32 %v894_v61, %v876_v55  ;;  %v938_v42 = vadd.f32 %v935_v54, %v917_v48  ;;  %v1133_v48 = vld [vmem:[#allocation4 + $0xd8] sm:$0xff] }
 0x3fe   :  { %v1370_v52 = vmul.f32 -1.442695, %v897_v50  ;;  %v1371_v63 = vmul.f32 -1.442695, %v938_v42 }
 0x400   :  { %1465 = vpow2.f32 %v1370_v52 }
 0x401   :  { %1467 = vpow2.f32 %v1371_v63 }
 0x402   :  { %v999_v0 = vpop.f32.mrf.mxu3  ;;  %v976_v58 = vpop.f32.mrf.mxu2 }
 0x403   :  { %v1002_v41 = vadd.f32 %v999_v0, %v981_v57  ;;  %v979_v20 = vadd.f32 %v976_v58, %v958_v38  ;;  %v1110_v0 = vld [vmem:[#allocation4 + $0xd0] sm:$0xff] }
 0x405   :  { %v1372_v59 = vmul.f32 -1.442695, %v1002_v41 }
 0x406   :  { %v1466_v4 = vpop.eup %1465 }
 0x407   :  { %v1468_v12 = vpop.eup %1467  ;;  %v901_v51 = vadd.f32 1.0, %v1466_v4  ;;  %1469 = vpow2.f32 %v1372_v59 }
 0x408   :  { %v942_v56 = vadd.f32 1.0, %v1468_v12 }
 0x409   :  { %1471 = vrcp.f32 %v901_v51  ;;  %v913_v53 = vand.u32 2147483648, %v901_v51  ;;  %v911_v15 = vand.u32 2147483647, %v901_v51  ;;  %vm907_vm14 = vweird.f32 %v901_v51 }
 0x40a   :  { %1473 = vrcp.f32 %v942_v56  ;;  %v954_v2 = vand.u32 2147483648, %v942_v56  ;;  %v952_v8 = vand.u32 2147483647, %v942_v56  ;;  %vm948_vm15 = vweird.f32 %v942_v56 }
 0x40b   :  { %v914_v18 = vor.u32 1.1754944e-38, %v913_v53  ;;  %vm912_vm2 = vcmp.eq.f32.partialorder %v911_v15, 8.507059e+37 }
 0x40c   :  { %v955_v21 = vor.u32 1.1754944e-38, %v954_v2  ;;  %vm953_vm3 = vcmp.eq.f32.partialorder %v952_v8, 8.507059e+37 }
 0x40d   :  { %v1470_v11 = vpop.eup %1469 }
 0x40e   :  { %v1006_v6 = vadd.f32 1.0, %v1470_v11 }
 0x40f   :  { %v1472_v13 = vpop.eup %1471 }
 0x410   :  { %v1474_v17 = vpop.eup %1473  ;;  %v903_v9 = vmul.f32 %v1472_v13, %v901_v51  ;;  %1475 = vrcp.f32 %v1006_v6  ;;  %vm908_vm12 = vweird.f32 %v1472_v13  ;;  %v1018_v33 = vand.u32 2147483648, %v1006_v6 }
 0x411   :  { %v944_v3 = vmul.f32 %v1474_v17, %v942_v56  ;;  %1477 = vtanh.f32 %v979_v20  ;;  %vm949_vm13 = vweird.f32 %v1474_v17  ;;  %vm909_vm0 = vmor %vm907_vm14, %vm908_vm12  ;;  %vm1012_vm5 = vweird.f32 %v1006_v6 }
 0x412   :  { %v904_v16 = vsub.f32 1.0, %v903_v9  ;;  %vm950_vm1 = vmor %vm948_vm15, %vm949_vm13  ;;  %v1016_v35 = vand.u32 2147483647, %v1006_v6  ;;  %v1019_v43 = vor.u32 1.1754944e-38, %v1018_v33 }
 0x413   :  { %v945_v7 = vsub.f32 1.0, %v944_v3 }
 0x414   :  { %v905_v19 = vmul.f32 %v1472_v13, %v904_v16  ;;  %vm1017_vm7 = vcmp.eq.f32.partialorder %v1016_v35, 8.507059e+37  ;;  %v1221_v35 = vld [vmem:[#allocation4 + $0xe8] sm:$0xff] }
 0x415   :  { %v946_v45 = vmul.f32 %v1474_v17, %v945_v7 }
 0x416   :  { %v1476_v14 = vpop.eup %1475  ;;  %v906_v5 = vadd.f32 %v1472_v13, %v905_v19 }
 0x417   :  { %v947_v10 = vadd.f32 %v1474_v17, %v946_v45  ;;  %v1008_v62 = vmul.f32 %v1476_v14, %v1006_v6  ;;  %v1478_v23 = vpop.eup %1477  ;;  %vm1013_vm4 = vweird.f32 %v1476_v14 }
 0x418   :  { %v910_v22 = vsel %vm909_vm0, %v1472_v13, %v906_v5  ;;  %vm1014_vm6 = vmor %vm1012_vm5, %vm1013_vm4 }
 0x419   :  { %v915_v24 = vsel %vm912_vm2, %v914_v18, %v910_v22  ;;  %v951_v25 = vsel %vm950_vm1, %v1474_v17, %v947_v10  ;;  %v1009_v26 = vsub.f32 1.0, %v1008_v62 }
 0x41a   :  { %v956_v27 = vsel %vm953_vm3, %v955_v21, %v951_v25  ;;  %v1023_v28 = vmul.f32 %v1478_v23, %v915_v24 }
 0x41b   :  { %v1022_v29 = vmul.f32 %v956_v27, %v2402_v1  ;;  %v1010_v30 = vmul.f32 %v1476_v14, %v1009_v26  ;;  %v1028_v1 = vld [vmem:[#allocation4 + $0xc0] sm:$0xff] }
 0x41d   :  { %v2470_v31 = vadd.f32 %v1023_v28, %v1022_v29  ;;  %v1011_v32 = vadd.f32 %v1476_v14, %v1010_v30 }
 0x41f   :  { %1479 = vtanh.f32 %v2470_v31  ;;  %v1015_v39 = vsel %vm1014_vm6, %v1476_v14, %v1011_v32 }
 0x420   :  { %v1020_v60 = vsel %vm1017_vm7, %v1019_v43, %v1015_v39 }
 0x425   :  { %v1480_v47 = vpop.eup %1479 }
 0x426   :  { %v1026_v44 = vmul.f32 %v1480_v47, %v1020_v60 }
 0x428   :  { %1045 = vmatmul.f32.vlgmr.msra.gmra.mxu0 %v1026_v44  ;;  %1086 = vmatmul.f32.vlgmr.msra.gmra.mxu1 %v1026_v44 }
 0x429   :  { %1127 = vmatmul.f32.vlgmr.msra.gmra.mxu2 %v1026_v44  ;;  %1150 = vmatmul.f32.vlgmr.msra.gmra.mxu3 %v1026_v44 }
 0x4a5   :  { %v1046_v36 = vpop.f32.mrf.mxu0  ;;  %v1087_v37 = vpop.f32.mrf.mxu1 }
 0x4a6   :  { %v1049_v40 = vadd.f32 %v1046_v36, %v1028_v1  ;;  %v1090_v49 = vadd.f32 %v1087_v37, %v1069_v34  ;;  %v1285_v34 = vld [vmem:[#allocation4 + $0xf8] sm:$0xff] }
 0x4a8   :  { %v1373_v46 = vmul.f32 -1.442695, %v1049_v40  ;;  %v1374_v55 = vmul.f32 -1.442695, %v1090_v49 }
 0x4aa   :  { %1481 = vpow2.f32 %v1373_v46 }
 0x4ab   :  { %1483 = vpow2.f32 %v1374_v55 }
 0x4ac   :  { %v1151_v61 = vpop.f32.mrf.mxu3  ;;  %v1128_v41 = vpop.f32.mrf.mxu2 }
 0x4ad   :  { %v1154_v54 = vadd.f32 %v1151_v61, %v1133_v48  ;;  %v1131_v51 = vadd.f32 %v1128_v41, %v1110_v0  ;;  %v1262_v61 = vld [vmem:[#allocation4 + $0xf0] sm:$0xff] }
 0x4af   :  { %v1375_v50 = vmul.f32 -1.442695, %v1154_v54 }
 0x4b0   :  { %v1482_v42 = vpop.eup %1481 }
 0x4b1   :  { %v1484_v52 = vpop.eup %1483  ;;  %v1053_v63 = vadd.f32 1.0, %v1482_v42  ;;  %1485 = vpow2.f32 %v1375_v50 }
 0x4b2   :  { %v1094_v57 = vadd.f32 1.0, %v1484_v52 }
 0x4b3   :  { %1487 = vrcp.f32 %v1053_v63  ;;  %v1065_v13 = vand.u32 2147483648, %v1053_v63  ;;  %v1063_v9 = vand.u32 2147483647, %v1053_v63  ;;  %vm1059_vm10 = vweird.f32 %v1053_v63 }
 0x4b4   :  { %1489 = vrcp.f32 %v1094_v57  ;;  %v1106_v20 = vand.u32 2147483648, %v1094_v57  ;;  %v1104_v16 = vand.u32 2147483647, %v1094_v57  ;;  %vm1100_vm11 = vweird.f32 %v1094_v57 }
 0x4b5   :  { %v1066_v2 = vor.u32 1.1754944e-38, %v1065_v13  ;;  %vm1064_vm14 = vcmp.eq.f32.partialorder %v1063_v9, 8.507059e+37 }
 0x4b6   :  { %v1107_v45 = vor.u32 1.1754944e-38, %v1106_v20  ;;  %vm1105_vm15 = vcmp.eq.f32.partialorder %v1104_v16, 8.507059e+37 }
 0x4b7   :  { %v1486_v59 = vpop.eup %1485 }
 0x4b8   :  { %v1158_v4 = vadd.f32 1.0, %v1486_v59 }
 0x4b9   :  { %v1488_v12 = vpop.eup %1487 }
 0x4ba   :  { %v1490_v56 = vpop.eup %1489  ;;  %v1055_v38 = vmul.f32 %v1488_v12, %v1053_v63  ;;  %1491 = vrcp.f32 %v1158_v4  ;;  %vm1060_vm8 = vweird.f32 %v1488_v12  ;;  %v1170_v26 = vand.u32 2147483648, %v1158_v4 }
 0x4bb   :  { %v1096_v58 = vmul.f32 %v1490_v56, %v1094_v57  ;;  %1493 = vtanh.f32 %v1131_v51  ;;  %vm1101_vm9 = vweird.f32 %v1490_v56  ;;  %vm1061_vm12 = vmor %vm1059_vm10, %vm1060_vm8  ;;  %vm1164_vm1 = vweird.f32 %v1158_v4 }
 0x4bc   :  { %v1056_v11 = vsub.f32 1.0, %v1055_v38  ;;  %vm1102_vm13 = vmor %vm1100_vm11, %vm1101_vm9  ;;  %v1168_v27 = vand.u32 2147483647, %v1158_v4  ;;  %v1171_v29 = vor.u32 1.1754944e-38, %v1170_v26 }
 0x4bd   :  { %v1097_v6 = vsub.f32 1.0, %v1096_v58 }
 0x4be   :  { %v1057_v17 = vmul.f32 %v1488_v12, %v1056_v11  ;;  %vm1169_vm3 = vcmp.eq.f32.partialorder %v1168_v27, 8.507059e+37 }
 0x4bf   :  { %v1098_v3 = vmul.f32 %v1490_v56, %v1097_v6 }
 0x4c0   :  { %v1492_v7 = vpop.eup %1491  ;;  %v1058_v53 = vadd.f32 %v1488_v12, %v1057_v17 }
 0x4c1   :  { %v1099_v19 = vadd.f32 %v1490_v56, %v1098_v3  ;;  %v1160_v15 = vmul.f32 %v1492_v7, %v1158_v4  ;;  %v1494_v14 = vpop.eup %1493  ;;  %vm1165_vm0 = vweird.f32 %v1492_v7 }
 0x4c2   :  { %v1062_v8 = vsel %vm1061_vm12, %v1488_v12, %v1058_v53  ;;  %vm1166_vm2 = vmor %vm1164_vm1, %vm1165_vm0 }
 0x4c3   :  { %v1067_v5 = vsel %vm1064_vm14, %v1066_v2, %v1062_v8  ;;  %v1103_v18 = vsel %vm1102_vm13, %v1490_v56, %v1099_v19  ;;  %v1161_v10 = vsub.f32 1.0, %v1160_v15 }
 0x4c4   :  { %v1108_v62 = vsel %vm1105_vm15, %v1107_v45, %v1103_v18  ;;  %v1175_v21 = vmul.f32 %v1494_v14, %v1067_v5 }
 0x4c5   :  { %v1174_v22 = vmul.f32 %v1108_v62, %v2470_v31  ;;  %v1162_v23 = vmul.f32 %v1492_v7, %v1161_v10  ;;  %v1180_v31 = vld [vmem:[#allocation4 + $0xe0] sm:$0xff] }
 0x4c7   :  { %v2474_v24 = vadd.f32 %v1175_v21, %v1174_v22  ;;  %v1163_v25 = vadd.f32 %v1492_v7, %v1162_v23 }
 0x4c9   :  { %1495 = vtanh.f32 %v2474_v24  ;;  %v1167_v28 = vsel %vm1166_vm2, %v1492_v7, %v1163_v25 }
 0x4ca   :  { %v1172_v32 = vsel %vm1169_vm3, %v1171_v29, %v1167_v28 }
 0x4cf   :  { %v1496_v30 = vpop.eup %1495 }
 0x4d0   :  { %v1178_v33 = vmul.f32 %v1496_v30, %v1172_v32 }
 0x4d2   :  { %1197 = vmatmul.f32.vlgmr.msrb.gmra.mxu0 %v1178_v33  ;;  %1238 = vmatmul.f32.vlgmr.msrb.gmra.mxu1 %v1178_v33 }
 0x4d3   :  { %1279 = vmatmul.f32.vlgmr.msrb.gmra.mxu2 %v1178_v33  ;;  %1302 = vmatmul.f32.vlgmr.msrb.gmra.mxu3 %v1178_v33 }
 0x54f   :  { %v1198_v39 = vpop.f32.mrf.mxu0  ;;  %v1239_v43 = vpop.f32.mrf.mxu1 }
 0x550   :  { %v1201_v47 = vadd.f32 %v1198_v39, %v1180_v31  ;;  %v1242_v60 = vadd.f32 %v1239_v43, %v1221_v35 }
 0x552   :  { %v1376_v44 = vmul.f32 -1.442695, %v1201_v47  ;;  %v1377_v1 = vmul.f32 -1.442695, %v1242_v60 }
 0x554   :  { %1497 = vpow2.f32 %v1376_v44 }
 0x555   :  { %1499 = vpow2.f32 %v1377_v1 }
 0x556   :  { %v1303_v36 = vpop.f32.mrf.mxu3  ;;  %v1280_v54 = vpop.f32.mrf.mxu2 }
 0x557   :  { %v1306_v37 = vadd.f32 %v1303_v36, %v1285_v34  ;;  %v1283_v63 = vadd.f32 %v1280_v54, %v1262_v61 }
 0x559   :  { %v1378_v40 = vmul.f32 -1.442695, %v1306_v37 }
 0x55a   :  { %v1498_v49 = vpop.eup %1497 }
 0x55b   :  { %v1500_v46 = vpop.eup %1499  ;;  %v1205_v55 = vadd.f32 1.0, %v1498_v49  ;;  %1501 = vpow2.f32 %v1378_v40 }
 0x55c   :  { %v1246_v48 = vadd.f32 1.0, %v1500_v46 }
 0x55d   :  { %1503 = vrcp.f32 %v1205_v55  ;;  %v1217_v12 = vand.u32 2147483648, %v1205_v55  ;;  %v1215_v38 = vand.u32 2147483647, %v1205_v55  ;;  %vm1211_vm6 = vweird.f32 %v1205_v55 }
 0x55e   :  { %1505 = vrcp.f32 %v1246_v48  ;;  %v1258_v51 = vand.u32 2147483648, %v1246_v48  ;;  %v1256_v11 = vand.u32 2147483647, %v1246_v48  ;;  %vm1252_vm7 = vweird.f32 %v1246_v48 }
 0x55f   :  { %v1218_v20 = vor.u32 1.1754944e-38, %v1217_v12  ;;  %vm1216_vm10 = vcmp.eq.f32.partialorder %v1215_v38, 8.507059e+37 }
 0x560   :  { %v1259_v3 = vor.u32 1.1754944e-38, %v1258_v51  ;;  %vm1257_vm11 = vcmp.eq.f32.partialorder %v1256_v11, 8.507059e+37 }
 0x561   :  { %v1502_v50 = vpop.eup %1501 }
 0x562   :  { %v1310_v42 = vadd.f32 1.0, %v1502_v50 }
 0x563   :  { %v1504_v52 = vpop.eup %1503 }
 0x564   :  { %v1506_v57 = vpop.eup %1505  ;;  %v1207_v0 = vmul.f32 %v1504_v52, %v1205_v55  ;;  %1507 = vrcp.f32 %v1310_v42  ;;  %vm1212_vm4 = vweird.f32 %v1504_v52  ;;  %v1322_v10 = vand.u32 2147483648, %v1310_v42 }
 0x565   :  { %v1248_v41 = vmul.f32 %v1506_v57, %v1246_v48  ;;  %1509 = vtanh.f32 %v1283_v63  ;;  %vm1253_vm5 = vweird.f32 %v1506_v57  ;;  %vm1213_vm8 = vmor %vm1211_vm6, %vm1212_vm4  ;;  %vm1316_vm13 = vweird.f32 %v1310_v42 }
 0x566   :  { %v1208_v59 = vsub.f32 1.0, %v1207_v0  ;;  %vm1254_vm9 = vmor %vm1252_vm7, %vm1253_vm5  ;;  %v1320_v62 = vand.u32 2147483647, %v1310_v42  ;;  %v1323_v22 = vor.u32 1.1754944e-38, %v1322_v10 }
 0x567   :  { %v1249_v4 = vsub.f32 1.0, %v1248_v41 }
 0x568   :  { %v1209_v56 = vmul.f32 %v1504_v52, %v1208_v59  ;;  %vm1321_vm15 = vcmp.eq.f32.partialorder %v1320_v62, 8.507059e+37 }
 0x569   :  { %v1250_v58 = vmul.f32 %v1506_v57, %v1249_v4 }
 0x56a   :  { %v1508_v6 = vpop.eup %1507  ;;  %v1210_v13 = vadd.f32 %v1504_v52, %v1209_v56 }
 0x56b   :  { %v1251_v17 = vadd.f32 %v1506_v57, %v1250_v58  ;;  %v1312_v9 = vmul.f32 %v1508_v6, %v1310_v42  ;;  %v1510_v7 = vpop.eup %1509  ;;  %vm1317_vm12 = vweird.f32 %v1508_v6 }
 0x56c   :  { %v1214_v16 = vsel %vm1213_vm8, %v1504_v52, %v1210_v13  ;;  %vm1318_vm14 = vmor %vm1316_vm13, %vm1317_vm12 }
 0x56d   :  { %v1219_v53 = vsel %vm1216_vm10, %v1218_v20, %v1214_v16  ;;  %v1255_v2 = vsel %vm1254_vm9, %v1506_v57, %v1251_v17  ;;  %v1313_v19 = vsub.f32 1.0, %v1312_v9 }
 0x56e   :  { %v1260_v15 = vsel %vm1257_vm11, %v1259_v3, %v1255_v2  ;;  %v1327_v45 = vmul.f32 %v1510_v7, %v1219_v53 }
 0x56f   :  { %v1326_v8 = vmul.f32 %v1260_v15, %v2474_v24  ;;  %v1314_v14 = vmul.f32 %v1508_v6, %v1313_v19 }
 0x571   :  { %v1328_v5 = vadd.f32 %v1327_v45, %v1326_v8  ;;  %v1315_v18 = vadd.f32 %v1508_v6, %v1314_v14 }
 0x573   :  { %1511 = vtanh.f32 %v1328_v5  ;;  %v1319_v21 = vsel %vm1318_vm14, %v1508_v6, %v1315_v18 }
 0x574   :  { %v1324_v24 = vsel %vm1321_vm15, %v1323_v22, %v1319_v21 }
 0x579   :  { %v1512_v23 = vpop.eup %1511 }
 0x57a   :  { %v1330_v25 = vmul.f32 %v1512_v23, %v1324_v24 }
 0x57c   :  { %1336 = vst [vmem:[#allocation9] sm:$0xff] %v1330_v25 }
 0x57d   :  { %1347 = dma.vmem_to_hbm [thread:$0]  %s1343_s1, 128, %s1345_s23, [#allocation6]  }
 0x57e   :  { %1653 = dma.done.wait [#allocation6], 128  }
 0x57f   :  { %1654 = vsyncadd [#allocation6], 4294967168 }
 0x580   :  { %1352 = vsyncpa [#allocation5], 1 }
 0x581   :  { %1353 = vsyncpa [#allocation8], 1 }
 0x582   :  { %1354 = vsyncpa [#allocation6], 1 }

// kernel: tpu_custom_call.1
= control target key start
LH: loop header
LB: loop body
LE: loop exit
PB: predicated region body
PF: predicated region fallthrough
CT: control target
= control target key end

     0   :  { %7 = vsyncpa [#allocation5], 0  ;;  %s2481_s0 = inlined_call_operand.hbm [shape: f32[8,8,512], index: 0, kind: input, shape index: {}]   ;;  %s2482_s1 = inlined_call_operand.hbm [shape: f32[128,512], index: 1, kind: input, shape index: {}]   ;;  %s2483_s2 = inlined_call_operand.hbm [shape: f32[8,128], index: 2, kind: output, shape index: {}]  }
   0x1   :  { %8 = vsyncpa [#allocation8], 0 }
   0x2   :  { %9 = vsyncpa [#allocation6], 0  ;;  %s14_s11 = sshll.u32 %s2481_s0, 4  ;;  %s1655_s12 = smov [#allocation4]   ;;  %s15_s11 = int_to_ptr.hbm [resolvable:$true] %s14_s11 }
   0x3   :  { %s16_s13 = sshll.u32 %s1655_s12, 4  ;;  %s27_s16 = sshll.u32 %s2482_s1, 4  ;;  %s17_s13 = int_to_ptr.vmem [resolvable:$true] %s16_s13  ;;  %s28_s16 = int_to_ptr.hbm [resolvable:$true] %s27_s16 }
   0x4   :  { %s1656_s17 = smov 512   ;;  %s1657_s18 = smov 32  }
   0x5   :  { %22 = dma.hbm_to_vmem [thread:$0]  %s15_s11, 4096, %s17_s13, [#allocation5], %s1656_s17, %s1656_s17, %s1657_s18  }
   0x6   :  { %s1658_s19 = smov [#allocation7]  }
   0x7   :  { %s29_s20 = sshll.u32 %s1658_s19, 4  ;;  %s30_s20 = int_to_ptr.vmem [resolvable:$true] %s29_s20 }
   0x8   :  { %35 = dma.hbm_to_vmem [thread:$0]  %s28_s16, 8192, %s30_s20, [#allocation8], %s1656_s17, %s1656_s17, %s1657_s18  }
   0x9   :  { %1649 = dma.done.wait [#allocation5], 4096  }
   0xa   :  { %1650 = vsyncadd [#allocation5], 4294963200 }
   0xb   :  { %1651 = dma.done.wait [#allocation8], 8192  }
   0xc   :  { %1652 = vsyncadd [#allocation8], 4294959104  ;;  %v1682_v0 = vld [vmem:[#allocation7 + $0x1e0] sm:$0xff]  ;;  %v1684_v1 = vld [vmem:[#allocation7 + $0x1e8] sm:$0xff]  ;;  %v1659_v60 = vmov 0.0   ;;  %s1660_s0 = smov [#allocation9]  }
   0xd   :  { %2590 = vst [vmem:[#allocation13_spill] sm:$0xff] %v1682_v0  ;;  %v1686_v2 = vld [vmem:[#allocation7 + $0x1f8] sm:$0xff]  ;;  %69 = vmatpush.msra.mxu0 %v1682_v0  ;;  %126 = vmatpush.msra.mxu1 %v1684_v1  ;;  %v1690_v3 = vld [vmem:[#allocation7 + $0x1c0] sm:$0xff]  ;;  %v1692_v4 = vld [vmem:[#allocation7 + $0x1c8] sm:$0xff]  ;;  %s1342_s1 = sshll.u32 %s1660_s0, 4  ;;  %s1344_s23 = sshll.u32 %s2483_s2, 4  ;;  %s1343_s1 = int_to_ptr.vmem [resolvable:$true] %s1342_s1  ;;  %s1345_s23 = int_to_ptr.hbm [resolvable:$true] %s1344_s23 }
   0xe   :  { %v1694_v5 = vld [vmem:[#allocation7 + $0x1d8] sm:$0xff]  ;;  %222 = vmatpush.msra.mxu3 %v1686_v2  ;;  %v1697_v6 = vld [vmem:[#allocation7 + $0x1a0] sm:$0xff]  ;;  %v1699_v7 = vld [vmem:[#allocation7 + $0x1a8] sm:$0xff] }
   0xf   :  { %70 = vmatpush.msra.mxu0 %v1690_v3  ;;  %127 = vmatpush.msra.mxu1 %v1692_v4  ;;  %v1703_v8 = vld [vmem:[#allocation7 + $0x1b8] sm:$0xff]  ;;  %v1706_v9 = vld [vmem:[#allocation7 + $0x180] sm:$0xff]  ;;  %v1708_v10 = vld [vmem:[#allocation7 + $0x188] sm:$0xff] }
  0x10   :  { %223 = vmatpush.msra.mxu3 %v1694_v5  ;;  %v1712_v11 = vld [vmem:[#allocation7 + $0x198] sm:$0xff]  ;;  %v1715_v12 = vld [vmem:[#allocation7 + $0x160] sm:$0xff]  ;;  %v1717_v13 = vld [vmem:[#allocation7 + $0x168] sm:$0xff] }
  0x11   :  { %71 = vmatpush.msra.mxu0 %v1697_v6  ;;  %128 = vmatpush.msra.mxu1 %v1699_v7  ;;  %v1721_v14 = vld [vmem:[#allocation7 + $0x178] sm:$0xff]  ;;  %v1724_v15 = vld [vmem:[#allocation7 + $0x140] sm:$0xff]  ;;  %v1726_v16 = vld [vmem:[#allocation7 + $0x148] sm:$0xff] }
  0x12   :  { %224 = vmatpush.msra.mxu3 %v1703_v8  ;;  %v1728_v17 = vld [vmem:[#allocation7 + $0x1f0] sm:$0xff]  ;;  %v1732_v18 = vld [vmem:[#allocation7 + $0x158] sm:$0xff]  ;;  %v1737_v20 = vld [vmem:[#allocation7 + $0x120] sm:$0xff] }
  0x13   :  { %72 = vmatpush.msra.mxu0 %v1706_v9  ;;  %129 = vmatpush.msra.mxu1 %v1708_v10  ;;  %v1734_v19 = vld [vmem:[#allocation7 + $0x1d0] sm:$0xff]  ;;  %v1739_v21 = vld [vmem:[#allocation7 + $0x128] sm:$0xff]  ;;  %v1744_v22 = vld [vmem:[#allocation7 + $0x138] sm:$0xff] }
  0x14   :  { %225 = vmatpush.msra.mxu3 %v1712_v11  ;;  %183 = vmatpush.msra.mxu2 %v1728_v17  ;;  %v1746_v23 = vld [vmem:[#allocation7 + $0x1b0] sm:$0xff]  ;;  %v1749_v24 = vld [vmem:[#allocation7 + $0x100] sm:$0xff]  ;;  %v1751_v25 = vld [vmem:[#allocation7 + $0x108] sm:$0xff] }
  0x15   :  { %73 = vmatpush.msra.mxu0 %v1715_v12  ;;  %130 = vmatpush.msra.mxu1 %v1717_v13  ;;  %v1756_v26 = vld [vmem:[#allocation7 + $0x118] sm:$0xff]  ;;  %v1758_v27 = vld [vmem:[#allocation7 + $0x190] sm:$0xff]  ;;  %v1761_v28 = vld [vmem:[#allocation7 + $0xe0] sm:$0xff] }
  0x16   :  { %226 = vmatpush.msra.mxu3 %v1721_v14  ;;  %184 = vmatpush.msra.mxu2 %v1734_v19  ;;  %v1763_v29 = vld [vmem:[#allocation7 + $0xe8] sm:$0xff]  ;;  %v1768_v30 = vld [vmem:[#allocation7 + $0xf8] sm:$0xff]  ;;  %v1770_v31 = vld [vmem:[#allocation7 + $0x170] sm:$0xff] }
  0x17   :  { %74 = vmatpush.msra.mxu0 %v1724_v15  ;;  %131 = vmatpush.msra.mxu1 %v1726_v16  ;;  %v1773_v32 = vld [vmem:[#allocation7 + $0xc0] sm:$0xff]  ;;  %v1775_v33 = vld [vmem:[#allocation7 + $0xc8] sm:$0xff]  ;;  %v1780_v34 = vld [vmem:[#allocation7 + $0xd8] sm:$0xff] }
  0x18   :  { %227 = vmatpush.msra.mxu3 %v1732_v18  ;;  %185 = vmatpush.msra.mxu2 %v1746_v23  ;;  %2591 = vst [vmem:[#allocation14_spill] sm:$0xff] %v1780_v34  ;;  %v1782_v35 = vld [vmem:[#allocation7 + $0x150] sm:$0xff]  ;;  %v1785_v36 = vld [vmem:[#allocation7 + $0xa0] sm:$0xff]  ;;  %v1787_v37 = vld [vmem:[#allocation7 + $0xa8] sm:$0xff] }
  0x19   :  { %75 = vmatpush.msra.mxu0 %v1737_v20  ;;  %132 = vmatpush.msra.mxu1 %v1739_v21  ;;  %2592 = vst [vmem:[#allocation15_spill] sm:$0xff] %v1785_v36  ;;  %v1792_v38 = vld [vmem:[#allocation7 + $0xb8] sm:$0xff]  ;;  %v1794_v39 = vld [vmem:[#allocation7 + $0x130] sm:$0xff]  ;;  %v1797_v40 = vld [vmem:[#allocation7 + $0x80] sm:$0xff] }
  0x1a   :  { %228 = vmatpush.msra.mxu3 %v1744_v22  ;;  %186 = vmatpush.msra.mxu2 %v1758_v27  ;;  %2593 = vst [vmem:[#allocation16_spill] sm:$0xff] %v1787_v37  ;;  %v1799_v41 = vld [vmem:[#allocation7 + $0x88] sm:$0xff]  ;;  %v1804_v42 = vld [vmem:[#allocation7 + $0x98] sm:$0xff]  ;;  %v1806_v43 = vld [vmem:[#allocation7 + $0x110] sm:$0xff] }
  0x1b   :  { %76 = vmatpush.msra.mxu0 %v1749_v24  ;;  %133 = vmatpush.msra.mxu1 %v1751_v25  ;;  %2594 = vst [vmem:[#allocation17_spill] sm:$0xff] %v1792_v38  ;;  %v1809_v44 = vld [vmem:[#allocation7 + $0x60] sm:$0xff]  ;;  %v1811_v45 = vld [vmem:[#allocation7 + $0x68] sm:$0xff]  ;;  %v1816_v46 = vld [vmem:[#allocation7 + $0x78] sm:$0xff] }
  0x1c   :  { %229 = vmatpush.msra.mxu3 %v1756_v26  ;;  %187 = vmatpush.msra.mxu2 %v1770_v31  ;;  %2595 = vst [vmem:[#allocation18_spill] sm:$0xff] %v1797_v40  ;;  %v1818_v47 = vld [vmem:[#allocation7 + $0xf0] sm:$0xff]  ;;  %v1821_v48 = vld [vmem:[#allocation7 + $0x40] sm:$0xff]  ;;  %v1823_v49 = vld [vmem:[#allocation7 + $0x48] sm:$0xff] }
  0x1d   :  { %77 = vmatpush.msra.mxu0 %v1761_v28  ;;  %134 = vmatpush.msra.mxu1 %v1763_v29  ;;  %2596 = vst [vmem:[#allocation19_spill] sm:$0xff] %v1799_v41  ;;  %v1828_v50 = vld [vmem:[#allocation7 + $0x58] sm:$0xff]  ;;  %v1830_v51 = vld [vmem:[#allocation7 + $0xd0] sm:$0xff]  ;;  %v1833_v52 = vld [vmem:[#allocation7 + $0x20] sm:$0xff] }
  0x1e   :  { %230 = vmatpush.msra.mxu3 %v1768_v30  ;;  %188 = vmatpush.msra.mxu2 %v1782_v35  ;;  %2597 = vst [vmem:[#allocation20_spill] sm:$0xff] %v1804_v42  ;;  %v1835_v53 = vld [vmem:[#allocation7 + $0x28] sm:$0xff]  ;;  %v1840_v54 = vld [vmem:[#allocation7 + $0x38] sm:$0xff]  ;;  %v1842_v55 = vld [vmem:[#allocation7 + $0xb0] sm:$0xff] }
  0x1f   :  { %78 = vmatpush.msra.mxu0 %v1773_v32  ;;  %135 = vmatpush.msra.mxu1 %v1775_v33  ;;  %2598 = vst [vmem:[#allocation21_spill] sm:$0xff] %v1809_v44  ;;  %v1845_v56 = vld [vmem:[#allocation7] sm:$0xff]  ;;  %v1847_v57 = vld [vmem:[#allocation7 + $0x8] sm:$0xff]  ;;  %v1852_v58 = vld [vmem:[#allocation7 + $0x18] sm:$0xff] }
  0x20   :  { %231 = vmatpush.msra.mxu3 %v1780_v34  ;;  %2599 = vst [vmem:[#allocation22_spill] sm:$0xff] %v1811_v45  ;;  %189 = vmatpush.msra.mxu2 %v1794_v39  ;;  %v1858_v59 = vld [vmem:[#allocation7 + $0x90] sm:$0xff] }
  0x21   :  { %79 = vmatpush.msra.mxu0 %v1785_v36  ;;  %136 = vmatpush.msra.mxu1 %v1787_v37  ;;  %2600 = vst [vmem:[#allocation23_spill] sm:$0xff] %v1816_v46  ;;  %v1861_v61 = vld [vmem:[#allocation7 + $0x70] sm:$0xff] }
  0x22   :  { %232 = vmatpush.msra.mxu3 %v1792_v38  ;;  %2601 = vst [vmem:[#allocation24_spill] sm:$0xff] %v1821_v48  ;;  %190 = vmatpush.msra.mxu2 %v1806_v43  ;;  %v1865_v62 = vld [vmem:[#allocation7 + $0x50] sm:$0xff] }
  0x23   :  { %80 = vmatpush.msra.mxu0 %v1797_v40  ;;  %137 = vmatpush.msra.mxu1 %v1799_v41  ;;  %2602 = vst [vmem:[#allocation25_spill] sm:$0xff] %v1823_v49  ;;  %v1871_v63 = vld [vmem:[#allocation7 + $0x30] sm:$0xff] }
  0x24   :  { %233 = vmatpush.msra.mxu3 %v1804_v42  ;;  %2603 = vst [vmem:[#allocation26_spill] sm:$0xff] %v1828_v50  ;;  %191 = vmatpush.msra.mxu2 %v1818_v47 }
  0x25   :  { %81 = vmatpush.msra.mxu0 %v1809_v44  ;;  %138 = vmatpush.msra.mxu1 %v1811_v45  ;;  %2604 = vst [vmem:[#allocation27_spill] sm:$0xff] %v1830_v51 }
  0x26   :  { %234 = vmatpush.msra.mxu3 %v1816_v46  ;;  %2605 = vst [vmem:[#allocation28_spill] sm:$0xff] %v1833_v52  ;;  %192 = vmatpush.msra.mxu2 %v1830_v51 }
  0x27   :  { %2606 = vst [vmem:[#allocation29_spill] sm:$0xff] %v1835_v53  ;;  %82 = vmatpush.msra.mxu0 %v1821_v48  ;;  %139 = vmatpush.msra.mxu1 %v1823_v49 }
  0x28   :  { %2607 = vst [vmem:[#allocation30_spill] sm:$0xff] %v1840_v54  ;;  %235 = vmatpush.msra.mxu3 %v1828_v50  ;;  %193 = vmatpush.msra.mxu2 %v1842_v55 }
  0x29   :  { %2608 = vst [vmem:[#allocation31_spill] sm:$0xff] %v1842_v55  ;;  %83 = vmatpush.msra.mxu0 %v1833_v52  ;;  %140 = vmatpush.msra.mxu1 %v1835_v53 }
  0x2a   :  { %2609 = vst [vmem:[#allocation32_spill] sm:$0xff] %v1845_v56  ;;  %236 = vmatpush.msra.mxu3 %v1840_v54  ;;  %194 = vmatpush.msra.mxu2 %v1858_v59 }
  0x2b   :  { %2610 = vst [vmem:[#allocation33_spill] sm:$0xff] %v1847_v57  ;;  %84 = vmatpush.msra.mxu0 %v1845_v56  ;;  %141 = vmatpush.msra.mxu1 %v1847_v57 }
  0x2c   :  { %2611 = vst [vmem:[#allocation34_spill] sm:$0xff] %v1852_v58  ;;  %237 = vmatpush.msra.mxu3 %v1852_v58  ;;  %85 = vmatmul.f32.vlgmr.msra.gmra.mxu0 %v1659_v60 }
  0x2d   :  { %2612 = vst [vmem:[#allocation35_spill] sm:$0xff] %v1858_v59  ;;  %142 = vmatmul.f32.vlgmr.msra.gmra.mxu1 %v1659_v60  ;;  %238 = vmatmul.f32.vlgmr.msra.gmra.mxu3 %v1659_v60 }
  0x2e   :  { %2613 = vst [vmem:[#allocation36_spill] sm:$0xff] %v1861_v61  ;;  %269 = vmatpush.msrb.mxu0 %v1682_v0  ;;  %310 = vmatpush.msrb.mxu1 %v1684_v1  ;;  %v1877_v0 = vld [vmem:[#allocation7 + $0x10] sm:$0xff] }
  0x2f   :  { %2614 = vst [vmem:[#allocation37_spill] sm:$0xff] %v1865_v62  ;;  %374 = vmatpush.msrb.mxu3 %v1686_v2  ;;  %195 = vmatpush.msra.mxu2 %v1861_v61 }
  0x30   :  { %270 = vmatpush.msrb.mxu0 %v1690_v3  ;;  %2615 = vst [vmem:[#allocation38_spill] sm:$0xff] %v1871_v63  ;;  %311 = vmatpush.msrb.mxu1 %v1692_v4 }
  0x31   :  { %375 = vmatpush.msrb.mxu3 %v1694_v5  ;;  %196 = vmatpush.msra.mxu2 %v1865_v62  ;;  %2616 = vst [vmem:[#allocation39_spill] sm:$0xff] %v1877_v0 }
  0x32   :  { %271 = vmatpush.msrb.mxu0 %v1697_v6  ;;  %312 = vmatpush.msrb.mxu1 %v1699_v7 }
  0x33   :  { %376 = vmatpush.msrb.mxu3 %v1703_v8  ;;  %197 = vmatpush.msra.mxu2 %v1871_v63 }
  0x34   :  { %272 = vmatpush.msrb.mxu0 %v1706_v9  ;;  %313 = vmatpush.msrb.mxu1 %v1708_v10 }
  0x35   :  { %377 = vmatpush.msrb.mxu3 %v1712_v11  ;;  %198 = vmatpush.msra.mxu2 %v1877_v0 }
  0x36   :  { %273 = vmatpush.msrb.mxu0 %v1715_v12  ;;  %199 = vmatmul.f32.vlgmr.msra.gmra.mxu2 %v1659_v60  ;;  %v2617_v60 = vld [vmem:[#allocation13_spill] sm:$0xff] }
  0x37   :  { %314 = vmatpush.msrb.mxu1 %v1717_v13  ;;  %351 = vmatpush.msrb.mxu2 %v1728_v17 }
  0x38   :  { %378 = vmatpush.msrb.mxu3 %v1721_v14  ;;  %274 = vmatpush.msrb.mxu0 %v1724_v15 }
  0x39   :  { %315 = vmatpush.msrb.mxu1 %v1726_v16  ;;  %352 = vmatpush.msrb.mxu2 %v1734_v19 }
  0x3a   :  { %379 = vmatpush.msrb.mxu3 %v1732_v18  ;;  %275 = vmatpush.msrb.mxu0 %v1737_v20 }
  0x3b   :  { %316 = vmatpush.msrb.mxu1 %v1739_v21  ;;  %353 = vmatpush.msrb.mxu2 %v1746_v23 }
  0x3c   :  { %380 = vmatpush.msrb.mxu3 %v1744_v22  ;;  %276 = vmatpush.msrb.mxu0 %v1749_v24 }
  0x3d   :  { %317 = vmatpush.msrb.mxu1 %v1751_v25  ;;  %354 = vmatpush.msrb.mxu2 %v1758_v27 }
  0x3e   :  { %381 = vmatpush.msrb.mxu3 %v1756_v26  ;;  %277 = vmatpush.msrb.mxu0 %v1761_v28 }
  0x3f   :  { %318 = vmatpush.msrb.mxu1 %v1763_v29  ;;  %355 = vmatpush.msrb.mxu2 %v1770_v31 }
  0x40   :  { %382 = vmatpush.msrb.mxu3 %v1768_v30  ;;  %278 = vmatpush.msrb.mxu0 %v1773_v32 }
  0x41   :  { %319 = vmatpush.msrb.mxu1 %v1775_v33  ;;  %356 = vmatpush.msrb.mxu2 %v1782_v35 }
  0x42   :  { %383 = vmatpush.msrb.mxu3 %v1780_v34  ;;  %279 = vmatpush.msrb.mxu0 %v1785_v36 }
  0x43   :  { %320 = vmatpush.msrb.mxu1 %v1787_v37  ;;  %357 = vmatpush.msrb.mxu2 %v1794_v39 }
  0x44   :  { %384 = vmatpush.msrb.mxu3 %v1792_v38  ;;  %280 = vmatpush.msrb.mxu0 %v1797_v40 }
  0x45   :  { %321 = vmatpush.msrb.mxu1 %v1799_v41  ;;  %358 = vmatpush.msrb.mxu2 %v1806_v43 }
  0x46   :  { %385 = vmatpush.msrb.mxu3 %v1804_v42  ;;  %281 = vmatpush.msrb.mxu0 %v1809_v44 }
  0x47   :  { %322 = vmatpush.msrb.mxu1 %v1811_v45  ;;  %359 = vmatpush.msrb.mxu2 %v1818_v47 }
  0x48   :  { %386 = vmatpush.msrb.mxu3 %v1816_v46  ;;  %282 = vmatpush.msrb.mxu0 %v1821_v48 }
  0x49   :  { %323 = vmatpush.msrb.mxu1 %v1823_v49  ;;  %360 = vmatpush.msrb.mxu2 %v1830_v51 }
  0x4a   :  { %387 = vmatpush.msrb.mxu3 %v1828_v50  ;;  %283 = vmatpush.msrb.mxu0 %v1833_v52 }
  0x4b   :  { %324 = vmatpush.msrb.mxu1 %v1835_v53  ;;  %361 = vmatpush.msrb.mxu2 %v1842_v55 }
  0x4c   :  { %388 = vmatpush.msrb.mxu3 %v1840_v54  ;;  %284 = vmatpush.msrb.mxu0 %v1845_v56 }
  0x4d   :  { %325 = vmatpush.msrb.mxu1 %v1847_v57  ;;  %362 = vmatpush.msrb.mxu2 %v1858_v59 }
  0x4e   :  { %389 = vmatpush.msrb.mxu3 %v1852_v58  ;;  %421 = vmatpush.msra.mxu0 %v2617_v60 }
  0x4f   :  { %462 = vmatpush.msra.mxu1 %v1684_v1  ;;  %363 = vmatpush.msrb.mxu2 %v1861_v61 }
  0x50   :  { %526 = vmatpush.msra.mxu3 %v1686_v2  ;;  %422 = vmatpush.msra.mxu0 %v1690_v3 }
  0x51   :  { %463 = vmatpush.msra.mxu1 %v1692_v4  ;;  %364 = vmatpush.msrb.mxu2 %v1865_v62 }
  0x52   :  { %527 = vmatpush.msra.mxu3 %v1694_v5  ;;  %423 = vmatpush.msra.mxu0 %v1697_v6 }
  0x53   :  { %464 = vmatpush.msra.mxu1 %v1699_v7  ;;  %365 = vmatpush.msrb.mxu2 %v1871_v63 }
  0x54   :  { %528 = vmatpush.msra.mxu3 %v1703_v8  ;;  %424 = vmatpush.msra.mxu0 %v1706_v9 }
  0x55   :  { %465 = vmatpush.msra.mxu1 %v1708_v10  ;;  %366 = vmatpush.msrb.mxu2 %v1877_v0 }
  0x56   :  { %529 = vmatpush.msra.mxu3 %v1712_v11  ;;  %425 = vmatpush.msra.mxu0 %v1715_v12 }
  0x57   :  { %503 = vmatpush.msra.mxu2 %v1728_v17  ;;  %466 = vmatpush.msra.mxu1 %v1717_v13 }
  0x58   :  { %530 = vmatpush.msra.mxu3 %v1721_v14  ;;  %426 = vmatpush.msra.mxu0 %v1724_v15 }
  0x59   :  { %504 = vmatpush.msra.mxu2 %v1734_v19  ;;  %467 = vmatpush.msra.mxu1 %v1726_v16 }
  0x5a   :  { %531 = vmatpush.msra.mxu3 %v1732_v18  ;;  %427 = vmatpush.msra.mxu0 %v1737_v20 }
  0x5b   :  { %505 = vmatpush.msra.mxu2 %v1746_v23  ;;  %468 = vmatpush.msra.mxu1 %v1739_v21 }
  0x5c   :  { %532 = vmatpush.msra.mxu3 %v1744_v22  ;;  %428 = vmatpush.msra.mxu0 %v1749_v24 }
  0x5d   :  { %506 = vmatpush.msra.mxu2 %v1758_v27  ;;  %469 = vmatpush.msra.mxu1 %v1751_v25 }
  0x5e   :  { %533 = vmatpush.msra.mxu3 %v1756_v26  ;;  %429 = vmatpush.msra.mxu0 %v1761_v28 }
  0x5f   :  { %507 = vmatpush.msra.mxu2 %v1770_v31  ;;  %470 = vmatpush.msra.mxu1 %v1763_v29 }
  0x60   :  { %534 = vmatpush.msra.mxu3 %v1768_v30  ;;  %430 = vmatpush.msra.mxu0 %v1773_v32 }
  0x61   :  { %508 = vmatpush.msra.mxu2 %v1782_v35  ;;  %471 = vmatpush.msra.mxu1 %v1775_v33 }
  0x62   :  { %535 = vmatpush.msra.mxu3 %v1780_v34  ;;  %431 = vmatpush.msra.mxu0 %v1785_v36 }
  0x63   :  { %509 = vmatpush.msra.mxu2 %v1794_v39  ;;  %472 = vmatpush.msra.mxu1 %v1787_v37 }
  0x64   :  { %536 = vmatpush.msra.mxu3 %v1792_v38  ;;  %432 = vmatpush.msra.mxu0 %v1797_v40 }
  0x65   :  { %510 = vmatpush.msra.mxu2 %v1806_v43  ;;  %473 = vmatpush.msra.mxu1 %v1799_v41 }
  0x66   :  { %537 = vmatpush.msra.mxu3 %v1804_v42  ;;  %433 = vmatpush.msra.mxu0 %v1809_v44 }
  0x67   :  { %511 = vmatpush.msra.mxu2 %v1818_v47  ;;  %474 = vmatpush.msra.mxu1 %v1811_v45 }
  0x68   :  { %538 = vmatpush.msra.mxu3 %v1816_v46  ;;  %434 = vmatpush.msra.mxu0 %v1821_v48 }
  0x69   :  { %512 = vmatpush.msra.mxu2 %v1830_v51  ;;  %475 = vmatpush.msra.mxu1 %v1823_v49 }
  0x6a   :  { %539 = vmatpush.msra.mxu3 %v1828_v50  ;;  %435 = vmatpush.msra.mxu0 %v1833_v52  ;;  %v52_v52 = vld [vmem:[#allocation4] sm:$0xff] }
  0x6b   :  { %513 = vmatpush.msra.mxu2 %v1842_v55  ;;  %476 = vmatpush.msra.mxu1 %v1835_v53  ;;  %v109_v53 = vld [vmem:[#allocation4 + $0x8] sm:$0xff] }
  0x6c   :  { %540 = vmatpush.msra.mxu3 %v1840_v54  ;;  %436 = vmatpush.msra.mxu0 %v1845_v56 }
  0x6d   :  { %514 = vmatpush.msra.mxu2 %v1858_v59  ;;  %477 = vmatpush.msra.mxu1 %v1847_v57  ;;  %v205_v57 = vld [vmem:[#allocation4 + $0x18] sm:$0xff] }
  0x6e   :  { %541 = vmatpush.msra.mxu3 %v1852_v58 }
  0x6f   :  { %515 = vmatpush.msra.mxu2 %v1861_v61 }
  0x71   :  { %516 = vmatpush.msra.mxu2 %v1865_v62 }
  0x73   :  { %517 = vmatpush.msra.mxu2 %v1871_v63 }
  0x75   :  { %518 = vmatpush.msra.mxu2 %v1877_v0  ;;  %v166_v0 = vld [vmem:[#allocation4 + $0x10] sm:$0xff] }
  0xa9   :  { %v86_v50 = vpop.f32.mrf.mxu0 }
  0xaa   :  { %v89_v54 = vadd.f32 %v86_v50, %v52_v52  ;;  %v143_v49 = vpop.f32.mrf.mxu1 }
  0xab   :  { %v146_v48 = vadd.f32 %v143_v49, %v109_v53 }
  0xac   :  { %v1355_v46 = vmul.f32 -1.442695, %v89_v54 }
  0xad   :  { %v1356_v56 = vmul.f32 -1.442695, %v146_v48 }
  0xae   :  { %1385 = vpow2.f32 %v1355_v46 }
  0xaf   :  { %1387 = vpow2.f32 %v1356_v56 }
  0xb0   :  { %v239_v58 = vpop.f32.mrf.mxu3 }
  0xb1   :  { %v242_v45 = vadd.f32 %v239_v58, %v205_v57 }
  0xb3   :  { %v1357_v61 = vmul.f32 -1.442695, %v242_v45 }
  0xb4   :  { %v1386_v44 = vpop.eup %1385 }
  0xb5   :  { %v1388_v62 = vpop.eup %1387  ;;  %v93_v42 = vadd.f32 1.0, %v1386_v44  ;;  %1389 = vpow2.f32 %v1357_v61 }
  0xb6   :  { %v150_v63 = vadd.f32 1.0, %v1388_v62 }
  0xb7   :  { %1391 = vrcp.f32 %v93_v42  ;;  %v105_v57 = vand.u32 2147483648, %v93_v42  ;;  %v103_v61 = vand.u32 2147483647, %v93_v42  ;;  %vm99_vm2 = vweird.f32 %v93_v42 }
  0xb8   :  { %1393 = vrcp.f32 %v150_v63  ;;  %v162_v58 = vand.u32 2147483648, %v150_v63  ;;  %v160_v41 = vand.u32 2147483647, %v150_v63  ;;  %vm156_vm3 = vweird.f32 %v150_v63 }
  0xb9   :  { %v200_v59 = vpop.f32.mrf.mxu2  ;;  %vm104_vm5 = vcmp.eq.f32.partialorder %v103_v61, 8.507059e+37  ;;  %v2625_v61 = vld [vmem:[#allocation19_spill] sm:$0xff] }
  0xba   :  { %v203_v52 = vadd.f32 %v200_v59, %v166_v0  ;;  %vm161_vm7 = vcmp.eq.f32.partialorder %v160_v41, 8.507059e+37 }
  0xbb   :  { %v1390_v50 = vpop.eup %1389 }
  0xbc   :  { %v246_v49 = vadd.f32 1.0, %v1390_v50  ;;  %v106_v50 = vor.u32 1.1754944e-38, %v105_v57 }
  0xbd   :  { %v1392_v53 = vpop.eup %1391 }
  0xbe   :  { %v1394_v48 = vpop.eup %1393  ;;  %v95_v46 = vmul.f32 %v1392_v53, %v93_v42  ;;  %1395 = vrcp.f32 %v246_v49  ;;  %vm100_vm0 = vweird.f32 %v1392_v53  ;;  %vm252_vm9 = vweird.f32 %v246_v49 }
  0xbf   :  { %v152_v54 = vmul.f32 %v1394_v48, %v150_v63  ;;  %1397 = vtanh.f32 %v203_v52  ;;  %vm157_vm1 = vweird.f32 %v1394_v48  ;;  %vm101_vm4 = vmor %vm99_vm2, %vm100_vm0  ;;  %v163_v52 = vor.u32 1.1754944e-38, %v162_v58 }
  0xc0   :  { %v96_v56 = vsub.f32 1.0, %v95_v46  ;;  %vm158_vm6 = vmor %vm156_vm3, %vm157_vm1  ;;  %v258_v63 = vand.u32 2147483648, %v246_v49  ;;  %v256_v57 = vand.u32 2147483647, %v246_v49 }
  0xc1   :  { %v153_v45 = vsub.f32 1.0, %v152_v54 }
  0xc2   :  { %v97_v44 = vmul.f32 %v1392_v53, %v96_v56  ;;  %vm257_vm11 = vcmp.eq.f32.partialorder %v256_v57, 8.507059e+37  ;;  %v2637_v57 = vld [vmem:[#allocation29_spill] sm:$0xff] }
  0xc3   :  { %v154_v62 = vmul.f32 %v1394_v48, %v153_v45 }
  0xc4   :  { %v1396_v40 = vpop.eup %1395  ;;  %v98_v38 = vadd.f32 %v1392_v53, %v97_v44 }
  0xc5   :  { %v1398_v0 = vpop.eup %1397  ;;  %v248_v59 = vmul.f32 %v1396_v40, %v246_v49  ;;  %v155_v55 = vadd.f32 %v1394_v48, %v154_v62  ;;  %vm253_vm8 = vweird.f32 %v1396_v40  ;;  %v2623_v49 = vld [vmem:[#allocation17_spill] sm:$0xff]  ;;  %v2626_v62 = vld [vmem:[#allocation35_spill] sm:$0xff] }
  0xc6   :  { %v102_v46 = vsel %vm101_vm4, %v1392_v53, %v98_v38  ;;  %vm254_vm10 = vmor %vm252_vm9, %vm253_vm8  ;;  %v259_v53 = vor.u32 1.1754944e-38, %v258_v63  ;;  %v2636_v63 = vld [vmem:[#allocation28_spill] sm:$0xff] }
  0xc7   :  { %v249_v54 = vsub.f32 1.0, %v248_v59  ;;  %v107_v56 = vsel %vm104_vm5, %v106_v50, %v102_v46  ;;  %v159_v37 = vsel %vm158_vm6, %v1394_v48, %v155_v55  ;;  %v2624_v48 = vld [vmem:[#allocation18_spill] sm:$0xff]  ;;  %v2628_v59 = vld [vmem:[#allocation21_spill] sm:$0xff]  ;;  %v2631_v46 = vld [vmem:[#allocation23_spill] sm:$0xff] }
  0xc8   :  { %v164_v45 = vsel %vm161_vm7, %v163_v52, %v159_v37  ;;  %v263_v36 = vmul.f32 %v1398_v0, %v107_v56  ;;  %v2620_v37 = vld [vmem:[#allocation15_spill] sm:$0xff]  ;;  %v2627_v0 = vld [vmem:[#allocation20_spill] sm:$0xff]  ;;  %v2629_v50 = vld [vmem:[#allocation22_spill] sm:$0xff] }
  0xc9   :  { %v262_v34 = vmul.f32 0.0, %v164_v45  ;;  %v250_v51 = vmul.f32 %v1396_v40, %v249_v54  ;;  %v2630_v52 = vld [vmem:[#allocation36_spill] sm:$0xff]  ;;  %v2633_v56 = vld [vmem:[#allocation25_spill] sm:$0xff] }
  0xca   :  { %v2632_v54 = vld [vmem:[#allocation24_spill] sm:$0xff]  ;;  %v2634_v45 = vld [vmem:[#allocation37_spill] sm:$0xff] }
  0xcb   :  { %v2002_v44 = vadd.f32 %v263_v36, %v262_v34  ;;  %v251_v42 = vadd.f32 %v1396_v40, %v250_v51  ;;  %v2618_v34 = vld [vmem:[#allocation27_spill] sm:$0xff]  ;;  %v2619_v36 = vld [vmem:[#allocation14_spill] sm:$0xff] }
  0xcc   :  { %v2622_v51 = vld [vmem:[#allocation31_spill] sm:$0xff] }
  0xcd   :  { %1399 = vtanh.f32 %v2002_v44  ;;  %v255_v38 = vsel %vm254_vm10, %v1396_v40, %v251_v42  ;;  %v2621_v40 = vld [vmem:[#allocation16_spill] sm:$0xff]  ;;  %v2635_v42 = vld [vmem:[#allocation26_spill] sm:$0xff] }
  0xce   :  { %v260_v55 = vsel %vm257_vm11, %v259_v53, %v255_v38  ;;  %v2638_v38 = vld [vmem:[#allocation38_spill] sm:$0xff] }
  0xcf   :  { %v2639_v53 = vld [vmem:[#allocation30_spill] sm:$0xff] }
  0xd3   :  { %v1400_v58 = vpop.eup %1399 }
  0xd4   :  { %v266_v41 = vmul.f32 %v1400_v58, %v260_v55  ;;  %v2640_v58 = vld [vmem:[#allocation32_spill] sm:$0xff]  ;;  %v2641_v55 = vld [vmem:[#allocation33_spill] sm:$0xff] }
  0xd6   :  { %285 = vmatmul.f32.vlgmr.msrb.gmra.mxu0 %v266_v41  ;;  %326 = vmatmul.f32.vlgmr.msrb.gmra.mxu1 %v266_v41 }
  0xd7   :  { %367 = vmatmul.f32.vlgmr.msrb.gmra.mxu2 %v266_v41  ;;  %390 = vmatmul.f32.vlgmr.msrb.gmra.mxu3 %v266_v41  ;;  %v2642_v41 = vld [vmem:[#allocation39_spill] sm:$0xff] }
  0xd8   :  { %573 = vmatpush.msrb.mxu0 %v2617_v60  ;;  %614 = vmatpush.msrb.mxu1 %v1684_v1 }
  0xd9   :  { %655 = vmatpush.msrb.mxu2 %v1728_v17  ;;  %678 = vmatpush.msrb.mxu3 %v1686_v2 }
  0xda   :  { %574 = vmatpush.msrb.mxu0 %v1690_v3  ;;  %615 = vmatpush.msrb.mxu1 %v1692_v4 }
  0xdb   :  { %656 = vmatpush.msrb.mxu2 %v1734_v19  ;;  %679 = vmatpush.msrb.mxu3 %v1694_v5 }
  0xdc   :  { %575 = vmatpush.msrb.mxu0 %v1697_v6  ;;  %616 = vmatpush.msrb.mxu1 %v1699_v7 }
  0xdd   :  { %657 = vmatpush.msrb.mxu2 %v1746_v23  ;;  %680 = vmatpush.msrb.mxu3 %v1703_v8 }
  0xde   :  { %576 = vmatpush.msrb.mxu0 %v1706_v9  ;;  %617 = vmatpush.msrb.mxu1 %v1708_v10 }
  0xdf   :  { %658 = vmatpush.msrb.mxu2 %v1758_v27  ;;  %681 = vmatpush.msrb.mxu3 %v1712_v11 }
  0xe0   :  { %577 = vmatpush.msrb.mxu0 %v1715_v12  ;;  %618 = vmatpush.msrb.mxu1 %v1717_v13 }
  0xe1   :  { %659 = vmatpush.msrb.mxu2 %v1770_v31  ;;  %682 = vmatpush.msrb.mxu3 %v1721_v14 }
  0xe2   :  { %578 = vmatpush.msrb.mxu0 %v1724_v15  ;;  %619 = vmatpush.msrb.mxu1 %v1726_v16 }
  0xe3   :  { %660 = vmatpush.msrb.mxu2 %v1782_v35  ;;  %683 = vmatpush.msrb.mxu3 %v1732_v18 }
  0xe4   :  { %579 = vmatpush.msrb.mxu0 %v1737_v20  ;;  %620 = vmatpush.msrb.mxu1 %v1739_v21 }
  0xe5   :  { %661 = vmatpush.msrb.mxu2 %v1794_v39  ;;  %684 = vmatpush.msrb.mxu3 %v1744_v22 }
  0xe6   :  { %580 = vmatpush.msrb.mxu0 %v1749_v24  ;;  %621 = vmatpush.msrb.mxu1 %v1751_v25 }
  0xe7   :  { %662 = vmatpush.msrb.mxu2 %v1806_v43  ;;  %685 = vmatpush.msrb.mxu3 %v1756_v26 }
  0xe8   :  { %581 = vmatpush.msrb.mxu0 %v1761_v28  ;;  %622 = vmatpush.msrb.mxu1 %v1763_v29 }
  0xe9   :  { %663 = vmatpush.msrb.mxu2 %v1818_v47  ;;  %686 = vmatpush.msrb.mxu3 %v1768_v30 }
  0xea   :  { %582 = vmatpush.msrb.mxu0 %v1773_v32  ;;  %623 = vmatpush.msrb.mxu1 %v1775_v33 }
  0xeb   :  { %664 = vmatpush.msrb.mxu2 %v2618_v34  ;;  %687 = vmatpush.msrb.mxu3 %v2619_v36 }
  0xec   :  { %583 = vmatpush.msrb.mxu0 %v2620_v37  ;;  %624 = vmatpush.msrb.mxu1 %v2621_v40 }
  0xed   :  { %665 = vmatpush.msrb.mxu2 %v2622_v51  ;;  %688 = vmatpush.msrb.mxu3 %v2623_v49 }
  0xee   :  { %584 = vmatpush.msrb.mxu0 %v2624_v48  ;;  %625 = vmatpush.msrb.mxu1 %v2625_v61 }
  0xef   :  { %666 = vmatpush.msrb.mxu2 %v2626_v62  ;;  %689 = vmatpush.msrb.mxu3 %v2627_v0 }
  0xf0   :  { %585 = vmatpush.msrb.mxu0 %v2628_v59  ;;  %626 = vmatpush.msrb.mxu1 %v2629_v50 }
  0xf1   :  { %667 = vmatpush.msrb.mxu2 %v2630_v52  ;;  %690 = vmatpush.msrb.mxu3 %v2631_v46 }
  0xf2   :  { %586 = vmatpush.msrb.mxu0 %v2632_v54  ;;  %627 = vmatpush.msrb.mxu1 %v2633_v56  ;;  %v2643_v54 = vld [vmem:[#allocation34_spill] sm:$0xff]  ;;  %v268_v56 = vld [vmem:[#allocation4 + $0x20] sm:$0xff] }
  0xf3   :  { %668 = vmatpush.msrb.mxu2 %v2634_v45  ;;  %691 = vmatpush.msrb.mxu3 %v2635_v42  ;;  %v309_v45 = vld [vmem:[#allocation4 + $0x28] sm:$0xff] }
  0xf4   :  { %587 = vmatpush.msrb.mxu0 %v2636_v63  ;;  %628 = vmatpush.msrb.mxu1 %v2637_v57 }
  0xf5   :  { %669 = vmatpush.msrb.mxu2 %v2638_v38  ;;  %692 = vmatpush.msrb.mxu3 %v2639_v53  ;;  %v373_v38 = vld [vmem:[#allocation4 + $0x38] sm:$0xff] }
  0xf6   :  { %588 = vmatpush.msrb.mxu0 %v2640_v58  ;;  %629 = vmatpush.msrb.mxu1 %v2641_v55 }
  0xf7   :  { %670 = vmatpush.msrb.mxu2 %v2642_v41  ;;  %693 = vmatpush.msrb.mxu3 %v2643_v54  ;;  %v350_v54 = vld [vmem:[#allocation4 + $0x30] sm:$0xff] }
 0x153   :  { %v286_v46 = vpop.f32.mrf.mxu0  ;;  %v327_v42 = vpop.f32.mrf.mxu1 }
 0x154   :  { %v289_v52 = vadd.f32 %v286_v46, %v268_v56  ;;  %v330_v63 = vadd.f32 %v327_v42, %v309_v45 }
 0x156   :  { %v1358_v50 = vmul.f32 -1.442695, %v289_v52  ;;  %v1359_v57 = vmul.f32 -1.442695, %v330_v63 }
 0x158   :  { %1401 = vpow2.f32 %v1358_v50 }
 0x159   :  { %1403 = vpow2.f32 %v1359_v57 }
 0x15a   :  { %v391_v53 = vpop.f32.mrf.mxu3  ;;  %v368_v61 = vpop.f32.mrf.mxu2 }
 0x15b   :  { %v394_v59 = vadd.f32 %v391_v53, %v373_v38  ;;  %v371_v52 = vadd.f32 %v368_v61, %v350_v54 }
 0x15d   :  { %v1360_v58 = vmul.f32 -1.442695, %v394_v59 }
 0x15e   :  { %v1402_v0 = vpop.eup %1401 }
 0x15f   :  { %v1404_v55 = vpop.eup %1403  ;;  %v293_v62 = vadd.f32 1.0, %v1402_v0  ;;  %1405 = vpow2.f32 %v1360_v58 }
 0x160   :  { %v334_v41 = vadd.f32 1.0, %v1404_v55 }
 0x161   :  { %1407 = vrcp.f32 %v293_v62  ;;  %v305_v59 = vand.u32 2147483648, %v293_v62  ;;  %v303_v53 = vand.u32 2147483647, %v293_v62  ;;  %vm299_vm14 = vweird.f32 %v293_v62 }
 0x162   :  { %1409 = vrcp.f32 %v334_v41  ;;  %v346_v38 = vand.u32 2147483648, %v334_v41  ;;  %v344_v55 = vand.u32 2147483647, %v334_v41  ;;  %vm340_vm15 = vweird.f32 %v334_v41 }
 0x163   :  { %vm304_vm2 = vcmp.eq.f32.partialorder %v303_v53, 8.507059e+37 }
 0x164   :  { %vm345_vm3 = vcmp.eq.f32.partialorder %v344_v55, 8.507059e+37 }
 0x165   :  { %v1406_v48 = vpop.eup %1405 }
 0x166   :  { %v398_v46 = vadd.f32 1.0, %v1406_v48  ;;  %v306_v48 = vor.u32 1.1754944e-38, %v305_v59 }
 0x167   :  { %v1408_v56 = vpop.eup %1407 }
 0x168   :  { %v1410_v45 = vpop.eup %1409  ;;  %v295_v50 = vmul.f32 %v1408_v56, %v293_v62  ;;  %1411 = vrcp.f32 %v398_v46  ;;  %vm300_vm12 = vweird.f32 %v1408_v56  ;;  %v410_v59 = vand.u32 2147483648, %v398_v46 }
 0x169   :  { %v336_v42 = vmul.f32 %v1410_v45, %v334_v41  ;;  %1413 = vtanh.f32 %v371_v52  ;;  %vm341_vm13 = vweird.f32 %v1410_v45  ;;  %vm301_vm0 = vmor %vm299_vm14, %vm300_vm12  ;;  %vm404_vm5 = vweird.f32 %v398_v46 }
 0x16a   :  { %v296_v63 = vsub.f32 1.0, %v295_v50  ;;  %vm342_vm1 = vmor %vm340_vm15, %vm341_vm13  ;;  %v347_v50 = vor.u32 1.1754944e-38, %v346_v38  ;;  %v411_v38 = vor.u32 1.1754944e-38, %v410_v59 }
 0x16b   :  { %v337_v57 = vsub.f32 1.0, %v336_v42 }
 0x16c   :  { %v297_v0 = vmul.f32 %v1408_v56, %v296_v63 }
 0x16d   :  { %v338_v58 = vmul.f32 %v1410_v45, %v337_v57 }
 0x16e   :  { %v1412_v49 = vpop.eup %1411  ;;  %v298_v51 = vadd.f32 %v1408_v56, %v297_v0 }
 0x16f   :  { %v339_v61 = vadd.f32 %v1410_v45, %v338_v58  ;;  %v400_v54 = vmul.f32 %v1412_v49, %v398_v46  ;;  %v1414_v52 = vpop.eup %1413  ;;  %vm405_vm4 = vweird.f32 %v1412_v49 }
 0x170   :  { %v302_v42 = vsel %vm301_vm0, %v1408_v56, %v298_v51  ;;  %v408_v51 = vand.u32 2147483647, %v398_v46  ;;  %vm406_vm6 = vmor %vm404_vm5, %vm405_vm4 }
 0x171   :  { %v307_v40 = vsel %vm304_vm2, %v306_v48, %v302_v42  ;;  %v343_v63 = vsel %vm342_vm1, %v1410_v45, %v339_v61  ;;  %v401_v37 = vsub.f32 1.0, %v400_v54 }
 0x172   :  { %v348_v57 = vsel %vm345_vm3, %v347_v50, %v343_v63  ;;  %v415_v36 = vmul.f32 %v1414_v52, %v307_v40  ;;  %vm409_vm7 = vcmp.eq.f32.partialorder %v408_v51, 8.507059e+37  ;;  %v502_v40 = vld [vmem:[#allocation4 + $0x50] sm:$0xff] }
 0x173   :  { %v414_v34 = vmul.f32 %v348_v57, %v2002_v44  ;;  %v402_v0 = vmul.f32 %v1412_v49, %v401_v37 }
 0x175   :  { %v2070_v62 = vadd.f32 %v415_v36, %v414_v34  ;;  %v403_v41 = vadd.f32 %v1412_v49, %v402_v0 }
 0x177   :  { %1415 = vtanh.f32 %v2070_v62  ;;  %v407_v56 = vsel %vm406_vm6, %v1412_v49, %v403_v41 }
 0x178   :  { %v412_v53 = vsel %vm409_vm7, %v411_v38, %v407_v56 }
 0x17d   :  { %v1416_v45 = vpop.eup %1415 }
 0x17e   :  { %v418_v58 = vmul.f32 %v1416_v45, %v412_v53 }
 0x180   :  { %437 = vmatmul.f32.vlgmr.msra.gmra.mxu0 %v418_v58  ;;  %478 = vmatmul.f32.vlgmr.msra.gmra.mxu1 %v418_v58 }
 0x181   :  { %519 = vmatmul.f32.vlgmr.msra.gmra.mxu2 %v418_v58  ;;  %542 = vmatmul.f32.vlgmr.msra.gmra.mxu3 %v418_v58 }
 0x182   :  { %725 = vmatpush.msra.mxu0 %v2617_v60  ;;  %766 = vmatpush.msra.mxu1 %v1684_v1  ;;  %v2644_v1 = vld [vmem:[#allocation27_spill] sm:$0xff] }
 0x183   :  { %807 = vmatpush.msra.mxu2 %v1728_v17  ;;  %830 = vmatpush.msra.mxu3 %v1686_v2  ;;  %v2645_v2 = vld [vmem:[#allocation14_spill] sm:$0xff]  ;;  %v2660_v17 = vld [vmem:[#allocation37_spill] sm:$0xff] }
 0x184   :  { %726 = vmatpush.msra.mxu0 %v1690_v3  ;;  %767 = vmatpush.msra.mxu1 %v1692_v4  ;;  %v2646_v3 = vld [vmem:[#allocation15_spill] sm:$0xff]  ;;  %v2647_v4 = vld [vmem:[#allocation16_spill] sm:$0xff] }
 0x185   :  { %808 = vmatpush.msra.mxu2 %v1734_v19  ;;  %831 = vmatpush.msra.mxu3 %v1694_v5  ;;  %v2648_v5 = vld [vmem:[#allocation31_spill] sm:$0xff]  ;;  %v2662_v19 = vld [vmem:[#allocation28_spill] sm:$0xff] }
 0x186   :  { %727 = vmatpush.msra.mxu0 %v1697_v6  ;;  %768 = vmatpush.msra.mxu1 %v1699_v7  ;;  %v2649_v6 = vld [vmem:[#allocation17_spill] sm:$0xff]  ;;  %v2650_v7 = vld [vmem:[#allocation18_spill] sm:$0xff] }
 0x187   :  { %809 = vmatpush.msra.mxu2 %v1746_v23  ;;  %832 = vmatpush.msra.mxu3 %v1703_v8  ;;  %v2651_v8 = vld [vmem:[#allocation19_spill] sm:$0xff]  ;;  %v2666_v23 = vld [vmem:[#allocation32_spill] sm:$0xff] }
 0x188   :  { %728 = vmatpush.msra.mxu0 %v1706_v9  ;;  %769 = vmatpush.msra.mxu1 %v1708_v10  ;;  %v2652_v9 = vld [vmem:[#allocation35_spill] sm:$0xff]  ;;  %v2653_v10 = vld [vmem:[#allocation20_spill] sm:$0xff] }
 0x189   :  { %810 = vmatpush.msra.mxu2 %v1758_v27  ;;  %833 = vmatpush.msra.mxu3 %v1712_v11  ;;  %v2654_v11 = vld [vmem:[#allocation21_spill] sm:$0xff]  ;;  %v420_v27 = vld [vmem:[#allocation4 + $0x40] sm:$0xff] }
 0x18a   :  { %729 = vmatpush.msra.mxu0 %v1715_v12  ;;  %770 = vmatpush.msra.mxu1 %v1717_v13  ;;  %v2655_v12 = vld [vmem:[#allocation22_spill] sm:$0xff]  ;;  %v2656_v13 = vld [vmem:[#allocation36_spill] sm:$0xff] }
 0x18b   :  { %811 = vmatpush.msra.mxu2 %v1770_v31  ;;  %834 = vmatpush.msra.mxu3 %v1721_v14  ;;  %v2657_v14 = vld [vmem:[#allocation23_spill] sm:$0xff] }
 0x18c   :  { %730 = vmatpush.msra.mxu0 %v1724_v15  ;;  %771 = vmatpush.msra.mxu1 %v1726_v16  ;;  %v2658_v15 = vld [vmem:[#allocation24_spill] sm:$0xff]  ;;  %v2659_v16 = vld [vmem:[#allocation25_spill] sm:$0xff] }
 0x18d   :  { %812 = vmatpush.msra.mxu2 %v1782_v35  ;;  %835 = vmatpush.msra.mxu3 %v1732_v18  ;;  %v2661_v18 = vld [vmem:[#allocation26_spill] sm:$0xff] }
 0x18e   :  { %731 = vmatpush.msra.mxu0 %v1737_v20  ;;  %772 = vmatpush.msra.mxu1 %v1739_v21  ;;  %v2663_v20 = vld [vmem:[#allocation29_spill] sm:$0xff]  ;;  %v2664_v21 = vld [vmem:[#allocation38_spill] sm:$0xff] }
 0x18f   :  { %813 = vmatpush.msra.mxu2 %v1794_v39  ;;  %836 = vmatpush.msra.mxu3 %v1744_v22  ;;  %v2665_v22 = vld [vmem:[#allocation30_spill] sm:$0xff]  ;;  %v525_v39 = vld [vmem:[#allocation4 + $0x58] sm:$0xff] }
 0x190   :  { %732 = vmatpush.msra.mxu0 %v1749_v24  ;;  %773 = vmatpush.msra.mxu1 %v1751_v25  ;;  %v2667_v24 = vld [vmem:[#allocation33_spill] sm:$0xff]  ;;  %v2668_v25 = vld [vmem:[#allocation39_spill] sm:$0xff] }
 0x191   :  { %814 = vmatpush.msra.mxu2 %v1806_v43  ;;  %837 = vmatpush.msra.mxu3 %v1756_v26  ;;  %v2669_v26 = vld [vmem:[#allocation34_spill] sm:$0xff] }
 0x192   :  { %733 = vmatpush.msra.mxu0 %v1761_v28  ;;  %774 = vmatpush.msra.mxu1 %v1763_v29  ;;  %v461_v28 = vld [vmem:[#allocation4 + $0x48] sm:$0xff] }
 0x193   :  { %815 = vmatpush.msra.mxu2 %v1818_v47  ;;  %838 = vmatpush.msra.mxu3 %v1768_v30 }
 0x194   :  { %734 = vmatpush.msra.mxu0 %v1773_v32  ;;  %775 = vmatpush.msra.mxu1 %v1775_v33 }
 0x195   :  { %816 = vmatpush.msra.mxu2 %v2644_v1  ;;  %839 = vmatpush.msra.mxu3 %v2645_v2 }
 0x196   :  { %735 = vmatpush.msra.mxu0 %v2646_v3  ;;  %776 = vmatpush.msra.mxu1 %v2647_v4 }
 0x197   :  { %817 = vmatpush.msra.mxu2 %v2648_v5  ;;  %840 = vmatpush.msra.mxu3 %v2649_v6 }
 0x198   :  { %736 = vmatpush.msra.mxu0 %v2650_v7  ;;  %777 = vmatpush.msra.mxu1 %v2651_v8 }
 0x199   :  { %818 = vmatpush.msra.mxu2 %v2652_v9  ;;  %841 = vmatpush.msra.mxu3 %v2653_v10 }
 0x19a   :  { %737 = vmatpush.msra.mxu0 %v2654_v11  ;;  %778 = vmatpush.msra.mxu1 %v2655_v12 }
 0x19b   :  { %819 = vmatpush.msra.mxu2 %v2656_v13  ;;  %842 = vmatpush.msra.mxu3 %v2657_v14 }
 0x19c   :  { %738 = vmatpush.msra.mxu0 %v2658_v15  ;;  %779 = vmatpush.msra.mxu1 %v2659_v16 }
 0x19d   :  { %820 = vmatpush.msra.mxu2 %v2660_v17  ;;  %843 = vmatpush.msra.mxu3 %v2661_v18 }
 0x19e   :  { %739 = vmatpush.msra.mxu0 %v2662_v19  ;;  %780 = vmatpush.msra.mxu1 %v2663_v20 }
 0x19f   :  { %821 = vmatpush.msra.mxu2 %v2664_v21  ;;  %844 = vmatpush.msra.mxu3 %v2665_v22  ;;  %v2144_v21 = vld [vmem:[#allocation7 + $0x1e8] sm:$0xff]  ;;  %v2147_v22 = vld [vmem:[#allocation7 + $0x1f0] sm:$0xff] }
 0x1a0   :  { %740 = vmatpush.msra.mxu0 %v2666_v23  ;;  %781 = vmatpush.msra.mxu1 %v2667_v24  ;;  %v2150_v23 = vld [vmem:[#allocation7 + $0x1f8] sm:$0xff]  ;;  %v2153_v24 = vld [vmem:[#allocation7 + $0x1c0] sm:$0xff] }
 0x1a1   :  { %822 = vmatpush.msra.mxu2 %v2668_v25  ;;  %845 = vmatpush.msra.mxu3 %v2669_v26  ;;  %v2156_v25 = vld [vmem:[#allocation7 + $0x1c8] sm:$0xff]  ;;  %v2159_v26 = vld [vmem:[#allocation7 + $0x1d0] sm:$0xff] }
 0x1fd   :  { %v438_v29 = vpop.f32.mrf.mxu0  ;;  %v479_v30 = vpop.f32.mrf.mxu1 }
 0x1fe   :  { %v441_v31 = vadd.f32 %v438_v29, %v420_v27  ;;  %v482_v32 = vadd.f32 %v479_v30, %v461_v28  ;;  %v2162_v27 = vld [vmem:[#allocation7 + $0x1d8] sm:$0xff]  ;;  %v2165_v28 = vld [vmem:[#allocation7 + $0x1a0] sm:$0xff]  ;;  %v2168_v29 = vld [vmem:[#allocation7 + $0x1a8] sm:$0xff] }
 0x1ff   :  { %v2171_v30 = vld [vmem:[#allocation7 + $0x1b0] sm:$0xff] }
 0x200   :  { %v1361_v33 = vmul.f32 -1.442695, %v441_v31  ;;  %v1362_v35 = vmul.f32 -1.442695, %v482_v32  ;;  %v2174_v31 = vld [vmem:[#allocation7 + $0x1b8] sm:$0xff]  ;;  %v2177_v32 = vld [vmem:[#allocation7 + $0x180] sm:$0xff] }
 0x202   :  { %1417 = vpow2.f32 %v1361_v33  ;;  %v2180_v33 = vld [vmem:[#allocation7 + $0x188] sm:$0xff] }
 0x203   :  { %1419 = vpow2.f32 %v1362_v35  ;;  %v2183_v35 = vld [vmem:[#allocation7 + $0x190] sm:$0xff] }
 0x204   :  { %v543_v43 = vpop.f32.mrf.mxu3  ;;  %v520_v49 = vpop.f32.mrf.mxu2 }
 0x205   :  { %v546_v47 = vadd.f32 %v543_v43, %v525_v39  ;;  %v523_v61 = vadd.f32 %v520_v49, %v502_v40  ;;  %v2186_v39 = vld [vmem:[#allocation7 + $0x198] sm:$0xff]  ;;  %v2189_v43 = vld [vmem:[#allocation7 + $0x160] sm:$0xff] }
 0x206   :  { %v2210_v40 = vld [vmem:[#allocation7 + $0x158] sm:$0xff]  ;;  %v2213_v49 = vld [vmem:[#allocation7 + $0x120] sm:$0xff] }
 0x207   :  { %v1363_v60 = vmul.f32 -1.442695, %v546_v47  ;;  %v2192_v47 = vld [vmem:[#allocation7 + $0x168] sm:$0xff] }
 0x208   :  { %v1418_v44 = vpop.eup %1417 }
 0x209   :  { %v1420_v34 = vpop.eup %1419  ;;  %v445_v36 = vadd.f32 1.0, %v1418_v44  ;;  %1421 = vpow2.f32 %v1363_v60  ;;  %v2195_v60 = vld [vmem:[#allocation7 + $0x170] sm:$0xff]  ;;  %v2198_v44 = vld [vmem:[#allocation7 + $0x178] sm:$0xff] }
 0x20a   :  { %v486_v37 = vadd.f32 1.0, %v1420_v34  ;;  %v2201_v34 = vld [vmem:[#allocation7 + $0x140] sm:$0xff] }
 0x20b   :  { %1423 = vrcp.f32 %v445_v36  ;;  %v457_v57 = vand.u32 2147483648, %v445_v36  ;;  %v455_v59 = vand.u32 2147483647, %v445_v36  ;;  %vm451_vm10 = vweird.f32 %v445_v36 }
 0x20c   :  { %1425 = vrcp.f32 %v486_v37  ;;  %v498_v0 = vand.u32 2147483648, %v486_v37  ;;  %v496_v56 = vand.u32 2147483647, %v486_v37  ;;  %vm492_vm11 = vweird.f32 %v486_v37 }
 0x20d   :  { %v458_v53 = vor.u32 1.1754944e-38, %v457_v57  ;;  %vm456_vm14 = vcmp.eq.f32.partialorder %v455_v59, 8.507059e+37  ;;  %v2243_v57 = vld [vmem:[#allocation7 + $0xf0] sm:$0xff]  ;;  %v2252_v59 = vld [vmem:[#allocation7 + $0xc8] sm:$0xff] }
 0x20e   :  { %v499_v2 = vor.u32 1.1754944e-38, %v498_v0  ;;  %vm497_vm15 = vcmp.eq.f32.partialorder %v496_v56, 8.507059e+37  ;;  %v2246_v0 = vld [vmem:[#allocation7 + $0xf8] sm:$0xff] }
 0x20f   :  { %v1422_v46 = vpop.eup %1421  ;;  %v2258_v56 = vld [vmem:[#allocation7 + $0xd8] sm:$0xff] }
 0x210   :  { %v550_v55 = vadd.f32 1.0, %v1422_v46  ;;  %v2216_v46 = vld [vmem:[#allocation7 + $0x128] sm:$0xff]  ;;  %2671 = vst [vmem:[#allocation27_spill] sm:$0xff] %v2258_v56 }
 0x211   :  { %v1424_v48 = vpop.eup %1423 }
 0x212   :  { %v1426_v54 = vpop.eup %1425  ;;  %v447_v50 = vmul.f32 %v1424_v48, %v445_v36  ;;  %1427 = vrcp.f32 %v550_v55  ;;  %vm452_vm8 = vweird.f32 %v1424_v48  ;;  %v562_v14 = vand.u32 2147483648, %v550_v55  ;;  %v2204_v36 = vld [vmem:[#allocation7 + $0x148] sm:$0xff] }
 0x213   :  { %v488_v42 = vmul.f32 %v1426_v54, %v486_v37  ;;  %1429 = vtanh.f32 %v523_v61  ;;  %vm493_vm9 = vweird.f32 %v1426_v54  ;;  %vm453_vm12 = vmor %vm451_vm10, %vm452_vm8  ;;  %vm556_vm1 = vweird.f32 %v550_v55  ;;  %v2207_v37 = vld [vmem:[#allocation7 + $0x150] sm:$0xff]  ;;  %v2225_v61 = vld [vmem:[#allocation7 + $0x100] sm:$0xff] }
 0x214   :  { %v448_v52 = vsub.f32 1.0, %v447_v50  ;;  %vm494_vm13 = vmor %vm492_vm11, %vm493_vm9  ;;  %v560_v15 = vand.u32 2147483647, %v550_v55  ;;  %v563_v17 = vor.u32 1.1754944e-38, %v562_v14  ;;  %v2231_v50 = vld [vmem:[#allocation7 + $0x110] sm:$0xff]  ;;  %v2309_v14 = vld [vmem:[#allocation7 + $0x20] sm:$0xff] }
 0x215   :  { %v489_v63 = vsub.f32 1.0, %v488_v42  ;;  %v2234_v42 = vld [vmem:[#allocation7 + $0x118] sm:$0xff]  ;;  %2688 = vst [vmem:[#allocation26_spill] sm:$0xff] %v2309_v14 }
 0x216   :  { %v449_v41 = vmul.f32 %v1424_v48, %v448_v52  ;;  %vm561_vm3 = vcmp.eq.f32.partialorder %v560_v15, 8.507059e+37  ;;  %v2237_v52 = vld [vmem:[#allocation7 + $0xe0] sm:$0xff]  ;;  %v2312_v15 = vld [vmem:[#allocation7 + $0x28] sm:$0xff] }
 0x217   :  { %v490_v51 = vmul.f32 %v1426_v54, %v489_v63  ;;  %v2240_v63 = vld [vmem:[#allocation7 + $0xe8] sm:$0xff]  ;;  %2689 = vst [vmem:[#allocation28_spill] sm:$0xff] %v2312_v15 }
 0x218   :  { %v1428_v38 = vpop.eup %1427  ;;  %v450_v45 = vadd.f32 %v1424_v48, %v449_v41  ;;  %v2249_v41 = vld [vmem:[#allocation7 + $0xc0] sm:$0xff] }
 0x219   :  { %v491_v58 = vadd.f32 %v1426_v54, %v490_v51  ;;  %v552_v1 = vmul.f32 %v1428_v38, %v550_v55  ;;  %v1430_v4 = vpop.eup %1429  ;;  %vm557_vm0 = vweird.f32 %v1428_v38  ;;  %v2219_v55 = vld [vmem:[#allocation7 + $0x130] sm:$0xff] }
 0x21a   :  { %v454_v3 = vsel %vm453_vm12, %v1424_v48, %v450_v45  ;;  %vm558_vm2 = vmor %vm556_vm1, %vm557_vm0  ;;  %v2222_v48 = vld [vmem:[#allocation7 + $0x138] sm:$0xff]  ;;  %v2255_v51 = vld [vmem:[#allocation7 + $0xd0] sm:$0xff] }
 0x21b   :  { %v459_v5 = vsel %vm456_vm14, %v458_v53, %v454_v3  ;;  %v495_v6 = vsel %vm494_vm13, %v1426_v54, %v491_v58  ;;  %v553_v7 = vsub.f32 1.0, %v552_v1  ;;  %v2228_v54 = vld [vmem:[#allocation7 + $0x108] sm:$0xff]  ;;  %2670 = vst [vmem:[#allocation13_spill] sm:$0xff] %v2255_v51  ;;  %v2267_v53 = vld [vmem:[#allocation7 + $0xb0] sm:$0xff]  ;;  %v2270_v58 = vld [vmem:[#allocation7 + $0xb8] sm:$0xff] }
 0x21c   :  { %v500_v8 = vsel %vm497_vm15, %v499_v2, %v495_v6  ;;  %v567_v9 = vmul.f32 %v1430_v4, %v459_v5  ;;  %v2264_v45 = vld [vmem:[#allocation7 + $0xa8] sm:$0xff]  ;;  %2674 = vst [vmem:[#allocation16_spill] sm:$0xff] %v2267_v53  ;;  %v2273_v1 = vld [vmem:[#allocation7 + $0x80] sm:$0xff]  ;;  %v2279_v3 = vld [vmem:[#allocation7 + $0x90] sm:$0xff] }
 0x21d   :  { %v566_v10 = vmul.f32 %v500_v8, %v2070_v62  ;;  %v554_v11 = vmul.f32 %v1428_v38, %v553_v7  ;;  %v2141_v62 = vld [vmem:[#allocation7 + $0x1e0] sm:$0xff]  ;;  %2673 = vst [vmem:[#allocation15_spill] sm:$0xff] %v2264_v45  ;;  %v2276_v2 = vld [vmem:[#allocation7 + $0x88] sm:$0xff]  ;;  %v2282_v4 = vld [vmem:[#allocation7 + $0x98] sm:$0xff] }
 0x21e   :  { %2675 = vst [vmem:[#allocation31_spill] sm:$0xff] %v2270_v58  ;;  %v2285_v5 = vld [vmem:[#allocation7 + $0x60] sm:$0xff]  ;;  %v2288_v6 = vld [vmem:[#allocation7 + $0x68] sm:$0xff]  ;;  %v2291_v7 = vld [vmem:[#allocation7 + $0x70] sm:$0xff] }
 0x21f   :  { %v2138_v12 = vadd.f32 %v567_v9, %v566_v10  ;;  %v555_v13 = vadd.f32 %v1428_v38, %v554_v11  ;;  %2676 = vst [vmem:[#allocation17_spill] sm:$0xff] %v2273_v1  ;;  %v2294_v8 = vld [vmem:[#allocation7 + $0x78] sm:$0xff]  ;;  %v2297_v9 = vld [vmem:[#allocation7 + $0x40] sm:$0xff]  ;;  %v2300_v10 = vld [vmem:[#allocation7 + $0x48] sm:$0xff] }
 0x220   :  { %2677 = vst [vmem:[#allocation18_spill] sm:$0xff] %v2276_v2  ;;  %v2303_v11 = vld [vmem:[#allocation7 + $0x50] sm:$0xff] }
 0x221   :  { %1431 = vtanh.f32 %v2138_v12  ;;  %v559_v16 = vsel %vm558_vm2, %v1428_v38, %v555_v13  ;;  %v2261_v38 = vld [vmem:[#allocation7 + $0xa0] sm:$0xff]  ;;  %2678 = vst [vmem:[#allocation19_spill] sm:$0xff] %v2279_v3  ;;  %v2306_v13 = vld [vmem:[#allocation7 + $0x58] sm:$0xff] }
 0x222   :  { %v564_v19 = vsel %vm561_vm3, %v563_v17, %v559_v16  ;;  %2672 = vst [vmem:[#allocation14_spill] sm:$0xff] %v2261_v38  ;;  %v2315_v16 = vld [vmem:[#allocation7 + $0x30] sm:$0xff]  ;;  %v2318_v17 = vld [vmem:[#allocation7 + $0x38] sm:$0xff] }
 0x223   :  { %2679 = vst [vmem:[#allocation35_spill] sm:$0xff] %v2282_v4 }
 0x224   :  { %2680 = vst [vmem:[#allocation20_spill] sm:$0xff] %v2285_v5 }
 0x225   :  { %2681 = vst [vmem:[#allocation21_spill] sm:$0xff] %v2288_v6 }
 0x226   :  { %2682 = vst [vmem:[#allocation22_spill] sm:$0xff] %v2291_v7 }
 0x227   :  { %v1432_v18 = vpop.eup %1431  ;;  %2683 = vst [vmem:[#allocation36_spill] sm:$0xff] %v2294_v8 }
 0x228   :  { %v570_v20 = vmul.f32 %v1432_v18, %v564_v19  ;;  %2684 = vst [vmem:[#allocation23_spill] sm:$0xff] %v2297_v9  ;;  %v2321_v18 = vld [vmem:[#allocation7] sm:$0xff]  ;;  %v2324_v19 = vld [vmem:[#allocation7 + $0x8] sm:$0xff] }
 0x229   :  { %2685 = vst [vmem:[#allocation24_spill] sm:$0xff] %v2300_v10 }
 0x22a   :  { %589 = vmatmul.f32.vlgmr.msrb.gmra.mxu0 %v570_v20  ;;  %630 = vmatmul.f32.vlgmr.msrb.gmra.mxu1 %v570_v20  ;;  %2686 = vst [vmem:[#allocation25_spill] sm:$0xff] %v2303_v11 }
 0x22b   :  { %671 = vmatmul.f32.vlgmr.msrb.gmra.mxu2 %v570_v20  ;;  %694 = vmatmul.f32.vlgmr.msrb.gmra.mxu3 %v570_v20  ;;  %2687 = vst [vmem:[#allocation37_spill] sm:$0xff] %v2306_v13  ;;  %v2327_v20 = vld [vmem:[#allocation7 + $0x10] sm:$0xff] }
 0x22c   :  { %877 = vmatpush.msrb.mxu0 %v2141_v62  ;;  %918 = vmatpush.msrb.mxu1 %v2144_v21  ;;  %2690 = vst [vmem:[#allocation29_spill] sm:$0xff] %v2315_v16 }
 0x22d   :  { %959 = vmatpush.msrb.mxu2 %v2147_v22  ;;  %982 = vmatpush.msrb.mxu3 %v2150_v23  ;;  %2691 = vst [vmem:[#allocation38_spill] sm:$0xff] %v2318_v17 }
 0x22e   :  { %878 = vmatpush.msrb.mxu0 %v2153_v24  ;;  %919 = vmatpush.msrb.mxu1 %v2156_v25  ;;  %2692 = vst [vmem:[#allocation30_spill] sm:$0xff] %v2321_v18 }
 0x22f   :  { %960 = vmatpush.msrb.mxu2 %v2159_v26  ;;  %983 = vmatpush.msrb.mxu3 %v2162_v27  ;;  %2693 = vst [vmem:[#allocation32_spill] sm:$0xff] %v2324_v19 }
 0x230   :  { %879 = vmatpush.msrb.mxu0 %v2165_v28  ;;  %920 = vmatpush.msrb.mxu1 %v2168_v29  ;;  %2694 = vst [vmem:[#allocation33_spill] sm:$0xff] %v2327_v20 }
 0x231   :  { %961 = vmatpush.msrb.mxu2 %v2171_v30  ;;  %984 = vmatpush.msrb.mxu3 %v2174_v31 }
 0x232   :  { %880 = vmatpush.msrb.mxu0 %v2177_v32  ;;  %921 = vmatpush.msrb.mxu1 %v2180_v33 }
 0x233   :  { %962 = vmatpush.msrb.mxu2 %v2183_v35  ;;  %985 = vmatpush.msrb.mxu3 %v2186_v39 }
 0x234   :  { %881 = vmatpush.msrb.mxu0 %v2189_v43  ;;  %922 = vmatpush.msrb.mxu1 %v2192_v47 }
 0x235   :  { %963 = vmatpush.msrb.mxu2 %v2195_v60  ;;  %986 = vmatpush.msrb.mxu3 %v2198_v44 }
 0x236   :  { %882 = vmatpush.msrb.mxu0 %v2201_v34  ;;  %923 = vmatpush.msrb.mxu1 %v2204_v36 }
 0x237   :  { %964 = vmatpush.msrb.mxu2 %v2207_v37  ;;  %987 = vmatpush.msrb.mxu3 %v2210_v40 }
 0x238   :  { %883 = vmatpush.msrb.mxu0 %v2213_v49  ;;  %924 = vmatpush.msrb.mxu1 %v2216_v46 }
 0x239   :  { %965 = vmatpush.msrb.mxu2 %v2219_v55  ;;  %988 = vmatpush.msrb.mxu3 %v2222_v48 }
 0x23a   :  { %884 = vmatpush.msrb.mxu0 %v2225_v61  ;;  %925 = vmatpush.msrb.mxu1 %v2228_v54 }
 0x23b   :  { %966 = vmatpush.msrb.mxu2 %v2231_v50  ;;  %989 = vmatpush.msrb.mxu3 %v2234_v42 }
 0x23c   :  { %885 = vmatpush.msrb.mxu0 %v2237_v52  ;;  %926 = vmatpush.msrb.mxu1 %v2240_v63 }
 0x23d   :  { %967 = vmatpush.msrb.mxu2 %v2243_v57  ;;  %990 = vmatpush.msrb.mxu3 %v2246_v0 }
 0x23e   :  { %886 = vmatpush.msrb.mxu0 %v2249_v41  ;;  %927 = vmatpush.msrb.mxu1 %v2252_v59 }
 0x23f   :  { %968 = vmatpush.msrb.mxu2 %v2255_v51  ;;  %991 = vmatpush.msrb.mxu3 %v2258_v56 }
 0x240   :  { %887 = vmatpush.msrb.mxu0 %v2261_v38  ;;  %928 = vmatpush.msrb.mxu1 %v2264_v45 }
 0x241   :  { %969 = vmatpush.msrb.mxu2 %v2267_v53  ;;  %992 = vmatpush.msrb.mxu3 %v2270_v58 }
 0x242   :  { %888 = vmatpush.msrb.mxu0 %v2273_v1  ;;  %929 = vmatpush.msrb.mxu1 %v2276_v2 }
 0x243   :  { %970 = vmatpush.msrb.mxu2 %v2279_v3  ;;  %993 = vmatpush.msrb.mxu3 %v2282_v4 }
 0x244   :  { %889 = vmatpush.msrb.mxu0 %v2285_v5  ;;  %930 = vmatpush.msrb.mxu1 %v2288_v6 }
 0x245   :  { %971 = vmatpush.msrb.mxu2 %v2291_v7  ;;  %994 = vmatpush.msrb.mxu3 %v2294_v8  ;;  %v677_v8 = vld [vmem:[#allocation4 + $0x78] sm:$0xff] }
 0x246   :  { %890 = vmatpush.msrb.mxu0 %v2297_v9  ;;  %931 = vmatpush.msrb.mxu1 %v2300_v10 }
 0x247   :  { %972 = vmatpush.msrb.mxu2 %v2303_v11  ;;  %995 = vmatpush.msrb.mxu3 %v2306_v13 }
 0x248   :  { %891 = vmatpush.msrb.mxu0 %v2309_v14  ;;  %932 = vmatpush.msrb.mxu1 %v2312_v15  ;;  %v2330_v15 = vld [vmem:[#allocation7 + $0x18] sm:$0xff]  ;;  %v613_v14 = vld [vmem:[#allocation4 + $0x68] sm:$0xff] }
 0x249   :  { %973 = vmatpush.msrb.mxu2 %v2315_v16  ;;  %996 = vmatpush.msrb.mxu3 %v2318_v17  ;;  %2695 = vst [vmem:[#allocation39_spill] sm:$0xff] %v2330_v15  ;;  %v572_v16 = vld [vmem:[#allocation4 + $0x60] sm:$0xff] }
 0x24a   :  { %892 = vmatpush.msrb.mxu0 %v2321_v18  ;;  %933 = vmatpush.msrb.mxu1 %v2324_v19 }
 0x24b   :  { %974 = vmatpush.msrb.mxu2 %v2327_v20  ;;  %997 = vmatpush.msrb.mxu3 %v2330_v15  ;;  %v654_v15 = vld [vmem:[#allocation4 + $0x70] sm:$0xff] }
 0x2a7   :  { %v590_v13 = vpop.f32.mrf.mxu0  ;;  %v631_v17 = vpop.f32.mrf.mxu1 }
 0x2a8   :  { %v593_v11 = vadd.f32 %v590_v13, %v572_v16  ;;  %v634_v10 = vadd.f32 %v631_v17, %v613_v14 }
 0x2aa   :  { %v1364_v9 = vmul.f32 -1.442695, %v593_v11  ;;  %v1365_v18 = vmul.f32 -1.442695, %v634_v10 }
 0x2ac   :  { %1433 = vpow2.f32 %v1364_v9 }
 0x2ad   :  { %1435 = vpow2.f32 %v1365_v18 }
 0x2ae   :  { %v695_v19 = vpop.f32.mrf.mxu3  ;;  %v672_v2 = vpop.f32.mrf.mxu2 }
 0x2af   :  { %v698_v7 = vadd.f32 %v695_v19, %v677_v8  ;;  %v675_v11 = vadd.f32 %v672_v2, %v654_v15 }
 0x2b1   :  { %v1366_v6 = vmul.f32 -1.442695, %v698_v7 }
 0x2b2   :  { %v1434_v5 = vpop.eup %1433 }
 0x2b3   :  { %v1436_v20 = vpop.eup %1435  ;;  %v597_v4 = vadd.f32 1.0, %v1434_v5  ;;  %1437 = vpow2.f32 %v1366_v6 }
 0x2b4   :  { %v638_v3 = vadd.f32 1.0, %v1436_v20 }
 0x2b5   :  { %1439 = vrcp.f32 %v597_v4  ;;  %v609_v7 = vand.u32 2147483648, %v597_v4  ;;  %v607_v6 = vand.u32 2147483647, %v597_v4  ;;  %vm603_vm6 = vweird.f32 %v597_v4 }
 0x2b6   :  { %1441 = vrcp.f32 %v638_v3  ;;  %v650_v18 = vand.u32 2147483648, %v638_v3  ;;  %v648_v20 = vand.u32 2147483647, %v638_v3  ;;  %vm644_vm7 = vweird.f32 %v638_v3 }
 0x2b7   :  { %vm608_vm10 = vcmp.eq.f32.partialorder %v607_v6, 8.507059e+37 }
 0x2b8   :  { %vm649_vm11 = vcmp.eq.f32.partialorder %v648_v20, 8.507059e+37  ;;  %v2703_v20 = vld [vmem:[#allocation18_spill] sm:$0xff] }
 0x2b9   :  { %v1438_v1 = vpop.eup %1437 }
 0x2ba   :  { %v702_v13 = vadd.f32 1.0, %v1438_v1  ;;  %v610_v1 = vor.u32 1.1754944e-38, %v609_v7 }
 0x2bb   :  { %v1440_v14 = vpop.eup %1439 }
 0x2bc   :  { %v1442_v10 = vpop.eup %1441  ;;  %v599_v9 = vmul.f32 %v1440_v14, %v597_v4  ;;  %1443 = vrcp.f32 %v702_v13  ;;  %vm604_vm4 = vweird.f32 %v1440_v14  ;;  %v714_v7 = vand.u32 2147483648, %v702_v13 }
 0x2bd   :  { %v640_v16 = vmul.f32 %v1442_v10, %v638_v3  ;;  %1445 = vtanh.f32 %v675_v11  ;;  %vm645_vm5 = vweird.f32 %v1442_v10  ;;  %vm605_vm8 = vmor %vm603_vm6, %vm604_vm4  ;;  %vm708_vm13 = vweird.f32 %v702_v13 }
 0x2be   :  { %v600_v17 = vsub.f32 1.0, %v599_v9  ;;  %vm646_vm9 = vmor %vm644_vm7, %vm645_vm5  ;;  %v651_v9 = vor.u32 1.1754944e-38, %v650_v18  ;;  %v715_v18 = vor.u32 1.1754944e-38, %v714_v7  ;;  %v2714_v7 = vld [vmem:[#allocation26_spill] sm:$0xff] }
 0x2bf   :  { %v641_v8 = vsub.f32 1.0, %v640_v16 }
 0x2c0   :  { %v601_v5 = vmul.f32 %v1440_v14, %v600_v17 }
 0x2c1   :  { %v642_v19 = vmul.f32 %v1442_v10, %v641_v8 }
 0x2c2   :  { %v1444_v58 = vpop.eup %1443  ;;  %v602_v53 = vadd.f32 %v1440_v14, %v601_v5 }
 0x2c3   :  { %v643_v2 = vadd.f32 %v1442_v10, %v642_v19  ;;  %v704_v15 = vmul.f32 %v1444_v58, %v702_v13  ;;  %v1446_v11 = vpop.eup %1445  ;;  %vm709_vm12 = vweird.f32 %v1444_v58 }
 0x2c4   :  { %v606_v16 = vsel %vm605_vm8, %v1440_v14, %v602_v53  ;;  %v712_v53 = vand.u32 2147483647, %v702_v13  ;;  %vm710_vm14 = vmor %vm708_vm13, %vm709_vm12  ;;  %v2702_v13 = vld [vmem:[#allocation17_spill] sm:$0xff] }
 0x2c5   :  { %v611_v45 = vsel %vm608_vm10, %v610_v1, %v606_v16  ;;  %v647_v17 = vsel %vm646_vm9, %v1442_v10, %v643_v2  ;;  %v705_v38 = vsub.f32 1.0, %v704_v15  ;;  %v2704_v1 = vld [vmem:[#allocation19_spill] sm:$0xff]  ;;  %v2706_v15 = vld [vmem:[#allocation20_spill] sm:$0xff]  ;;  %v2708_v16 = vld [vmem:[#allocation22_spill] sm:$0xff] }
 0x2c6   :  { %v652_v8 = vsel %vm649_vm11, %v651_v9, %v647_v17  ;;  %v719_v56 = vmul.f32 %v1446_v11, %v611_v45  ;;  %vm713_vm15 = vcmp.eq.f32.partialorder %v712_v53, 8.507059e+37  ;;  %v2700_v45 = vld [vmem:[#allocation16_spill] sm:$0xff]  ;;  %v2705_v2 = vld [vmem:[#allocation35_spill] sm:$0xff]  ;;  %v2707_v9 = vld [vmem:[#allocation21_spill] sm:$0xff] }
 0x2c7   :  { %v718_v51 = vmul.f32 %v652_v8, %v2138_v12  ;;  %v706_v5 = vmul.f32 %v1444_v58, %v705_v38  ;;  %v2696_v12 = vld [vmem:[#allocation13_spill] sm:$0xff]  ;;  %v2699_v38 = vld [vmem:[#allocation15_spill] sm:$0xff]  ;;  %v2709_v11 = vld [vmem:[#allocation36_spill] sm:$0xff] }
 0x2c8   :  { %v2710_v17 = vld [vmem:[#allocation23_spill] sm:$0xff]  ;;  %v2711_v8 = vld [vmem:[#allocation24_spill] sm:$0xff] }
 0x2c9   :  { %v2334_v4 = vadd.f32 %v719_v56, %v718_v51  ;;  %v707_v3 = vadd.f32 %v1444_v58, %v706_v5  ;;  %v2697_v51 = vld [vmem:[#allocation27_spill] sm:$0xff]  ;;  %v2698_v56 = vld [vmem:[#allocation14_spill] sm:$0xff]  ;;  %v2712_v5 = vld [vmem:[#allocation25_spill] sm:$0xff] }
 0x2ca   :  { %v2715_v53 = vld [vmem:[#allocation28_spill] sm:$0xff] }
 0x2cb   :  { %1447 = vtanh.f32 %v2334_v4  ;;  %v711_v14 = vsel %vm710_vm14, %v1444_v58, %v707_v3  ;;  %v2701_v58 = vld [vmem:[#allocation31_spill] sm:$0xff]  ;;  %v2713_v3 = vld [vmem:[#allocation37_spill] sm:$0xff] }
 0x2cc   :  { %v716_v6 = vsel %vm713_vm15, %v715_v18, %v711_v14  ;;  %v2716_v14 = vld [vmem:[#allocation29_spill] sm:$0xff]  ;;  %v2717_v18 = vld [vmem:[#allocation38_spill] sm:$0xff] }
 0x2d1   :  { %v1448_v10 = vpop.eup %1447 }
 0x2d2   :  { %v722_v19 = vmul.f32 %v1448_v10, %v716_v6  ;;  %v2718_v10 = vld [vmem:[#allocation30_spill] sm:$0xff]  ;;  %v2719_v6 = vld [vmem:[#allocation32_spill] sm:$0xff] }
 0x2d4   :  { %741 = vmatmul.f32.vlgmr.msra.gmra.mxu0 %v722_v19  ;;  %782 = vmatmul.f32.vlgmr.msra.gmra.mxu1 %v722_v19 }
 0x2d5   :  { %823 = vmatmul.f32.vlgmr.msra.gmra.mxu2 %v722_v19  ;;  %846 = vmatmul.f32.vlgmr.msra.gmra.mxu3 %v722_v19  ;;  %v2720_v19 = vld [vmem:[#allocation33_spill] sm:$0xff] }
 0x2d6   :  { %1029 = vmatpush.msra.mxu0 %v2141_v62  ;;  %1070 = vmatpush.msra.mxu1 %v2144_v21 }
 0x2d7   :  { %1111 = vmatpush.msra.mxu2 %v2147_v22  ;;  %1134 = vmatpush.msra.mxu3 %v2150_v23 }
 0x2d8   :  { %1030 = vmatpush.msra.mxu0 %v2153_v24  ;;  %1071 = vmatpush.msra.mxu1 %v2156_v25 }
 0x2d9   :  { %1112 = vmatpush.msra.mxu2 %v2159_v26  ;;  %1135 = vmatpush.msra.mxu3 %v2162_v27 }
 0x2da   :  { %1031 = vmatpush.msra.mxu0 %v2165_v28  ;;  %1072 = vmatpush.msra.mxu1 %v2168_v29 }
 0x2db   :  { %1113 = vmatpush.msra.mxu2 %v2171_v30  ;;  %1136 = vmatpush.msra.mxu3 %v2174_v31 }
 0x2dc   :  { %1032 = vmatpush.msra.mxu0 %v2177_v32  ;;  %1073 = vmatpush.msra.mxu1 %v2180_v33 }
 0x2dd   :  { %1114 = vmatpush.msra.mxu2 %v2183_v35  ;;  %1137 = vmatpush.msra.mxu3 %v2186_v39 }
 0x2de   :  { %1033 = vmatpush.msra.mxu0 %v2189_v43  ;;  %1074 = vmatpush.msra.mxu1 %v2192_v47 }
 0x2df   :  { %1115 = vmatpush.msra.mxu2 %v2195_v60  ;;  %1138 = vmatpush.msra.mxu3 %v2198_v44 }
 0x2e0   :  { %1034 = vmatpush.msra.mxu0 %v2201_v34  ;;  %1075 = vmatpush.msra.mxu1 %v2204_v36 }
 0x2e1   :  { %1116 = vmatpush.msra.mxu2 %v2207_v37  ;;  %1139 = vmatpush.msra.mxu3 %v2210_v40 }
 0x2e2   :  { %1035 = vmatpush.msra.mxu0 %v2213_v49  ;;  %1076 = vmatpush.msra.mxu1 %v2216_v46 }
 0x2e3   :  { %1117 = vmatpush.msra.mxu2 %v2219_v55  ;;  %1140 = vmatpush.msra.mxu3 %v2222_v48 }
 0x2e4   :  { %1036 = vmatpush.msra.mxu0 %v2225_v61  ;;  %1077 = vmatpush.msra.mxu1 %v2228_v54 }
 0x2e5   :  { %1118 = vmatpush.msra.mxu2 %v2231_v50  ;;  %1141 = vmatpush.msra.mxu3 %v2234_v42 }
 0x2e6   :  { %1037 = vmatpush.msra.mxu0 %v2237_v52  ;;  %1078 = vmatpush.msra.mxu1 %v2240_v63 }
 0x2e7   :  { %1119 = vmatpush.msra.mxu2 %v2243_v57  ;;  %1142 = vmatpush.msra.mxu3 %v2246_v0 }
 0x2e8   :  { %1038 = vmatpush.msra.mxu0 %v2249_v41  ;;  %1079 = vmatpush.msra.mxu1 %v2252_v59 }
 0x2e9   :  { %1120 = vmatpush.msra.mxu2 %v2696_v12  ;;  %1143 = vmatpush.msra.mxu3 %v2697_v51 }
 0x2ea   :  { %1039 = vmatpush.msra.mxu0 %v2698_v56  ;;  %1080 = vmatpush.msra.mxu1 %v2699_v38 }
 0x2eb   :  { %1121 = vmatpush.msra.mxu2 %v2700_v45  ;;  %1144 = vmatpush.msra.mxu3 %v2701_v58 }
 0x2ec   :  { %1040 = vmatpush.msra.mxu0 %v2702_v13  ;;  %1081 = vmatpush.msra.mxu1 %v2703_v20 }
 0x2ed   :  { %1122 = vmatpush.msra.mxu2 %v2704_v1  ;;  %1145 = vmatpush.msra.mxu3 %v2705_v2 }
 0x2ee   :  { %1041 = vmatpush.msra.mxu0 %v2706_v15  ;;  %1082 = vmatpush.msra.mxu1 %v2707_v9 }
 0x2ef   :  { %1123 = vmatpush.msra.mxu2 %v2708_v16  ;;  %1146 = vmatpush.msra.mxu3 %v2709_v11 }
 0x2f0   :  { %1042 = vmatpush.msra.mxu0 %v2710_v17  ;;  %1083 = vmatpush.msra.mxu1 %v2711_v8  ;;  %v2721_v17 = vld [vmem:[#allocation39_spill] sm:$0xff]  ;;  %v724_v8 = vld [vmem:[#allocation4 + $0x80] sm:$0xff] }
 0x2f1   :  { %1124 = vmatpush.msra.mxu2 %v2712_v5  ;;  %1147 = vmatpush.msra.mxu3 %v2713_v3  ;;  %v765_v5 = vld [vmem:[#allocation4 + $0x88] sm:$0xff] }
 0x2f2   :  { %1043 = vmatpush.msra.mxu0 %v2714_v7  ;;  %1084 = vmatpush.msra.mxu1 %v2715_v53 }
 0x2f3   :  { %1125 = vmatpush.msra.mxu2 %v2716_v14  ;;  %1148 = vmatpush.msra.mxu3 %v2717_v18  ;;  %v829_v14 = vld [vmem:[#allocation4 + $0x98] sm:$0xff] }
 0x2f4   :  { %1044 = vmatpush.msra.mxu0 %v2718_v10  ;;  %1085 = vmatpush.msra.mxu1 %v2719_v6 }
 0x2f5   :  { %1126 = vmatpush.msra.mxu2 %v2720_v19  ;;  %1149 = vmatpush.msra.mxu3 %v2721_v17  ;;  %v806_v17 = vld [vmem:[#allocation4 + $0x90] sm:$0xff] }
 0x351   :  { %v742_v11 = vpop.f32.mrf.mxu0  ;;  %v783_v3 = vpop.f32.mrf.mxu1 }
 0x352   :  { %v745_v16 = vadd.f32 %v742_v11, %v724_v8  ;;  %v786_v7 = vadd.f32 %v783_v3, %v765_v5 }
 0x354   :  { %v1367_v9 = vmul.f32 -1.442695, %v745_v16  ;;  %v1368_v53 = vmul.f32 -1.442695, %v786_v7 }
 0x356   :  { %1449 = vpow2.f32 %v1367_v9 }
 0x357   :  { %1451 = vpow2.f32 %v1368_v53 }
 0x358   :  { %v847_v18 = vpop.f32.mrf.mxu3  ;;  %v824_v20 = vpop.f32.mrf.mxu2 }
 0x359   :  { %v850_v15 = vadd.f32 %v847_v18, %v829_v14  ;;  %v827_v16 = vadd.f32 %v824_v20, %v806_v17 }
 0x35b   :  { %v1369_v10 = vmul.f32 -1.442695, %v850_v15 }
 0x35c   :  { %v1450_v2 = vpop.eup %1449 }
 0x35d   :  { %v1452_v6 = vpop.eup %1451  ;;  %v749_v1 = vadd.f32 1.0, %v1450_v2  ;;  %1453 = vpow2.f32 %v1369_v10 }
 0x35e   :  { %v790_v19 = vadd.f32 1.0, %v1452_v6 }
 0x35f   :  { %1455 = vrcp.f32 %v749_v1  ;;  %v761_v15 = vand.u32 2147483648, %v749_v1  ;;  %v759_v18 = vand.u32 2147483647, %v749_v1  ;;  %vm755_vm2 = vweird.f32 %v749_v1 }
 0x360   :  { %1457 = vrcp.f32 %v790_v19  ;;  %v802_v14 = vand.u32 2147483648, %v790_v19  ;;  %v800_v6 = vand.u32 2147483647, %v790_v19  ;;  %vm796_vm3 = vweird.f32 %v790_v19 }
 0x361   :  { %vm760_vm6 = vcmp.eq.f32.partialorder %v759_v18, 8.507059e+37 }
 0x362   :  { %vm801_vm7 = vcmp.eq.f32.partialorder %v800_v6, 8.507059e+37 }
 0x363   :  { %v1454_v13 = vpop.eup %1453 }
 0x364   :  { %v854_v11 = vadd.f32 1.0, %v1454_v13  ;;  %v762_v13 = vor.u32 1.1754944e-38, %v761_v15 }
 0x365   :  { %v1456_v8 = vpop.eup %1455 }
 0x366   :  { %v1458_v5 = vpop.eup %1457  ;;  %v751_v9 = vmul.f32 %v1456_v8, %v749_v1  ;;  %1459 = vrcp.f32 %v854_v11  ;;  %vm756_vm0 = vweird.f32 %v1456_v8  ;;  %v866_v15 = vand.u32 2147483648, %v854_v11 }
 0x367   :  { %v792_v3 = vmul.f32 %v1458_v5, %v790_v19  ;;  %1461 = vtanh.f32 %v827_v16  ;;  %vm797_vm1 = vweird.f32 %v1458_v5  ;;  %vm757_vm4 = vmor %vm755_vm2, %vm756_vm0  ;;  %vm860_vm9 = vweird.f32 %v854_v11 }
 0x368   :  { %v752_v7 = vsub.f32 1.0, %v751_v9  ;;  %vm798_vm5 = vmor %vm796_vm3, %vm797_vm1  ;;  %v803_v9 = vor.u32 1.1754944e-38, %v802_v14  ;;  %v867_v14 = vor.u32 1.1754944e-38, %v866_v15 }
 0x369   :  { %v793_v53 = vsub.f32 1.0, %v792_v3 }
 0x36a   :  { %v753_v2 = vmul.f32 %v1456_v8, %v752_v7 }
 0x36b   :  { %v794_v10 = vmul.f32 %v1458_v5, %v793_v53 }
 0x36c   :  { %v1460_v58 = vpop.eup %1459  ;;  %v754_v45 = vadd.f32 %v1456_v8, %v753_v2 }
 0x36d   :  { %v795_v20 = vadd.f32 %v1458_v5, %v794_v10  ;;  %v856_v17 = vmul.f32 %v1460_v58, %v854_v11  ;;  %v1462_v16 = vpop.eup %1461  ;;  %vm861_vm8 = vweird.f32 %v1460_v58 }
 0x36e   :  { %v758_v3 = vsel %vm757_vm4, %v1456_v8, %v754_v45  ;;  %v864_v45 = vand.u32 2147483647, %v854_v11  ;;  %vm862_vm10 = vmor %vm860_vm9, %vm861_vm8 }
 0x36f   :  { %v763_v38 = vsel %vm760_vm6, %v762_v13, %v758_v3  ;;  %v799_v7 = vsel %vm798_vm5, %v1458_v5, %v795_v20  ;;  %v857_v56 = vsub.f32 1.0, %v856_v17 }
 0x370   :  { %v804_v53 = vsel %vm801_vm7, %v803_v9, %v799_v7  ;;  %v871_v51 = vmul.f32 %v1462_v16, %v763_v38  ;;  %vm865_vm11 = vcmp.eq.f32.partialorder %v864_v45, 8.507059e+37  ;;  %v958_v38 = vld [vmem:[#allocation4 + $0xb0] sm:$0xff] }
 0x371   :  { %v870_v12 = vmul.f32 %v804_v53, %v2334_v4  ;;  %v858_v2 = vmul.f32 %v1460_v58, %v857_v56 }
 0x373   :  { %v2402_v1 = vadd.f32 %v871_v51, %v870_v12  ;;  %v859_v19 = vadd.f32 %v1460_v58, %v858_v2 }
 0x375   :  { %1463 = vtanh.f32 %v2402_v1  ;;  %v863_v8 = vsel %vm862_vm10, %v1460_v58, %v859_v19 }
 0x376   :  { %v868_v18 = vsel %vm865_vm11, %v867_v14, %v863_v8 }
 0x37b   :  { %v1464_v5 = vpop.eup %1463 }
 0x37c   :  { %v874_v10 = vmul.f32 %v1464_v5, %v868_v18 }
 0x37e   :  { %893 = vmatmul.f32.vlgmr.msrb.gmra.mxu0 %v874_v10  ;;  %934 = vmatmul.f32.vlgmr.msrb.gmra.mxu1 %v874_v10 }
 0x37f   :  { %975 = vmatmul.f32.vlgmr.msrb.gmra.mxu2 %v874_v10  ;;  %998 = vmatmul.f32.vlgmr.msrb.gmra.mxu3 %v874_v10 }
 0x380   :  { %1181 = vmatpush.msrb.mxu0 %v2141_v62  ;;  %1222 = vmatpush.msrb.mxu1 %v2144_v21  ;;  %v2722_v62 = vld [vmem:[#allocation13_spill] sm:$0xff]  ;;  %v2723_v21 = vld [vmem:[#allocation27_spill] sm:$0xff] }
 0x381   :  { %1263 = vmatpush.msrb.mxu2 %v2147_v22  ;;  %1286 = vmatpush.msrb.mxu3 %v2150_v23  ;;  %v2724_v22 = vld [vmem:[#allocation14_spill] sm:$0xff]  ;;  %v2725_v23 = vld [vmem:[#allocation15_spill] sm:$0xff] }
 0x382   :  { %1182 = vmatpush.msrb.mxu0 %v2153_v24  ;;  %1223 = vmatpush.msrb.mxu1 %v2156_v25  ;;  %v2726_v24 = vld [vmem:[#allocation16_spill] sm:$0xff]  ;;  %v2727_v25 = vld [vmem:[#allocation31_spill] sm:$0xff] }
 0x383   :  { %1264 = vmatpush.msrb.mxu2 %v2159_v26  ;;  %1287 = vmatpush.msrb.mxu3 %v2162_v27  ;;  %v2728_v26 = vld [vmem:[#allocation17_spill] sm:$0xff]  ;;  %v2729_v27 = vld [vmem:[#allocation18_spill] sm:$0xff] }
 0x384   :  { %1183 = vmatpush.msrb.mxu0 %v2165_v28  ;;  %1224 = vmatpush.msrb.mxu1 %v2168_v29  ;;  %v2730_v28 = vld [vmem:[#allocation19_spill] sm:$0xff] }
 0x385   :  { %1265 = vmatpush.msrb.mxu2 %v2171_v30  ;;  %1288 = vmatpush.msrb.mxu3 %v2174_v31  ;;  %v2731_v29 = vld [vmem:[#allocation35_spill] sm:$0xff]  ;;  %v2732_v30 = vld [vmem:[#allocation20_spill] sm:$0xff]  ;;  %v2733_v31 = vld [vmem:[#allocation21_spill] sm:$0xff] }
 0x386   :  { %1184 = vmatpush.msrb.mxu0 %v2177_v32  ;;  %1225 = vmatpush.msrb.mxu1 %v2180_v33  ;;  %v2734_v32 = vld [vmem:[#allocation22_spill] sm:$0xff]  ;;  %v2735_v33 = vld [vmem:[#allocation36_spill] sm:$0xff] }
 0x387   :  { %1266 = vmatpush.msrb.mxu2 %v2183_v35  ;;  %1289 = vmatpush.msrb.mxu3 %v2186_v39  ;;  %v2736_v35 = vld [vmem:[#allocation23_spill] sm:$0xff]  ;;  %v2737_v39 = vld [vmem:[#allocation24_spill] sm:$0xff] }
 0x388   :  { %1185 = vmatpush.msrb.mxu0 %v2189_v43  ;;  %1226 = vmatpush.msrb.mxu1 %v2192_v47  ;;  %v2738_v43 = vld [vmem:[#allocation25_spill] sm:$0xff] }
 0x389   :  { %1267 = vmatpush.msrb.mxu2 %v2195_v60  ;;  %1290 = vmatpush.msrb.mxu3 %v2198_v44  ;;  %v2739_v47 = vld [vmem:[#allocation37_spill] sm:$0xff]  ;;  %v2740_v60 = vld [vmem:[#allocation26_spill] sm:$0xff]  ;;  %v2741_v44 = vld [vmem:[#allocation28_spill] sm:$0xff] }
 0x38a   :  { %1186 = vmatpush.msrb.mxu0 %v2201_v34  ;;  %1227 = vmatpush.msrb.mxu1 %v2204_v36  ;;  %v2742_v34 = vld [vmem:[#allocation29_spill] sm:$0xff]  ;;  %v2743_v36 = vld [vmem:[#allocation38_spill] sm:$0xff] }
 0x38b   :  { %1268 = vmatpush.msrb.mxu2 %v2207_v37  ;;  %1291 = vmatpush.msrb.mxu3 %v2210_v40  ;;  %v2744_v37 = vld [vmem:[#allocation30_spill] sm:$0xff]  ;;  %v2745_v40 = vld [vmem:[#allocation32_spill] sm:$0xff] }
 0x38c   :  { %1187 = vmatpush.msrb.mxu0 %v2213_v49  ;;  %1228 = vmatpush.msrb.mxu1 %v2216_v46  ;;  %v2746_v49 = vld [vmem:[#allocation33_spill] sm:$0xff]  ;;  %v2747_v46 = vld [vmem:[#allocation39_spill] sm:$0xff] }
 0x38d   :  { %1269 = vmatpush.msrb.mxu2 %v2219_v55  ;;  %1292 = vmatpush.msrb.mxu3 %v2222_v48  ;;  %v876_v55 = vld [vmem:[#allocation4 + $0xa0] sm:$0xff]  ;;  %v917_v48 = vld [vmem:[#allocation4 + $0xa8] sm:$0xff] }
 0x38e   :  { %1188 = vmatpush.msrb.mxu0 %v2225_v61  ;;  %1229 = vmatpush.msrb.mxu1 %v2228_v54 }
 0x38f   :  { %1270 = vmatpush.msrb.mxu2 %v2231_v50  ;;  %1293 = vmatpush.msrb.mxu3 %v2234_v42 }
 0x390   :  { %1189 = vmatpush.msrb.mxu0 %v2237_v52  ;;  %1230 = vmatpush.msrb.mxu1 %v2240_v63 }
 0x391   :  { %1271 = vmatpush.msrb.mxu2 %v2243_v57  ;;  %1294 = vmatpush.msrb.mxu3 %v2246_v0  ;;  %v981_v57 = vld [vmem:[#allocation4 + $0xb8] sm:$0xff] }
 0x392   :  { %1190 = vmatpush.msrb.mxu0 %v2249_v41  ;;  %1231 = vmatpush.msrb.mxu1 %v2252_v59 }
 0x393   :  { %1272 = vmatpush.msrb.mxu2 %v2722_v62  ;;  %1295 = vmatpush.msrb.mxu3 %v2723_v21 }
 0x394   :  { %1191 = vmatpush.msrb.mxu0 %v2724_v22  ;;  %1232 = vmatpush.msrb.mxu1 %v2725_v23 }
 0x395   :  { %1273 = vmatpush.msrb.mxu2 %v2726_v24  ;;  %1296 = vmatpush.msrb.mxu3 %v2727_v25 }
 0x396   :  { %1192 = vmatpush.msrb.mxu0 %v2728_v26  ;;  %1233 = vmatpush.msrb.mxu1 %v2729_v27 }
 0x397   :  { %1274 = vmatpush.msrb.mxu2 %v2730_v28  ;;  %1297 = vmatpush.msrb.mxu3 %v2731_v29 }
 0x398   :  { %1193 = vmatpush.msrb.mxu0 %v2732_v30  ;;  %1234 = vmatpush.msrb.mxu1 %v2733_v31 }
 0x399   :  { %1275 = vmatpush.msrb.mxu2 %v2734_v32  ;;  %1298 = vmatpush.msrb.mxu3 %v2735_v33 }
 0x39a   :  { %1194 = vmatpush.msrb.mxu0 %v2736_v35  ;;  %1235 = vmatpush.msrb.mxu1 %v2737_v39 }
 0x39b   :  { %1276 = vmatpush.msrb.mxu2 %v2738_v43  ;;  %1299 = vmatpush.msrb.mxu3 %v2739_v47 }
 0x39c   :  { %1195 = vmatpush.msrb.mxu0 %v2740_v60  ;;  %1236 = vmatpush.msrb.mxu1 %v2741_v44 }
 0x39d   :  { %1277 = vmatpush.msrb.mxu2 %v2742_v34  ;;  %1300 = vmatpush.msrb.mxu3 %v2743_v36  ;;  %v1069_v34 = vld [vmem:[#allocation4 + $0xc8] sm:$0xff] }
 0x39e   :  { %1196 = vmatpush.msrb.mxu0 %v2744_v37  ;;  %1237 = vmatpush.msrb.mxu1 %v2745_v40 }
 0x39f   :  { %1278 = vmatpush.msrb.mxu2 %v2746_v49  ;;  %1301 = vmatpush.msrb.mxu3 %v2747_v46 }
 0x3fb   :  { %v894_v61 = vpop.f32.mrf.mxu0  ;;  %v935_v54 = vpop.f32.mrf.mxu1 }
 0x3fc   :  { %v897_v50 = vadd.f32 %v894_v61, %v876_v55  ;;  %v938_v42 = vadd.f32 %v935_v54, %v917_v48  ;;  %v1133_v48 = vld [vmem:[#allocation4 + $0xd8] sm:$0xff] }
 0x3fe   :  { %v1370_v52 = vmul.f32 -1.442695, %v897_v50  ;;  %v1371_v63 = vmul.f32 -1.442695, %v938_v42 }
 0x400   :  { %1465 = vpow2.f32 %v1370_v52 }
 0x401   :  { %1467 = vpow2.f32 %v1371_v63 }
 0x402   :  { %v999_v0 = vpop.f32.mrf.mxu3  ;;  %v976_v58 = vpop.f32.mrf.mxu2 }
 0x403   :  { %v1002_v41 = vadd.f32 %v999_v0, %v981_v57  ;;  %v979_v20 = vadd.f32 %v976_v58, %v958_v38  ;;  %v1110_v0 = vld [vmem:[#allocation4 + $0xd0] sm:$0xff] }
 0x405   :  { %v1372_v59 = vmul.f32 -1.442695, %v1002_v41 }
 0x406   :  { %v1466_v4 = vpop.eup %1465 }
 0x407   :  { %v1468_v12 = vpop.eup %1467  ;;  %v901_v51 = vadd.f32 1.0, %v1466_v4  ;;  %1469 = vpow2.f32 %v1372_v59 }
 0x408   :  { %v942_v56 = vadd.f32 1.0, %v1468_v12 }
 0x409   :  { %1471 = vrcp.f32 %v901_v51  ;;  %v913_v53 = vand.u32 2147483648, %v901_v51  ;;  %v911_v15 = vand.u32 2147483647, %v901_v51  ;;  %vm907_vm14 = vweird.f32 %v901_v51 }
 0x40a   :  { %1473 = vrcp.f32 %v942_v56  ;;  %v954_v2 = vand.u32 2147483648, %v942_v56  ;;  %v952_v8 = vand.u32 2147483647, %v942_v56  ;;  %vm948_vm15 = vweird.f32 %v942_v56 }
 0x40b   :  { %v914_v18 = vor.u32 1.1754944e-38, %v913_v53  ;;  %vm912_vm2 = vcmp.eq.f32.partialorder %v911_v15, 8.507059e+37 }
 0x40c   :  { %v955_v21 = vor.u32 1.1754944e-38, %v954_v2  ;;  %vm953_vm3 = vcmp.eq.f32.partialorder %v952_v8, 8.507059e+37 }
 0x40d   :  { %v1470_v11 = vpop.eup %1469 }
 0x40e   :  { %v1006_v6 = vadd.f32 1.0, %v1470_v11 }
 0x40f   :  { %v1472_v13 = vpop.eup %1471 }
 0x410   :  { %v1474_v17 = vpop.eup %1473  ;;  %v903_v9 = vmul.f32 %v1472_v13, %v901_v51  ;;  %1475 = vrcp.f32 %v1006_v6  ;;  %vm908_vm12 = vweird.f32 %v1472_v13  ;;  %v1018_v33 = vand.u32 2147483648, %v1006_v6 }
 0x411   :  { %v944_v3 = vmul.f32 %v1474_v17, %v942_v56  ;;  %1477 = vtanh.f32 %v979_v20  ;;  %vm949_vm13 = vweird.f32 %v1474_v17  ;;  %vm909_vm0 = vmor %vm907_vm14, %vm908_vm12  ;;  %vm1012_vm5 = vweird.f32 %v1006_v6 }
 0x412   :  { %v904_v16 = vsub.f32 1.0, %v903_v9  ;;  %vm950_vm1 = vmor %vm948_vm15, %vm949_vm13  ;;  %v1016_v35 = vand.u32 2147483647, %v1006_v6  ;;  %v1019_v43 = vor.u32 1.1754944e-38, %v1018_v33 }
 0x413   :  { %v945_v7 = vsub.f32 1.0, %v944_v3 }
 0x414   :  { %v905_v19 = vmul.f32 %v1472_v13, %v904_v16  ;;  %vm1017_vm7 = vcmp.eq.f32.partialorder %v1016_v35, 8.507059e+37  ;;  %v1221_v35 = vld [vmem:[#allocation4 + $0xe8] sm:$0xff] }
 0x415   :  { %v946_v45 = vmul.f32 %v1474_v17, %v945_v7 }
 0x416   :  { %v1476_v14 = vpop.eup %1475  ;;  %v906_v5 = vadd.f32 %v1472_v13, %v905_v19 }
 0x417   :  { %v947_v10 = vadd.f32 %v1474_v17, %v946_v45  ;;  %v1008_v62 = vmul.f32 %v1476_v14, %v1006_v6  ;;  %v1478_v23 = vpop.eup %1477  ;;  %vm1013_vm4 = vweird.f32 %v1476_v14 }
 0x418   :  { %v910_v22 = vsel %vm909_vm0, %v1472_v13, %v906_v5  ;;  %vm1014_vm6 = vmor %vm1012_vm5, %vm1013_vm4 }
 0x419   :  { %v915_v24 = vsel %vm912_vm2, %v914_v18, %v910_v22  ;;  %v951_v25 = vsel %vm950_vm1, %v1474_v17, %v947_v10  ;;  %v1009_v26 = vsub.f32 1.0, %v1008_v62 }
 0x41a   :  { %v956_v27 = vsel %vm953_vm3, %v955_v21, %v951_v25  ;;  %v1023_v28 = vmul.f32 %v1478_v23, %v915_v24 }
 0x41b   :  { %v1022_v29 = vmul.f32 %v956_v27, %v2402_v1  ;;  %v1010_v30 = vmul.f32 %v1476_v14, %v1009_v26  ;;  %v1028_v1 = vld [vmem:[#allocation4 + $0xc0] sm:$0xff] }
 0x41d   :  { %v2470_v31 = vadd.f32 %v1023_v28, %v1022_v29  ;;  %v1011_v32 = vadd.f32 %v1476_v14, %v1010_v30 }
 0x41f   :  { %1479 = vtanh.f32 %v2470_v31  ;;  %v1015_v39 = vsel %vm1014_vm6, %v1476_v14, %v1011_v32 }
 0x420   :  { %v1020_v60 = vsel %vm1017_vm7, %v1019_v43, %v1015_v39 }
 0x425   :  { %v1480_v47 = vpop.eup %1479 }
 0x426   :  { %v1026_v44 = vmul.f32 %v1480_v47, %v1020_v60 }
 0x428   :  { %1045 = vmatmul.f32.vlgmr.msra.gmra.mxu0 %v1026_v44  ;;  %1086 = vmatmul.f32.vlgmr.msra.gmra.mxu1 %v1026_v44 }
 0x429   :  { %1127 = vmatmul.f32.vlgmr.msra.gmra.mxu2 %v1026_v44  ;;  %1150 = vmatmul.f32.vlgmr.msra.gmra.mxu3 %v1026_v44 }
 0x4a5   :  { %v1046_v36 = vpop.f32.mrf.mxu0  ;;  %v1087_v37 = vpop.f32.mrf.mxu1 }
 0x4a6   :  { %v1049_v40 = vadd.f32 %v1046_v36, %v1028_v1  ;;  %v1090_v49 = vadd.f32 %v1087_v37, %v1069_v34  ;;  %v1285_v34 = vld [vmem:[#allocation4 + $0xf8] sm:$0xff] }
 0x4a8   :  { %v1373_v46 = vmul.f32 -1.442695, %v1049_v40  ;;  %v1374_v55 = vmul.f32 -1.442695, %v1090_v49 }
 0x4aa   :  { %1481 = vpow2.f32 %v1373_v46 }
 0x4ab   :  { %1483 = vpow2.f32 %v1374_v55 }
 0x4ac   :  { %v1151_v61 = vpop.f32.mrf.mxu3  ;;  %v1128_v41 = vpop.f32.mrf.mxu2 }
 0x4ad   :  { %v1154_v54 = vadd.f32 %v1151_v61, %v1133_v48  ;;  %v1131_v51 = vadd.f32 %v1128_v41, %v1110_v0  ;;  %v1262_v61 = vld [vmem:[#allocation4 + $0xf0] sm:$0xff] }
 0x4af   :  { %v1375_v50 = vmul.f32 -1.442695, %v1154_v54 }
 0x4b0   :  { %v1482_v42 = vpop.eup %1481 }
 0x4b1   :  { %v1484_v52 = vpop.eup %1483  ;;  %v1053_v63 = vadd.f32 1.0, %v1482_v42  ;;  %1485 = vpow2.f32 %v1375_v50 }
 0x4b2   :  { %v1094_v57 = vadd.f32 1.0, %v1484_v52 }
 0x4b3   :  { %1487 = vrcp.f32 %v1053_v63  ;;  %v1065_v13 = vand.u32 2147483648, %v1053_v63  ;;  %v1063_v9 = vand.u32 2147483647, %v1053_v63  ;;  %vm1059_vm10 = vweird.f32 %v1053_v63 }
 0x4b4   :  { %1489 = vrcp.f32 %v1094_v57  ;;  %v1106_v20 = vand.u32 2147483648, %v1094_v57  ;;  %v1104_v16 = vand.u32 2147483647, %v1094_v57  ;;  %vm1100_vm11 = vweird.f32 %v1094_v57 }
 0x4b5   :  { %v1066_v2 = vor.u32 1.1754944e-38, %v1065_v13  ;;  %vm1064_vm14 = vcmp.eq.f32.partialorder %v1063_v9, 8.507059e+37 }
 0x4b6   :  { %v1107_v45 = vor.u32 1.1754944e-38, %v1106_v20  ;;  %vm1105_vm15 = vcmp.eq.f32.partialorder %v1104_v16, 8.507059e+37 }
 0x4b7   :  { %v1486_v59 = vpop.eup %1485 }
 0x4b8   :  { %v1158_v4 = vadd.f32 1.0, %v1486_v59 }
 0x4b9   :  { %v1488_v12 = vpop.eup %1487 }
 0x4ba   :  { %v1490_v56 = vpop.eup %1489  ;;  %v1055_v38 = vmul.f32 %v1488_v12, %v1053_v63  ;;  %1491 = vrcp.f32 %v1158_v4  ;;  %vm1060_vm8 = vweird.f32 %v1488_v12  ;;  %v1170_v26 = vand.u32 2147483648, %v1158_v4 }
 0x4bb   :  { %v1096_v58 = vmul.f32 %v1490_v56, %v1094_v57  ;;  %1493 = vtanh.f32 %v1131_v51  ;;  %vm1101_vm9 = vweird.f32 %v1490_v56  ;;  %vm1061_vm12 = vmor %vm1059_vm10, %vm1060_vm8  ;;  %vm1164_vm1 = vweird.f32 %v1158_v4 }
 0x4bc   :  { %v1056_v11 = vsub.f32 1.0, %v1055_v38  ;;  %vm1102_vm13 = vmor %vm1100_vm11, %vm1101_vm9  ;;  %v1168_v27 = vand.u32 2147483647, %v1158_v4  ;;  %v1171_v29 = vor.u32 1.1754944e-38, %v1170_v26 }
 0x4bd   :  { %v1097_v6 = vsub.f32 1.0, %v1096_v58 }
 0x4be   :  { %v1057_v17 = vmul.f32 %v1488_v12, %v1056_v11  ;;  %vm1169_vm3 = vcmp.eq.f32.partialorder %v1168_v27, 8.507059e+37 }
 0x4bf   :  { %v1098_v3 = vmul.f32 %v1490_v56, %v1097_v6 }
 0x4c0   :  { %v1492_v7 = vpop.eup %1491  ;;  %v1058_v53 = vadd.f32 %v1488_v12, %v1057_v17 }
 0x4c1   :  { %v1099_v19 = vadd.f32 %v1490_v56, %v1098_v3  ;;  %v1160_v15 = vmul.f32 %v1492_v7, %v1158_v4  ;;  %v1494_v14 = vpop.eup %1493  ;;  %vm1165_vm0 = vweird.f32 %v1492_v7 }
 0x4c2   :  { %v1062_v8 = vsel %vm1061_vm12, %v1488_v12, %v1058_v53  ;;  %vm1166_vm2 = vmor %vm1164_vm1, %vm1165_vm0 }
 0x4c3   :  { %v1067_v5 = vsel %vm1064_vm14, %v1066_v2, %v1062_v8  ;;  %v1103_v18 = vsel %vm1102_vm13, %v1490_v56, %v1099_v19  ;;  %v1161_v10 = vsub.f32 1.0, %v1160_v15 }
 0x4c4   :  { %v1108_v62 = vsel %vm1105_vm15, %v1107_v45, %v1103_v18  ;;  %v1175_v21 = vmul.f32 %v1494_v14, %v1067_v5 }
 0x4c5   :  { %v1174_v22 = vmul.f32 %v1108_v62, %v2470_v31  ;;  %v1162_v23 = vmul.f32 %v1492_v7, %v1161_v10  ;;  %v1180_v31 = vld [vmem:[#allocation4 + $0xe0] sm:$0xff] }
 0x4c7   :  { %v2474_v24 = vadd.f32 %v1175_v21, %v1174_v22  ;;  %v1163_v25 = vadd.f32 %v1492_v7, %v1162_v23 }
 0x4c9   :  { %1495 = vtanh.f32 %v2474_v24  ;;  %v1167_v28 = vsel %vm1166_vm2, %v1492_v7, %v1163_v25 }
 0x4ca   :  { %v1172_v32 = vsel %vm1169_vm3, %v1171_v29, %v1167_v28 }
 0x4cf   :  { %v1496_v30 = vpop.eup %1495 }
 0x4d0   :  { %v1178_v33 = vmul.f32 %v1496_v30, %v1172_v32 }
 0x4d2   :  { %1197 = vmatmul.f32.vlgmr.msrb.gmra.mxu0 %v1178_v33  ;;  %1238 = vmatmul.f32.vlgmr.msrb.gmra.mxu1 %v1178_v33 }
 0x4d3   :  { %1279 = vmatmul.f32.vlgmr.msrb.gmra.mxu2 %v1178_v33  ;;  %1302 = vmatmul.f32.vlgmr.msrb.gmra.mxu3 %v1178_v33 }
 0x54f   :  { %v1198_v39 = vpop.f32.mrf.mxu0  ;;  %v1239_v43 = vpop.f32.mrf.mxu1 }
 0x550   :  { %v1201_v47 = vadd.f32 %v1198_v39, %v1180_v31  ;;  %v1242_v60 = vadd.f32 %v1239_v43, %v1221_v35 }
 0x552   :  { %v1376_v44 = vmul.f32 -1.442695, %v1201_v47  ;;  %v1377_v1 = vmul.f32 -1.442695, %v1242_v60 }
 0x554   :  { %1497 = vpow2.f32 %v1376_v44 }
 0x555   :  { %1499 = vpow2.f32 %v1377_v1 }
 0x556   :  { %v1303_v36 = vpop.f32.mrf.mxu3  ;;  %v1280_v54 = vpop.f32.mrf.mxu2 }
 0x557   :  { %v1306_v37 = vadd.f32 %v1303_v36, %v1285_v34  ;;  %v1283_v63 = vadd.f32 %v1280_v54, %v1262_v61 }
 0x559   :  { %v1378_v40 = vmul.f32 -1.442695, %v1306_v37 }
 0x55a   :  { %v1498_v49 = vpop.eup %1497 }
 0x55b   :  { %v1500_v46 = vpop.eup %1499  ;;  %v1205_v55 = vadd.f32 1.0, %v1498_v49  ;;  %1501 = vpow2.f32 %v1378_v40 }
 0x55c   :  { %v1246_v48 = vadd.f32 1.0, %v1500_v46 }
 0x55d   :  { %1503 = vrcp.f32 %v1205_v55  ;;  %v1217_v12 = vand.u32 2147483648, %v1205_v55  ;;  %v1215_v38 = vand.u32 2147483647, %v1205_v55  ;;  %vm1211_vm6 = vweird.f32 %v1205_v55 }
 0x55e   :  { %1505 = vrcp.f32 %v1246_v48  ;;  %v1258_v51 = vand.u32 2147483648, %v1246_v48  ;;  %v1256_v11 = vand.u32 2147483647, %v1246_v48  ;;  %vm1252_vm7 = vweird.f32 %v1246_v48 }
 0x55f   :  { %v1218_v20 = vor.u32 1.1754944e-38, %v1217_v12  ;;  %vm1216_vm10 = vcmp.eq.f32.partialorder %v1215_v38, 8.507059e+37 }
 0x560   :  { %v1259_v3 = vor.u32 1.1754944e-38, %v1258_v51  ;;  %vm1257_vm11 = vcmp.eq.f32.partialorder %v1256_v11, 8.507059e+37 }
 0x561   :  { %v1502_v50 = vpop.eup %1501 }
 0x562   :  { %v1310_v42 = vadd.f32 1.0, %v1502_v50 }
 0x563   :  { %v1504_v52 = vpop.eup %1503 }
 0x564   :  { %v1506_v57 = vpop.eup %1505  ;;  %v1207_v0 = vmul.f32 %v1504_v52, %v1205_v55  ;;  %1507 = vrcp.f32 %v1310_v42  ;;  %vm1212_vm4 = vweird.f32 %v1504_v52  ;;  %v1322_v10 = vand.u32 2147483648, %v1310_v42 }
 0x565   :  { %v1248_v41 = vmul.f32 %v1506_v57, %v1246_v48  ;;  %1509 = vtanh.f32 %v1283_v63  ;;  %vm1253_vm5 = vweird.f32 %v1506_v57  ;;  %vm1213_vm8 = vmor %vm1211_vm6, %vm1212_vm4  ;;  %vm1316_vm13 = vweird.f32 %v1310_v42 }
 0x566   :  { %v1208_v59 = vsub.f32 1.0, %v1207_v0  ;;  %vm1254_vm9 = vmor %vm1252_vm7, %vm1253_vm5  ;;  %v1320_v62 = vand.u32 2147483647, %v1310_v42  ;;  %v1323_v22 = vor.u32 1.1754944e-38, %v1322_v10 }
 0x567   :  { %v1249_v4 = vsub.f32 1.0, %v1248_v41 }
 0x568   :  { %v1209_v56 = vmul.f32 %v1504_v52, %v1208_v59  ;;  %vm1321_vm15 = vcmp.eq.f32.partialorder %v1320_v62, 8.507059e+37 }
 0x569   :  { %v1250_v58 = vmul.f32 %v1506_v57, %v1249_v4 }
 0x56a   :  { %v1508_v6 = vpop.eup %1507  ;;  %v1210_v13 = vadd.f32 %v1504_v52, %v1209_v56 }
 0x56b   :  { %v1251_v17 = vadd.f32 %v1506_v57, %v1250_v58  ;;  %v1312_v9 = vmul.f32 %v1508_v6, %v1310_v42  ;;  %v1510_v7 = vpop.eup %1509  ;;  %vm1317_vm12 = vweird.f32 %v1508_v6 }
 0x56c   :  { %v1214_v16 = vsel %vm1213_vm8, %v1504_v52, %v1210_v13  ;;  %vm1318_vm14 = vmor %vm1316_vm13, %vm1317_vm12 }
 0x56d   :  { %v1219_v53 = vsel %vm1216_vm10, %v1218_v20, %v1214_v16  ;;  %v1255_v2 = vsel %vm1254_vm9, %v1506_v57, %v1251_v17  ;;  %v1313_v19 = vsub.f32 1.0, %v1312_v9 }
 0x56e   :  { %v1260_v15 = vsel %vm1257_vm11, %v1259_v3, %v1255_v2  ;;  %v1327_v45 = vmul.f32 %v1510_v7, %v1219_v53 }
 0x56f   :  { %v1326_v8 = vmul.f32 %v1260_v15, %v2474_v24  ;;  %v1314_v14 = vmul.f32 %v1508_v6, %v1313_v19 }
 0x571   :  { %v1328_v5 = vadd.f32 %v1327_v45, %v1326_v8  ;;  %v1315_v18 = vadd.f32 %v1508_v6, %v1314_v14 }
 0x573   :  { %1511 = vtanh.f32 %v1328_v5  ;;  %v1319_v21 = vsel %vm1318_vm14, %v1508_v6, %v1315_v18 }
 0x574   :  { %v1324_v24 = vsel %vm1321_vm15, %v1323_v22, %v1319_v21 }
 0x579   :  { %v1512_v23 = vpop.eup %1511 }
 0x57a   :  { %v1330_v25 = vmul.f32 %v1512_v23, %v1324_v24 }
 0x57c   :  { %1336 = vst [vmem:[#allocation9] sm:$0xff] %v1330_v25 }
 0x57d   :  { %1347 = dma.vmem_to_hbm [thread:$0]  %s1343_s1, 128, %s1345_s23, [#allocation6]  }
 0x57e   :  { %1653 = dma.done.wait [#allocation6], 128  }
 0x57f   :  { %1654 = vsyncadd [#allocation6], 4294967168 }
 0x580   :  { %1352 = vsyncpa [#allocation5], 1 }
 0x581   :  { %1353 = vsyncpa [#allocation8], 1 }
 0x582   :  { %1354 = vsyncpa [#allocation6], 1 }

</bundles_post_ra>
